<compile_context>
chip_gen: v6e
topology: v6e:2x2x1
jax: 0.10.0
libtpu: 0.0.40
codegen_flags: <defaults>
</compile_context>

<pallas_src>
import jax
import jax.numpy as jnp
from jax.experimental import pallas as pl
from jax.experimental.pallas import tpu as pltpu


def _fusion_kernel(xh_ref, xf_ref, xb_ref, wh_ref, wf_ref, wb_ref, b_ref,
                   ctx_ref, fused_ref, attn_ref):
    # Blocks per grid step:
    #   xh_ref/xf_ref/xb_ref : (TB*T, Dm)  per-modality features (2-D, matmul-ready)
    #   wh_ref/wf_ref/wb_ref : (Dm, F+1)   per-modality weights with folded attn column
    #   b_ref                : (1, F+1)    packed bias
    #   ctx_ref              : (TB, F)
    #   fused_ref            : (TB*T, F)   2-D fused slab (reshaped to (B,T,F) in the wrapper)
    #   attn_ref             : (TB, T)     lane-dense attention weights
    TB, T = attn_ref.shape
    F = ctx_ref.shape[1]

    # Three small-K MXU passes accumulated in f32; column F is the folded attention score.
    out = (
        jnp.dot(xh_ref[...], wh_ref[...], preferred_element_type=jnp.float32)
        + jnp.dot(xf_ref[...], wf_ref[...], preferred_element_type=jnp.float32)
        + jnp.dot(xb_ref[...], wb_ref[...], preferred_element_type=jnp.float32)
        + b_ref[...]
    )                                                      # (TB*T, F+1) f32

    fused2 = out[:, :F]                                    # (TB*T, F)
    fused_ref[...] = fused2.astype(fused_ref.dtype)        # direct 2-D store, no reshape

    # Softmax over the time axis (PyTorch dim=1), max-stabilized, f32.
    scores = out[:, F:].reshape(TB, T, 1)                  # (TB, T, 1)
    m = jnp.max(scores, axis=1, keepdims=True)             # (TB, 1, 1)
    e = jnp.exp(scores - m)                                # (TB, T, 1)
    denom = jnp.sum(e, axis=1, keepdims=True)              # (TB, 1, 1)
    w = e * pl.reciprocal(denom, approx=False)             # (TB, T, 1)

    # Attention-weighted sum over time.
    ctx = jnp.sum(w * fused2.reshape(TB, T, F), axis=1)    # (TB, F)

    ctx_ref[...] = ctx.astype(ctx_ref.dtype)
    attn_ref[...] = w[:, :, 0].astype(attn_ref.dtype)      # lane-dense (TB, T)


def _round_up(x, m):
    return ((x + m - 1) // m) * m


def modality_fusion(hand_feat, face_feat, body_feat, params, *, tb=256,
                    compute_dtype=jnp.float32):
    """Fused projection + spatio-temporal attention.

    hand_feat : (B, T, Dh), face_feat : (B, T, Df), body_feat : (B, T, Db), float32.
    params    : dict with wh (Dh,F), bh (F,), wf (Df,F), bf (F,), wb (Db,F), bb (F,),
                wa (F,1), ba (1,).
    Returns (context (B,F), fused (B,T,F), attn_weights (B,T,1)).
    """
    B, T, Dh = hand_feat.shape
    Df = face_feat.shape[-1]
    Db = body_feat.shape[-1]
    F = params["wh"].shape[1]

    # --- pack weights: fold the attention-score projection into each modality --------------
    # scores = fused @ wa + ba = xh @ (wh@wa) + xf @ (wf@wa) + xb @ (wb@wa) + (b_cat@wa + ba)
    wa = params["wa"]                                                   # (F, 1)
    ba = params["ba"]                                                   # (1,)
    b_cat = params["bh"] + params["bf"] + params["bb"]                  # (F,)

    def pack(w):
        return jnp.concatenate([w, w @ wa], axis=1).astype(compute_dtype)   # (Dm, F+1)

    Wh, Wf, Wb = pack(params["wh"]), pack(params["wf"]), pack(params["wb"])
    b_big = jnp.concatenate([b_cat, b_cat @ wa + ba]).reshape(1, F + 1).astype(jnp.float32)

    # --- 2-D (matmul-ready) presentation of the features; reshapes are free in XLA ----------
    xh = hand_feat.reshape(B * T, Dh).astype(compute_dtype)
    xf = face_feat.reshape(B * T, Df).astype(compute_dtype)
    xb = body_feat.reshape(B * T, Db).astype(compute_dtype)

    # --- batch-tile selection (sublane-aligned; no padding, boundary block is clipped) ------
    tb = max(8, _round_up(int(tb), 8))
    if B > 128:
        # keep the grid >= 2 so the batch axis can shard across TensorCores (v7x megacore),
        # without shrinking the tile below ~64 batch rows (per-step overhead amortization).
        tb = min(tb, max(64, _round_up((B + 1) // 2, 8)))
    tb = min(tb, _round_up(B, 8))
    grid = (pl.cdiv(B, tb),)

    ctx, fused2, attn = pl.pallas_call(
        _fusion_kernel,
        out_shape=(
            jax.ShapeDtypeStruct((B, F), jnp.float32),        # context
            jax.ShapeDtypeStruct((B * T, F), jnp.float32),    # fused (2-D slab)
            jax.ShapeDtypeStruct((B, T), jnp.float32),        # attn weights (lane-dense)
        ),
        grid_spec=pltpu.PrefetchScalarGridSpec(
            num_scalar_prefetch=0,
            grid=grid,
            in_specs=[
                pl.BlockSpec((tb * T, Dh), lambda i: (i, 0)),
                pl.BlockSpec((tb * T, Df), lambda i: (i, 0)),
                pl.BlockSpec((tb * T, Db), lambda i: (i, 0)),
                pl.BlockSpec((Dh, F + 1), lambda i: (0, 0)),
                pl.BlockSpec((Df, F + 1), lambda i: (0, 0)),
                pl.BlockSpec((Db, F + 1), lambda i: (0, 0)),
                pl.BlockSpec((1, F + 1), lambda i: (0, 0)),
            ],
            out_specs=[
                pl.BlockSpec((tb, F), lambda i: (i, 0)),
                pl.BlockSpec((tb * T, F), lambda i: (i, 0)),
                pl.BlockSpec((tb, T), lambda i: (i, 0)),
            ],
        ),
        compiler_params=pltpu.CompilerParams(
            dimension_semantics=("parallel",),
            # tb=256, T=16: ~16.5 MiB of double-buffered blocks -> raise v5e's 16 MiB default;
            # 32 MiB is within the scoped default on v6e/v7x and well under physical VMEM.
            vmem_limit_bytes=32 * 1024 * 1024,
        ),
    )(xh, xf, xb, Wh, Wf, Wb, b_big)

    return ctx, fused2.reshape(B, T, F), attn.reshape(B, T, 1)


def _init_params(key, hand_dim, face_dim, body_dim, fused_dim):
    ks = jax.random.split(key, 8)

    def lin(kw, kb, din, dout):
        bound = 1.0 / jnp.sqrt(din)
        w = jax.random.uniform(kw, (din, dout), jnp.float32, -bound, bound)
        b = jax.random.uniform(kb, (dout,), jnp.float32, -bound, bound)
        return w, b

    wh, bh = lin(ks[0], ks[1], hand_dim, fused_dim)
    wf, bf = lin(ks[2], ks[3], face_dim, fused_dim)
    wb, bb = lin(ks[4], ks[5], body_dim, fused_dim)
    wa, ba = lin(ks[6], ks[7], fused_dim, 1)
    return dict(wh=wh, bh=bh, wf=wf, bf=bf, wb=wb, bb=bb, wa=wa, ba=ba)


def _reference(hand, face, body, p):
    hp = hand @ p["wh"] + p["bh"]
    fp = face @ p["wf"] + p["bf"]
    bp = body @ p["wb"] + p["bb"]
    fused = hp + fp + bp
    scores = fused @ p["wa"] + p["ba"]            # (B, T, 1)
    w = jax.nn.softmax(scores, axis=1)
    ctx = jnp.sum(w * fused, axis=1)
    return ctx, fused, w


if __name__ == "__main__":
    # B deliberately NOT a multiple of 8 to exercise the no-pad boundary-block path.
    B, T = 20, 16
    hand_dim, face_dim, body_dim, fused_dim = 16, 24, 32, 32

    key = jax.random.PRNGKey(0)
    k_h, k_f, k_b, k_p = jax.random.split(key, 4)
    hand = jax.random.normal(k_h, (B, T, hand_dim), jnp.float32)
    face = jax.random.normal(k_f, (B, T, face_dim), jnp.float32)
    body = jax.random.normal(k_b, (B, T, body_dim), jnp.float32)
    params = _init_params(k_p, hand_dim, face_dim, body_dim, fused_dim)

    ctx, fused, attn = modality_fusion(hand, face, body, params)
    jax.block_until_ready((ctx, fused, attn))

    ctx_r, fused_r, attn_r = _reference(hand, face, body, params)
    assert ctx.shape == (B, fused_dim)
    assert fused.shape == (B, T, fused_dim)
    assert attn.shape == (B, T, 1)
    # Tolerance: the W_m @ wa fold reassociates the f32 accumulation of the attention scores.
    assert jnp.allclose(ctx, ctx_r, atol=1e-4, rtol=1e-4), "context mismatch"
    assert jnp.allclose(fused, fused_r, atol=1e-4, rtol=1e-4), "fused mismatch"
    assert jnp.allclose(attn, attn_r, atol=1e-4, rtol=1e-4), "attn mismatch"

    print("KERNEL_OK")
</pallas_src>

<mosaic_0001>
module attributes {stable_mosaic.version = 11 : i64} {
  func.func @_fusion_kernel(%arg0: i32, %arg1: memref<384x16xf32, #tpu.memory_space<vmem>>, %arg2: memref<384x24xf32, #tpu.memory_space<vmem>>, %arg3: memref<384x32xf32, #tpu.memory_space<vmem>>, %arg4: memref<16x33xf32, #tpu.memory_space<vmem>>, %arg5: memref<24x33xf32, #tpu.memory_space<vmem>>, %arg6: memref<32x33xf32, #tpu.memory_space<vmem>>, %arg7: memref<1x33xf32, #tpu.memory_space<vmem>>, %arg8: memref<24x32xf32, #tpu.memory_space<vmem>>, %arg9: memref<384x32xf32, #tpu.memory_space<vmem>>, %arg10: memref<24x16xf32, #tpu.memory_space<vmem>>) attributes {dimension_semantics = [#tpu.dimension_semantics<parallel>], iteration_bounds = array<i64: 1>, scalar_prefetch = 0 : i64, scratch_operands = 0 : i64, tpu.core_type = #tpu.core_type<tc>, window_params = [{transform_indices = @transform_0, window_bounds = array<i64: 384, 16>}, {transform_indices = @transform_1, window_bounds = array<i64: 384, 24>}, {transform_indices = @transform_2, window_bounds = array<i64: 384, 32>}, {pipeline_mode = #tpu.pipeline_mode<synchronous>, transform_indices = @transform_3, window_bounds = array<i64: 16, 33>}, {pipeline_mode = #tpu.pipeline_mode<synchronous>, transform_indices = @transform_4, window_bounds = array<i64: 24, 33>}, {pipeline_mode = #tpu.pipeline_mode<synchronous>, transform_indices = @transform_5, window_bounds = array<i64: 32, 33>}, {pipeline_mode = #tpu.pipeline_mode<synchronous>, transform_indices = @transform_6, window_bounds = array<i64: 1, 33>}, {transform_indices = @transform_7, window_bounds = array<i64: 24, 32>}, {transform_indices = @transform_8, window_bounds = array<i64: 384, 32>}, {transform_indices = @transform_9, window_bounds = array<i64: 24, 16>}]} {
    %c0 = arith.constant 0 : index
    %c0_0 = arith.constant 0 : index
    %0 = vector.load %arg1[%c0, %c0_0] : memref<384x16xf32, #tpu.memory_space<vmem>>, vector<384x16xf32>
    %c0_1 = arith.constant 0 : index
    %c0_2 = arith.constant 0 : index
    %1 = vector.load %arg4[%c0_1, %c0_2] : memref<16x33xf32, #tpu.memory_space<vmem>>, vector<16x33xf32>
    %cst = arith.constant dense<0.000000e+00> : vector<384x33xf32>
    %2 = tpu.matmul %0, %1, %cst {dimension_numbers = #tpu.dot_dimension_numbers<[1], [0], [0], [1], [0, 0, 1, 1], [], []>} : vector<384x16xf32>, vector<16x33xf32>, vector<384x33xf32> -> vector<384x33xf32>
    %c0_3 = arith.constant 0 : index
    %c0_4 = arith.constant 0 : index
    %3 = vector.load %arg2[%c0_3, %c0_4] : memref<384x24xf32, #tpu.memory_space<vmem>>, vector<384x24xf32>
    %c0_5 = arith.constant 0 : index
    %c0_6 = arith.constant 0 : index
    %4 = vector.load %arg5[%c0_5, %c0_6] : memref<24x33xf32, #tpu.memory_space<vmem>>, vector<24x33xf32>
    %cst_7 = arith.constant dense<0.000000e+00> : vector<384x33xf32>
    %5 = tpu.matmul %3, %4, %cst_7 {dimension_numbers = #tpu.dot_dimension_numbers<[1], [0], [0], [1], [0, 0, 1, 1], [], []>} : vector<384x24xf32>, vector<24x33xf32>, vector<384x33xf32> -> vector<384x33xf32>
    %6 = arith.addf %2, %5 : vector<384x33xf32>
    %c0_8 = arith.constant 0 : index
    %c0_9 = arith.constant 0 : index
    %7 = vector.load %arg3[%c0_8, %c0_9] : memref<384x32xf32, #tpu.memory_space<vmem>>, vector<384x32xf32>
    %c0_10 = arith.constant 0 : index
    %c0_11 = arith.constant 0 : index
    %8 = vector.load %arg6[%c0_10, %c0_11] : memref<32x33xf32, #tpu.memory_space<vmem>>, vector<32x33xf32>
    %cst_12 = arith.constant dense<0.000000e+00> : vector<384x33xf32>
    %9 = tpu.matmul %7, %8, %cst_12 {dimension_numbers = #tpu.dot_dimension_numbers<[1], [0], [0], [1], [0, 0, 1, 1], [], []>} : vector<384x32xf32>, vector<32x33xf32>, vector<384x33xf32> -> vector<384x33xf32>
    %10 = arith.addf %6, %9 : vector<384x33xf32>
    %c0_13 = arith.constant 0 : index
    %c0_14 = arith.constant 0 : index
    %11 = vector.load %arg7[%c0_13, %c0_14] : memref<1x33xf32, #tpu.memory_space<vmem>>, vector<1x33xf32>
    %12 = vector.broadcast %11 : vector<1x33xf32> to vector<384x33xf32>
    %13 = arith.addf %10, %12 : vector<384x33xf32>
    %14 = vector.extract_strided_slice %13 {offsets = [0, 0], sizes = [384, 32], strides = [1, 1]} : vector<384x33xf32> to vector<384x32xf32>
    %c0_15 = arith.constant 0 : index
    %c0_16 = arith.constant 0 : index
    %15 = vector.load %arg9[%c0_15, %c0_16] : memref<384x32xf32, #tpu.memory_space<vmem>>, vector<384x32xf32>
    tpu.vector_store %arg9[%c0_15, %c0_16], %14 {strides = array<i32>} : memref<384x32xf32, #tpu.memory_space<vmem>>, vector<384x32xf32>,
    %16 = vector.extract_strided_slice %13 {offsets = [0, 32], sizes = [384, 1], strides = [1, 1]} : vector<384x33xf32> to vector<384x1xf32>
    %17 = vector.shape_cast %16 : vector<384x1xf32> to vector<24x16x1xf32>
    %cst_17 = arith.constant dense<0xFF800000> : vector<24x1xf32>
    %18 = vector.multi_reduction <maximumf>, %17, %cst_17 [1] : vector<24x16x1xf32> to vector<24x1xf32>
    %19 = vector.shape_cast %18 : vector<24x1xf32> to vector<24x1x1xf32>
    %20 = vector.broadcast %19 : vector<24x1x1xf32> to vector<24x16x1xf32>
    %21 = arith.subf %17, %20 : vector<24x16x1xf32>
    %22 = math.exp %21 : vector<24x16x1xf32>
    %cst_18 = arith.constant dense<0.000000e+00> : vector<24x1xf32>
    %23 = vector.multi_reduction <add>, %22, %cst_18 [1] : vector<24x16x1xf32> to vector<24x1xf32>
    %24 = vector.shape_cast %23 : vector<24x1xf32> to vector<24x1x1xf32>
    %25 = tpu.reciprocal %24 : vector<24x1x1xf32> -> vector<24x1x1xf32>
    %26 = vector.broadcast %25 : vector<24x1x1xf32> to vector<24x16x1xf32>
    %27 = arith.mulf %22, %26 : vector<24x16x1xf32>
    %28 = vector.shape_cast %14 : vector<384x32xf32> to vector<24x16x32xf32>
    %29 = vector.broadcast %27 : vector<24x16x1xf32> to vector<24x16x32xf32>
    %30 = arith.mulf %29, %28 : vector<24x16x32xf32>
    %cst_19 = arith.constant dense<0.000000e+00> : vector<24x32xf32>
    %31 = vector.multi_reduction <add>, %30, %cst_19 [1] : vector<24x16x32xf32> to vector<24x32xf32>
    %c0_20 = arith.constant 0 : index
    %c0_21 = arith.constant 0 : index
    %32 = vector.load %arg8[%c0_20, %c0_21] : memref<24x32xf32, #tpu.memory_space<vmem>>, vector<24x32xf32>
    tpu.vector_store %arg8[%c0_20, %c0_21], %31 {strides = array<i32>} : memref<24x32xf32, #tpu.memory_space<vmem>>, vector<24x32xf32>,
    %33 = vector.shape_cast %27 : vector<24x16x1xf32> to vector<24x16xf32>
    %c0_22 = arith.constant 0 : index
    %c0_23 = arith.constant 0 : index
    %34 = vector.load %arg10[%c0_22, %c0_23] : memref<24x16xf32, #tpu.memory_space<vmem>>, vector<24x16xf32>
    tpu.vector_store %arg10[%c0_22, %c0_23], %33 {strides = array<i32>} : memref<24x16xf32, #tpu.memory_space<vmem>>, vector<24x16xf32>,
    return
  }
  func.func @transform_0(%arg0: i32) -> (i32, i32) {
    %c0_i32 = arith.constant 0 : i32
    %c0_i32_0 = arith.constant 0 : i32
    return %arg0, %c0_i32 : i32, i32
  }
  func.func @transform_1(%arg0: i32) -> (i32, i32) {
    %c0_i32 = arith.constant 0 : i32
    %c0_i32_0 = arith.constant 0 : i32
    return %arg0, %c0_i32 : i32, i32
  }
  func.func @transform_2(%arg0: i32) -> (i32, i32) {
    %c0_i32 = arith.constant 0 : i32
    %c0_i32_0 = arith.constant 0 : i32
    return %arg0, %c0_i32 : i32, i32
  }
  func.func @transform_3(%arg0: i32) -> (i32, i32) {
    %c0_i32 = arith.constant 0 : i32
    %c0_i32_0 = arith.constant 0 : i32
    %c0_i32_1 = arith.constant 0 : i32
    return %c0_i32, %c0_i32_0 : i32, i32
  }
  func.func @transform_4(%arg0: i32) -> (i32, i32) {
    %c0_i32 = arith.constant 0 : i32
    %c0_i32_0 = arith.constant 0 : i32
    %c0_i32_1 = arith.constant 0 : i32
    return %c0_i32, %c0_i32_0 : i32, i32
  }
  func.func @transform_5(%arg0: i32) -> (i32, i32) {
    %c0_i32 = arith.constant 0 : i32
    %c0_i32_0 = arith.constant 0 : i32
    %c0_i32_1 = arith.constant 0 : i32
    return %c0_i32, %c0_i32_0 : i32, i32
  }
  func.func @transform_6(%arg0: i32) -> (i32, i32) {
    %c0_i32 = arith.constant 0 : i32
    %c0_i32_0 = arith.constant 0 : i32
    %c0_i32_1 = arith.constant 0 : i32
    return %c0_i32, %c0_i32_0 : i32, i32
  }
  func.func @transform_7(%arg0: i32) -> (i32, i32) {
    %c0_i32 = arith.constant 0 : i32
    %c0_i32_0 = arith.constant 0 : i32
    return %arg0, %c0_i32 : i32, i32
  }
  func.func @transform_8(%arg0: i32) -> (i32, i32) {
    %c0_i32 = arith.constant 0 : i32
    %c0_i32_0 = arith.constant 0 : i32
    return %arg0, %c0_i32 : i32, i32
  }
  func.func @transform_9(%arg0: i32) -> (i32, i32) {
    %c0_i32 = arith.constant 0 : i32
    %c0_i32_0 = arith.constant 0 : i32
    return %arg0, %c0_i32 : i32, i32
  }
}

</mosaic_0001>

<bundles_post_ra>
// kernel: tpu_custom_call.1
= control target key start
LH: loop header
LB: loop body
LE: loop exit
PB: predicated region body
PF: predicated region fallthrough
CT: control target
= control target key end

     0   :  { %vm581_vm0 = vcmask 130048   ;;  %vm131_vm1 = vcmask 195584   ;;  %s6115_s0 = inlined_call_operand.vmem [shape: f32[320,16], index: 0, kind: input, shape index: {}]   ;;  %s6116_s1 = inlined_call_operand.vmem [shape: f32[320,24], index: 1, kind: input, shape index: {}]   ;;  %s6117_s2 = inlined_call_operand.vmem [shape: f32[320,32], index: 2, kind: input, shape index: {}]   ;;  %s6118_s3 = inlined_call_operand.vmem [shape: f32[16,33], index: 3, kind: input, shape index: {}]   ;;  %s6119_s4 = inlined_call_operand.vmem [shape: f32[24,33], index: 4, kind: input, shape index: {}]   ;;  %s6120_s5 = inlined_call_operand.vmem [shape: f32[32,33], index: 5, kind: input, shape index: {}]   ;;  %s6121_s6 = inlined_call_operand.vmem [shape: f32[1,33], index: 6, kind: input, shape index: {}]   ;;  %s6122_s7 = inlined_call_operand.hbm [shape: f32[20,32], index: 7, kind: output, shape index: {0}]   ;;  %s6123_s8 = inlined_call_operand.vmem [shape: f32[320,32], index: 8, kind: output, shape index: {1}]   ;;  %s6124_s9 = inlined_call_operand.vmem [shape: f32[20,16], index: 9, kind: output, shape index: {2}]  }
   0x1   :  { %v130_v0 = vld [vmem:[%s6119_s4 + $0x10] sm:$0xff]  ;;  %v79_v1 = vld [vmem:[%s6118_s3 + $0x8] sm:$0xff]  ;;  %v78_v3 = vld [vmem:[%s6118_s3] sm:$0xff] }
   0x2   :  { %v129_v2 = vld [vmem:[%s6119_s4 + $0x8] sm:$0xff]  ;;  %3657 = vmatprep.subr.mxu0 %v130_v0  ;;  %3891 = vmatprep.subr.mxu1 %v79_v1  ;;  %v52_v4 = vld [vmem:[%s6115_s0 + $0xb0] sm:$0xff]  ;;  %v128_v5 = vld [vmem:[%s6119_s4] sm:$0xff] }
   0x3   :  { %3658 = vmatpush3.msra.mxu0 %v130_v0  ;;  %3893 = vmatpush3.msra.mxu1 %v79_v1  ;;  %v53_v6 = vld [vmem:[%s6115_s0 + $0xb8] sm:$0xff]  ;;  %v80_v8 = vld [vmem:[%s6116_s1] sm:$0xff]  ;;  %v81_v9 = vld [vmem:[%s6116_s1 + $0x8] sm:$0xff] }
   0x4   :  { %3659 = vmatprep.subr.mxu0 %v129_v2  ;;  %3892 = vmatprep.subr.mxu1 %v78_v3  ;;  %v1082_v7 = vld [vmem:[%s6120_s5 + $0x18] sm:$0xff]  ;;  %v54_v10 = vld [vmem:[%s6115_s0 + $0xc0] sm:$0xff]  ;;  %v55_v11 = vld [vmem:[%s6115_s0 + $0xc8] sm:$0xff] }
   0x5   :  { %3660 = vmatpush3.msra.mxu0 %v129_v2  ;;  %3894 = vmatpush3.msra.mxu1 %v78_v3  ;;  %v82_v12 = vld [vmem:[%s6116_s1 + $0x10] sm:$0xff]  ;;  %v83_v14 = vld [vmem:[%s6116_s1 + $0x18] sm:$0xff]  ;;  %v84_v16 = vld [vmem:[%s6116_s1 + $0x20] sm:$0xff] }
   0x6   :  { %3772 = vmatprep.mubr.msk.f32.mxu1 %vm581_vm0, %v52_v4  ;;  %3661 = vmatprep.subr.mxu0 %v128_v5  ;;  %v56_v13 = vld [vmem:[%s6115_s0 + $0xd0] sm:$0xff]  ;;  %v57_v17 = vld [vmem:[%s6115_s0 + $0xd8] sm:$0xff]  ;;  %v1080_v18 = vld [vmem:[%s6120_s5 + $0x8] sm:$0xff] }
   0x7   :  { %3773 = vmatmul.mubr.msk.f32.vlgmr.msra.gmra.mxu1 %vm581_vm0, %v53_v6  ;;  %3811 = vmatprep.subr.mxu1 %v1082_v7  ;;  %v1081_v15 = vld [vmem:[%s6120_s5 + $0x10] sm:$0xff]  ;;  %v58_v19 = vld [vmem:[%s6115_s0 + $0xe0] sm:$0xff]  ;;  %v85_v20 = vld [vmem:[%s6116_s1 + $0x28] sm:$0xff] }
   0x8   :  { %3662 = vmatpush3.msra.mxu0 %v128_v5  ;;  %3663 = vmatprep.mubr.msk.f32.mxu0 %vm131_vm1, %v80_v8  ;;  %v86_v21 = vld [vmem:[%s6116_s1 + $0x30] sm:$0xff]  ;;  %v59_v22 = vld [vmem:[%s6115_s0 + $0xe8] sm:$0xff]  ;;  %v1079_v24 = vld [vmem:[%s6120_s5] sm:$0xff] }
   0x9   :  { %3812 = vmatpush3.msra.mxu1 %v1082_v7  ;;  %3664 = vmatmul.mubr.msk.f32.vlgmr.msra.gmra.mxu0 %vm131_vm1, %v81_v9  ;;  %v60_v23 = vld [vmem:[%s6115_s0 + $0xf0] sm:$0xff]  ;;  %v87_v25 = vld [vmem:[%s6116_s1 + $0x38] sm:$0xff]  ;;  %v88_v26 = vld [vmem:[%s6116_s1 + $0x40] sm:$0xff] }
   0xa   :  { %3735 = vmatprep.subr.mxu0 %v79_v1  ;;  %3775 = vmatprep.mubr.msk.f32.mxu1 %vm581_vm0, %v54_v10  ;;  %v61_v27 = vld [vmem:[%s6115_s0 + $0xf8] sm:$0xff]  ;;  %v62_v28 = vld [vmem:[%s6115_s0 + $0x100] sm:$0xff]  ;;  %v89_v29 = vld [vmem:[%s6116_s1 + $0x48] sm:$0xff] }
   0xb   :  { %3736 = vmatpush3.msra.mxu0 %v79_v1  ;;  %3776 = vmatmul.mubr.msk.f32.gmra.mxu1 %vm581_vm0, %v55_v11  ;;  %v90_v30 = vld [vmem:[%s6116_s1 + $0x50] sm:$0xff]  ;;  %v63_v31 = vld [vmem:[%s6115_s0 + $0x108] sm:$0xff]  ;;  %v91_v33 = vld [vmem:[%s6116_s1 + $0x58] sm:$0xff] }
   0xc   :  { %3666 = vmatprep.mubr.msk.f32.mxu0 %vm131_vm1, %v82_v12  ;;  %3778 = vmatprep.mubr.msk.f32.mxu1 %vm581_vm0, %v56_v13  ;;  %v64_v32 = vld [vmem:[%s6115_s0 + $0x110] sm:$0xff]  ;;  %v92_v34 = vld [vmem:[%s6116_s1 + $0x60] sm:$0xff]  ;;  %v65_v35 = vld [vmem:[%s6115_s0 + $0x118] sm:$0xff] }
   0xd   :  { %3667 = vmatmul.mubr.msk.f32.gmra.mxu0 %vm131_vm1, %v83_v14  ;;  %3813 = vmatprep.subr.mxu1 %v1081_v15  ;;  %v66_v36 = vld [vmem:[%s6115_s0 + $0x120] sm:$0xff]  ;;  %v93_v37 = vld [vmem:[%s6116_s1 + $0x68] sm:$0xff]  ;;  %v94_v38 = vld [vmem:[%s6116_s1 + $0x70] sm:$0xff] }
   0xe   :  { %3669 = vmatprep.mubr.msk.f32.mxu0 %vm131_vm1, %v84_v16  ;;  %3814 = vmatpush3.msra.mxu1 %v1081_v15  ;;  %v67_v39 = vld [vmem:[%s6115_s0 + $0x128] sm:$0xff]  ;;  %v68_v40 = vld [vmem:[%s6115_s0 + $0x130] sm:$0xff]  ;;  %v95_v41 = vld [vmem:[%s6116_s1 + $0x78] sm:$0xff] }
   0xf   :  { %3779 = vmatmul.mubr.msk.f32.gmra.mxu1 %vm581_vm0, %v57_v17  ;;  %3815 = vmatprep.subr.mxu1 %v1080_v18  ;;  %v96_v42 = vld [vmem:[%s6116_s1 + $0x80] sm:$0xff]  ;;  %v69_v43 = vld [vmem:[%s6115_s0 + $0x138] sm:$0xff]  ;;  %v97_v45 = vld [vmem:[%s6116_s1 + $0x88] sm:$0xff] }
  0x10   :  { %3781 = vmatprep.mubr.msk.f32.mxu1 %vm581_vm0, %v58_v19  ;;  %3816 = vmatpush3.msra.mxu1 %v1080_v18  ;;  %v70_v44 = vld [vmem:[%s6115_s0 + $0x140] sm:$0xff]  ;;  %v98_v46 = vld [vmem:[%s6116_s1 + $0x90] sm:$0xff]  ;;  %v71_v47 = vld [vmem:[%s6115_s0 + $0x148] sm:$0xff] }
  0x11   :  { %3670 = vmatmul.mubr.msk.f32.gmra.mxu0 %vm131_vm1, %v85_v20  ;;  %3737 = vmatprep.subr.mxu0 %v78_v3  ;;  %v72_v48 = vld [vmem:[%s6115_s0 + $0x150] sm:$0xff]  ;;  %v99_v49 = vld [vmem:[%s6116_s1 + $0x98] sm:$0xff]  ;;  %v100_v50 = vld [vmem:[%s6116_s1 + $0xa0] sm:$0xff] }
  0x12   :  { %3672 = vmatprep.mubr.msk.f32.mxu0 %vm131_vm1, %v86_v21  ;;  %3817 = vmatprep.subr.mxu1 %v1079_v24  ;;  %v73_v51 = vld [vmem:[%s6115_s0 + $0x158] sm:$0xff]  ;;  %v74_v52 = vld [vmem:[%s6115_s0 + $0x160] sm:$0xff]  ;;  %v101_v53 = vld [vmem:[%s6116_s1 + $0xa8] sm:$0xff] }
  0x13   :  { %3782 = vmatmul.mubr.msk.f32.gmra.mxu1 %vm581_vm0, %v59_v22  ;;  %3738 = vmatpush3.msra.mxu0 %v78_v3  ;;  %v102_v54 = vld [vmem:[%s6116_s1 + $0xb0] sm:$0xff]  ;;  %v75_v55 = vld [vmem:[%s6115_s0 + $0x168] sm:$0xff]  ;;  %v103_v57 = vld [vmem:[%s6116_s1 + $0xb8] sm:$0xff] }
  0x14   :  { %3784 = vmatprep.mubr.msk.f32.mxu1 %vm581_vm0, %v60_v23  ;;  %3818 = vmatpush3.msra.mxu1 %v1079_v24  ;;  %v76_v56 = vld [vmem:[%s6115_s0 + $0x170] sm:$0xff]  ;;  %v104_v58 = vld [vmem:[%s6116_s1 + $0xc0] sm:$0xff]  ;;  %v77_v59 = vld [vmem:[%s6115_s0 + $0x178] sm:$0xff] }
  0x15   :  { %3673 = vmatmul.mubr.msk.f32.gmra.mxu0 %vm131_vm1, %v87_v25 }
  0x16   :  { %3675 = vmatprep.mubr.msk.f32.mxu0 %vm131_vm1, %v88_v26 }
  0x17   :  { %3785 = vmatmul.mubr.msk.f32.gmra.mxu1 %vm581_vm0, %v61_v27 }
  0x18   :  { %3787 = vmatprep.mubr.msk.f32.mxu1 %vm581_vm0, %v62_v28 }
  0x19   :  { %3676 = vmatmul.mubr.msk.f32.gmra.mxu0 %vm131_vm1, %v89_v29 }
  0x1a   :  { %3678 = vmatprep.mubr.msk.f32.mxu0 %vm131_vm1, %v90_v30 }
  0x1b   :  { %3788 = vmatmul.mubr.msk.f32.gmra.mxu1 %vm581_vm0, %v63_v31 }
  0x1c   :  { %3790 = vmatprep.mubr.msk.f32.mxu1 %vm581_vm0, %v64_v32 }
  0x1d   :  { %3679 = vmatmul.mubr.msk.f32.gmra.mxu0 %vm131_vm1, %v91_v33 }
  0x1e   :  { %3681 = vmatprep.mubr.msk.f32.mxu0 %vm131_vm1, %v92_v34 }
  0x1f   :  { %3791 = vmatmul.mubr.msk.f32.gmra.mxu1 %vm581_vm0, %v65_v35 }
  0x20   :  { %3793 = vmatprep.mubr.msk.f32.mxu1 %vm581_vm0, %v66_v36 }
  0x21   :  { %3682 = vmatmul.mubr.msk.f32.gmra.mxu0 %vm131_vm1, %v93_v37 }
  0x22   :  { %3684 = vmatprep.mubr.msk.f32.mxu0 %vm131_vm1, %v94_v38 }
  0x23   :  { %3794 = vmatmul.mubr.msk.f32.gmra.mxu1 %vm581_vm0, %v67_v39 }
  0x24   :  { %3796 = vmatprep.mubr.msk.f32.mxu1 %vm581_vm0, %v68_v40 }
  0x25   :  { %3685 = vmatmul.mubr.msk.f32.gmra.mxu0 %vm131_vm1, %v95_v41 }
  0x26   :  { %3687 = vmatprep.mubr.msk.f32.mxu0 %vm131_vm1, %v96_v42 }
  0x27   :  { %3797 = vmatmul.mubr.msk.f32.gmra.mxu1 %vm581_vm0, %v69_v43 }
  0x28   :  { %3799 = vmatprep.mubr.msk.f32.mxu1 %vm581_vm0, %v70_v44 }
  0x29   :  { %3688 = vmatmul.mubr.msk.f32.gmra.mxu0 %vm131_vm1, %v97_v45 }
  0x2a   :  { %3690 = vmatprep.mubr.msk.f32.mxu0 %vm131_vm1, %v98_v46 }
  0x2b   :  { %3800 = vmatmul.mubr.msk.f32.gmra.mxu1 %vm581_vm0, %v71_v47 }
  0x2c   :  { %3802 = vmatprep.mubr.msk.f32.mxu1 %vm581_vm0, %v72_v48 }
  0x2d   :  { %3691 = vmatmul.mubr.msk.f32.gmra.mxu0 %vm131_vm1, %v99_v49 }
  0x2e   :  { %3693 = vmatprep.mubr.msk.f32.mxu0 %vm131_vm1, %v100_v50 }
  0x2f   :  { %3803 = vmatmul.mubr.msk.f32.gmra.mxu1 %vm581_vm0, %v73_v51 }
  0x30   :  { %3805 = vmatprep.mubr.msk.f32.mxu1 %vm581_vm0, %v74_v52 }
  0x31   :  { %3694 = vmatmul.mubr.msk.f32.gmra.mxu0 %vm131_vm1, %v101_v53 }
  0x32   :  { %3696 = vmatprep.mubr.msk.f32.mxu0 %vm131_vm1, %v102_v54 }
  0x33   :  { %3806 = vmatmul.mubr.msk.f32.gmra.mxu1 %vm581_vm0, %v75_v55 }
  0x34   :  { %3808 = vmatprep.mubr.msk.f32.mxu1 %vm581_vm0, %v76_v56 }
  0x35   :  { %15 = vsyncpa [#allocation3], 0  ;;  %3697 = vmatmul.mubr.msk.f32.gmra.mxu0 %vm131_vm1, %v103_v57  ;;  %v1031_v60 = vld [vmem:[%s6117_s2] sm:$0xff]  ;;  %vm1083_vm2 = vcmask 261120   ;;  %v105_v61 = vld [vmem:[%s6116_s1 + $0xc8] sm:$0xff]  ;;  %vm1684_vm3 = vcmask 269568  }
  0x36   :  { %3699 = vmatprep.mubr.msk.f32.mxu0 %vm131_vm1, %v104_v58  ;;  %v106_v62 = vld [vmem:[%s6116_s1 + $0xd0] sm:$0xff]  ;;  %v1032_v63 = vld [vmem:[%s6117_s2 + $0x8] sm:$0xff]  ;;  %v107_v1 = vld [vmem:[%s6116_s1 + $0xd8] sm:$0xff]  ;;  %vm2906_vm4 = vcmask 130112   ;;  %vm2861_vm5 = vcmask 1041409   ;;  %vm2863_vm6 = vcmask 1042434  }
  0x37   :  { %3809 = vmatmul.mubr.msk.f32.gmra.mxu1 %vm581_vm0, %v77_v59  ;;  %v1033_v0 = vld [vmem:[%s6117_s2 + $0x10] sm:$0xff]  ;;  %v108_v2 = vld [vmem:[%s6116_s1 + $0xe0] sm:$0xff]  ;;  %v1034_v3 = vld [vmem:[%s6117_s2 + $0x18] sm:$0xff]  ;;  %vm2865_vm7 = vcmask 1043459   ;;  %vm2867_vm8 = vcmask 1044484   ;;  %vm2869_vm9 = vcmask 1045509  }
  0x38   :  { %3819 = vmatprep.mubr.msk.f32.mxu1 %vm1083_vm2, %v1031_v60  ;;  %v1035_v4 = vld [vmem:[%s6117_s2 + $0x20] sm:$0xff]  ;;  %v109_v5 = vld [vmem:[%s6116_s1 + $0xe8] sm:$0xff]  ;;  %v110_v6 = vld [vmem:[%s6116_s1 + $0xf0] sm:$0xff]  ;;  %vm2871_vm10 = vcmask 1046534   ;;  %vm2873_vm11 = vcmask 1047559  }
  0x39   :  { %3700 = vmatmul.mubr.msk.f32.gmra.mxu0 %vm131_vm1, %v105_v61  ;;  %v1036_v7 = vld [vmem:[%s6117_s2 + $0x28] sm:$0xff]  ;;  %v1037_v8 = vld [vmem:[%s6117_s2 + $0x30] sm:$0xff]  ;;  %v111_v9 = vld [vmem:[%s6116_s1 + $0xf8] sm:$0xff] }
  0x3a   :  { %3702 = vmatprep.mubr.msk.f32.mxu0 %vm131_vm1, %v106_v62  ;;  %v112_v10 = vld [vmem:[%s6116_s1 + $0x100] sm:$0xff]  ;;  %v1038_v11 = vld [vmem:[%s6117_s2 + $0x38] sm:$0xff]  ;;  %v113_v13 = vld [vmem:[%s6116_s1 + $0x108] sm:$0xff] }
  0x3b   :  { %3820 = vmatmul.mubr.msk.f32.vlgmr.msra.gmra.mxu1 %vm1083_vm2, %v1032_v63  ;;  %v1039_v12 = vld [vmem:[%s6117_s2 + $0x40] sm:$0xff]  ;;  %v114_v14 = vld [vmem:[%s6116_s1 + $0x110] sm:$0xff]  ;;  %v1040_v15 = vld [vmem:[%s6117_s2 + $0x48] sm:$0xff] }
  0x3c   :  { %3822 = vmatprep.mubr.msk.f32.mxu1 %vm1083_vm2, %v1033_v0  ;;  %v1041_v16 = vld [vmem:[%s6117_s2 + $0x50] sm:$0xff]  ;;  %v115_v17 = vld [vmem:[%s6116_s1 + $0x118] sm:$0xff]  ;;  %v116_v18 = vld [vmem:[%s6116_s1 + $0x120] sm:$0xff] }
  0x3d   :  { %3703 = vmatmul.mubr.msk.f32.gmra.mxu0 %vm131_vm1, %v107_v1  ;;  %v1042_v19 = vld [vmem:[%s6117_s2 + $0x58] sm:$0xff]  ;;  %v1043_v20 = vld [vmem:[%s6117_s2 + $0x60] sm:$0xff]  ;;  %v117_v21 = vld [vmem:[%s6116_s1 + $0x128] sm:$0xff] }
  0x3e   :  { %3705 = vmatprep.mubr.msk.f32.mxu0 %vm131_vm1, %v108_v2  ;;  %v118_v22 = vld [vmem:[%s6116_s1 + $0x130] sm:$0xff]  ;;  %v1044_v23 = vld [vmem:[%s6117_s2 + $0x68] sm:$0xff]  ;;  %v119_v25 = vld [vmem:[%s6116_s1 + $0x138] sm:$0xff] }
  0x3f   :  { %3823 = vmatmul.mubr.msk.f32.gmra.mxu1 %vm1083_vm2, %v1034_v3  ;;  %v1045_v24 = vld [vmem:[%s6117_s2 + $0x70] sm:$0xff]  ;;  %v120_v26 = vld [vmem:[%s6116_s1 + $0x140] sm:$0xff]  ;;  %v1046_v27 = vld [vmem:[%s6117_s2 + $0x78] sm:$0xff] }
  0x40   :  { %3825 = vmatprep.mubr.msk.f32.mxu1 %vm1083_vm2, %v1035_v4  ;;  %v1047_v28 = vld [vmem:[%s6117_s2 + $0x80] sm:$0xff]  ;;  %v121_v29 = vld [vmem:[%s6116_s1 + $0x148] sm:$0xff]  ;;  %v122_v30 = vld [vmem:[%s6116_s1 + $0x150] sm:$0xff] }
  0x41   :  { %3706 = vmatmul.mubr.msk.f32.gmra.mxu0 %vm131_vm1, %v109_v5  ;;  %v1048_v31 = vld [vmem:[%s6117_s2 + $0x88] sm:$0xff]  ;;  %v1049_v32 = vld [vmem:[%s6117_s2 + $0x90] sm:$0xff]  ;;  %v123_v33 = vld [vmem:[%s6116_s1 + $0x158] sm:$0xff] }
  0x42   :  { %3708 = vmatprep.mubr.msk.f32.mxu0 %vm131_vm1, %v110_v6  ;;  %v124_v34 = vld [vmem:[%s6116_s1 + $0x160] sm:$0xff]  ;;  %v1050_v35 = vld [vmem:[%s6117_s2 + $0x98] sm:$0xff]  ;;  %v125_v37 = vld [vmem:[%s6116_s1 + $0x168] sm:$0xff] }
  0x43   :  { %3826 = vmatmul.mubr.msk.f32.gmra.mxu1 %vm1083_vm2, %v1036_v7  ;;  %v1051_v36 = vld [vmem:[%s6117_s2 + $0xa0] sm:$0xff]  ;;  %v126_v38 = vld [vmem:[%s6116_s1 + $0x170] sm:$0xff]  ;;  %v1052_v39 = vld [vmem:[%s6117_s2 + $0xa8] sm:$0xff] }
  0x44   :  { %3828 = vmatprep.mubr.msk.f32.mxu1 %vm1083_vm2, %v1037_v8  ;;  %v1053_v40 = vld [vmem:[%s6117_s2 + $0xb0] sm:$0xff]  ;;  %v127_v41 = vld [vmem:[%s6116_s1 + $0x178] sm:$0xff]  ;;  %v30_v42 = vld [vmem:[%s6115_s0] sm:$0xff] }
  0x45   :  { %3709 = vmatmul.mubr.msk.f32.gmra.mxu0 %vm131_vm1, %v111_v9  ;;  %v1054_v43 = vld [vmem:[%s6117_s2 + $0xb8] sm:$0xff]  ;;  %v1055_v44 = vld [vmem:[%s6117_s2 + $0xc0] sm:$0xff]  ;;  %v31_v45 = vld [vmem:[%s6115_s0 + $0x8] sm:$0xff] }
  0x46   :  { %3711 = vmatprep.mubr.msk.f32.mxu0 %vm131_vm1, %v112_v10  ;;  %v32_v46 = vld [vmem:[%s6115_s0 + $0x10] sm:$0xff]  ;;  %v1056_v47 = vld [vmem:[%s6117_s2 + $0xc8] sm:$0xff]  ;;  %v33_v49 = vld [vmem:[%s6115_s0 + $0x18] sm:$0xff] }
  0x47   :  { %3829 = vmatmul.mubr.msk.f32.gmra.mxu1 %vm1083_vm2, %v1038_v11  ;;  %v1057_v48 = vld [vmem:[%s6117_s2 + $0xd0] sm:$0xff]  ;;  %v34_v50 = vld [vmem:[%s6115_s0 + $0x20] sm:$0xff]  ;;  %v1058_v51 = vld [vmem:[%s6117_s2 + $0xd8] sm:$0xff] }
  0x48   :  { %3831 = vmatprep.mubr.msk.f32.mxu1 %vm1083_vm2, %v1039_v12  ;;  %v1059_v52 = vld [vmem:[%s6117_s2 + $0xe0] sm:$0xff]  ;;  %v35_v53 = vld [vmem:[%s6115_s0 + $0x28] sm:$0xff]  ;;  %v36_v54 = vld [vmem:[%s6115_s0 + $0x30] sm:$0xff] }
  0x49   :  { %3712 = vmatmul.mubr.msk.f32.gmra.mxu0 %vm131_vm1, %v113_v13  ;;  %v1060_v55 = vld [vmem:[%s6117_s2 + $0xe8] sm:$0xff]  ;;  %v1061_v56 = vld [vmem:[%s6117_s2 + $0xf0] sm:$0xff]  ;;  %v37_v57 = vld [vmem:[%s6115_s0 + $0x38] sm:$0xff] }
  0x4a   :  { %3714 = vmatprep.mubr.msk.f32.mxu0 %vm131_vm1, %v114_v14  ;;  %v38_v58 = vld [vmem:[%s6115_s0 + $0x40] sm:$0xff]  ;;  %v1062_v59 = vld [vmem:[%s6117_s2 + $0xf8] sm:$0xff]  ;;  %v39_v61 = vld [vmem:[%s6115_s0 + $0x48] sm:$0xff] }
  0x4b   :  { %3832 = vmatmul.mubr.msk.f32.gmra.mxu1 %vm1083_vm2, %v1040_v15  ;;  %v1063_v60 = vld [vmem:[%s6117_s2 + $0x100] sm:$0xff]  ;;  %v40_v62 = vld [vmem:[%s6115_s0 + $0x50] sm:$0xff]  ;;  %v1064_v63 = vld [vmem:[%s6117_s2 + $0x108] sm:$0xff] }
  0x4c   :  { %3834 = vmatprep.mubr.msk.f32.mxu1 %vm1083_vm2, %v1041_v16  ;;  %v1065_v0 = vld [vmem:[%s6117_s2 + $0x110] sm:$0xff]  ;;  %v41_v1 = vld [vmem:[%s6115_s0 + $0x58] sm:$0xff]  ;;  %v42_v2 = vld [vmem:[%s6115_s0 + $0x60] sm:$0xff] }
  0x4d   :  { %3715 = vmatmul.mubr.msk.f32.gmra.mxu0 %vm131_vm1, %v115_v17  ;;  %v1066_v3 = vld [vmem:[%s6117_s2 + $0x118] sm:$0xff]  ;;  %v1067_v4 = vld [vmem:[%s6117_s2 + $0x120] sm:$0xff]  ;;  %v43_v5 = vld [vmem:[%s6115_s0 + $0x68] sm:$0xff] }
  0x4e   :  { %3717 = vmatprep.mubr.msk.f32.mxu0 %vm131_vm1, %v116_v18  ;;  %v44_v6 = vld [vmem:[%s6115_s0 + $0x70] sm:$0xff]  ;;  %v1068_v7 = vld [vmem:[%s6117_s2 + $0x128] sm:$0xff]  ;;  %v45_v9 = vld [vmem:[%s6115_s0 + $0x78] sm:$0xff] }
  0x4f   :  { %3835 = vmatmul.mubr.msk.f32.gmra.mxu1 %vm1083_vm2, %v1042_v19  ;;  %v1069_v8 = vld [vmem:[%s6117_s2 + $0x130] sm:$0xff]  ;;  %v46_v10 = vld [vmem:[%s6115_s0 + $0x80] sm:$0xff]  ;;  %v1070_v11 = vld [vmem:[%s6117_s2 + $0x138] sm:$0xff] }
  0x50   :  { %3837 = vmatprep.mubr.msk.f32.mxu1 %vm1083_vm2, %v1043_v20  ;;  %v1071_v12 = vld [vmem:[%s6117_s2 + $0x140] sm:$0xff]  ;;  %v47_v13 = vld [vmem:[%s6115_s0 + $0x88] sm:$0xff]  ;;  %v48_v14 = vld [vmem:[%s6115_s0 + $0x90] sm:$0xff] }
  0x51   :  { %3718 = vmatmul.mubr.msk.f32.gmra.mxu0 %vm131_vm1, %v117_v21  ;;  %v1072_v15 = vld [vmem:[%s6117_s2 + $0x148] sm:$0xff]  ;;  %v1073_v16 = vld [vmem:[%s6117_s2 + $0x150] sm:$0xff]  ;;  %v49_v17 = vld [vmem:[%s6115_s0 + $0x98] sm:$0xff] }
  0x52   :  { %3720 = vmatprep.mubr.msk.f32.mxu0 %vm131_vm1, %v118_v22  ;;  %v50_v18 = vld [vmem:[%s6115_s0 + $0xa0] sm:$0xff]  ;;  %v1074_v19 = vld [vmem:[%s6117_s2 + $0x158] sm:$0xff]  ;;  %v51_v21 = vld [vmem:[%s6115_s0 + $0xa8] sm:$0xff] }
  0x53   :  { %3838 = vmatmul.mubr.msk.f32.gmra.mxu1 %vm1083_vm2, %v1044_v23  ;;  %v1075_v20 = vld [vmem:[%s6117_s2 + $0x160] sm:$0xff]  ;;  %v1076_v22 = vld [vmem:[%s6117_s2 + $0x168] sm:$0xff]  ;;  %v1077_v23 = vld [vmem:[%s6117_s2 + $0x170] sm:$0xff] }
  0x54   :  { %3840 = vmatprep.mubr.msk.f32.mxu1 %vm1083_vm2, %v1045_v24  ;;  %v1078_v24 = vld [vmem:[%s6117_s2 + $0x178] sm:$0xff] }
  0x55   :  { %3721 = vmatmul.mubr.msk.f32.gmra.mxu0 %vm131_vm1, %v119_v25 }
  0x56   :  { %3723 = vmatprep.mubr.msk.f32.mxu0 %vm131_vm1, %v120_v26 }
  0x57   :  { %3841 = vmatmul.mubr.msk.f32.gmra.mxu1 %vm1083_vm2, %v1046_v27 }
  0x58   :  { %3843 = vmatprep.mubr.msk.f32.mxu1 %vm1083_vm2, %v1047_v28 }
  0x59   :  { %3724 = vmatmul.mubr.msk.f32.gmra.mxu0 %vm131_vm1, %v121_v29 }
  0x5a   :  { %3726 = vmatprep.mubr.msk.f32.mxu0 %vm131_vm1, %v122_v30 }
  0x5b   :  { %3844 = vmatmul.mubr.msk.f32.gmra.mxu1 %vm1083_vm2, %v1048_v31 }
  0x5c   :  { %3846 = vmatprep.mubr.msk.f32.mxu1 %vm1083_vm2, %v1049_v32 }
  0x5d   :  { %3727 = vmatmul.mubr.msk.f32.gmra.mxu0 %vm131_vm1, %v123_v33 }
  0x5e   :  { %3729 = vmatprep.mubr.msk.f32.mxu0 %vm131_vm1, %v124_v34 }
  0x5f   :  { %3847 = vmatmul.mubr.msk.f32.gmra.mxu1 %vm1083_vm2, %v1050_v35 }
  0x60   :  { %3849 = vmatprep.mubr.msk.f32.mxu1 %vm1083_vm2, %v1051_v36 }
  0x61   :  { %3730 = vmatmul.mubr.msk.f32.gmra.mxu0 %vm131_vm1, %v125_v37 }
  0x62   :  { %3732 = vmatprep.mubr.msk.f32.mxu0 %vm131_vm1, %v126_v38 }
  0x63   :  { %3850 = vmatmul.mubr.msk.f32.gmra.mxu1 %vm1083_vm2, %v1052_v39 }
  0x64   :  { %3852 = vmatprep.mubr.msk.f32.mxu1 %vm1083_vm2, %v1053_v40 }
  0x65   :  { %3733 = vmatmul.mubr.msk.f32.gmra.mxu0 %vm131_vm1, %v127_v41 }
  0x66   :  { %3739 = vmatprep.mubr.msk.f32.mxu0 %vm581_vm0, %v30_v42 }
  0x67   :  { %3853 = vmatmul.mubr.msk.f32.gmra.mxu1 %vm1083_vm2, %v1054_v43 }
  0x68   :  { %3855 = vmatprep.mubr.msk.f32.mxu1 %vm1083_vm2, %v1055_v44 }
  0x69   :  { %3740 = vmatmul.mubr.msk.f32.vlgmr.msra.gmra.mxu0 %vm581_vm0, %v31_v45 }
  0x6a   :  { %3742 = vmatprep.mubr.msk.f32.mxu0 %vm581_vm0, %v32_v46 }
  0x6b   :  { %3856 = vmatmul.mubr.msk.f32.gmra.mxu1 %vm1083_vm2, %v1056_v47 }
  0x6c   :  { %3858 = vmatprep.mubr.msk.f32.mxu1 %vm1083_vm2, %v1057_v48 }
  0x6d   :  { %3743 = vmatmul.mubr.msk.f32.gmra.mxu0 %vm581_vm0, %v33_v49 }
  0x6e   :  { %3745 = vmatprep.mubr.msk.f32.mxu0 %vm581_vm0, %v34_v50 }
  0x6f   :  { %3859 = vmatmul.mubr.msk.f32.gmra.mxu1 %vm1083_vm2, %v1058_v51 }
  0x70   :  { %3861 = vmatprep.mubr.msk.f32.mxu1 %vm1083_vm2, %v1059_v52 }
  0x71   :  { %3746 = vmatmul.mubr.msk.f32.gmra.mxu0 %vm581_vm0, %v35_v53 }
  0x72   :  { %3748 = vmatprep.mubr.msk.f32.mxu0 %vm581_vm0, %v36_v54 }
  0x73   :  { %3862 = vmatmul.mubr.msk.f32.gmra.mxu1 %vm1083_vm2, %v1060_v55 }
  0x74   :  { %3864 = vmatprep.mubr.msk.f32.mxu1 %vm1083_vm2, %v1061_v56 }
  0x75   :  { %3749 = vmatmul.mubr.msk.f32.gmra.mxu0 %vm581_vm0, %v37_v57 }
  0x76   :  { %3751 = vmatprep.mubr.msk.f32.mxu0 %vm581_vm0, %v38_v58 }
  0x77   :  { %3865 = vmatmul.mubr.msk.f32.gmra.mxu1 %vm1083_vm2, %v1062_v59 }
  0x78   :  { %3867 = vmatprep.mubr.msk.f32.mxu1 %vm1083_vm2, %v1063_v60 }
  0x79   :  { %3752 = vmatmul.mubr.msk.f32.gmra.mxu0 %vm581_vm0, %v39_v61 }
  0x7a   :  { %3754 = vmatprep.mubr.msk.f32.mxu0 %vm581_vm0, %v40_v62 }
  0x7b   :  { %3868 = vmatmul.mubr.msk.f32.gmra.mxu1 %vm1083_vm2, %v1064_v63 }
  0x7c   :  { %3870 = vmatprep.mubr.msk.f32.mxu1 %vm1083_vm2, %v1065_v0 }
  0x7d   :  { %3755 = vmatmul.mubr.msk.f32.gmra.mxu0 %vm581_vm0, %v41_v1 }
  0x7e   :  { %3757 = vmatprep.mubr.msk.f32.mxu0 %vm581_vm0, %v42_v2 }
  0x7f   :  { %3871 = vmatmul.mubr.msk.f32.gmra.mxu1 %vm1083_vm2, %v1066_v3 }
  0x80   :  { %3873 = vmatprep.mubr.msk.f32.mxu1 %vm1083_vm2, %v1067_v4 }
  0x81   :  { %3758 = vmatmul.mubr.msk.f32.gmra.mxu0 %vm581_vm0, %v43_v5 }
  0x82   :  { %3760 = vmatprep.mubr.msk.f32.mxu0 %vm581_vm0, %v44_v6 }
  0x83   :  { %3874 = vmatmul.mubr.msk.f32.gmra.mxu1 %vm1083_vm2, %v1068_v7 }
  0x84   :  { %3876 = vmatprep.mubr.msk.f32.mxu1 %vm1083_vm2, %v1069_v8 }
  0x85   :  { %3761 = vmatmul.mubr.msk.f32.gmra.mxu0 %vm581_vm0, %v45_v9 }
  0x86   :  { %3763 = vmatprep.mubr.msk.f32.mxu0 %vm581_vm0, %v46_v10 }
  0x87   :  { %3877 = vmatmul.mubr.msk.f32.gmra.mxu1 %vm1083_vm2, %v1070_v11 }
  0x88   :  { %3879 = vmatprep.mubr.msk.f32.mxu1 %vm1083_vm2, %v1071_v12 }
  0x89   :  { %3764 = vmatmul.mubr.msk.f32.gmra.mxu0 %vm581_vm0, %v47_v13 }
  0x8a   :  { %3766 = vmatprep.mubr.msk.f32.mxu0 %vm581_vm0, %v48_v14 }
  0x8b   :  { %3880 = vmatmul.mubr.msk.f32.gmra.mxu1 %vm1083_vm2, %v1072_v15 }
  0x8c   :  { %3882 = vmatprep.mubr.msk.f32.mxu1 %vm1083_vm2, %v1073_v16 }
  0x8d   :  { %3767 = vmatmul.mubr.msk.f32.gmra.mxu0 %vm581_vm0, %v49_v17 }
  0x8e   :  { %3769 = vmatprep.mubr.msk.f32.mxu0 %vm581_vm0, %v50_v18 }
  0x8f   :  { %3883 = vmatmul.mubr.msk.f32.gmra.mxu1 %vm1083_vm2, %v1074_v19 }
  0x90   :  { %3885 = vmatprep.mubr.msk.f32.mxu1 %vm1083_vm2, %v1075_v20 }
  0x91   :  { %3770 = vmatmul.mubr.msk.f32.gmra.mxu0 %vm581_vm0, %v51_v21 }
  0x93   :  { %3886 = vmatmul.mubr.msk.f32.gmra.mxu1 %vm1083_vm2, %v1076_v22 }
  0x94   :  { %3888 = vmatprep.mubr.msk.f32.mxu1 %vm1083_vm2, %v1077_v23 }
  0x97   :  { %3889 = vmatmul.mubr.msk.f32.gmra.mxu1 %vm1083_vm2, %v1078_v24 }
  0xc7   :  { %v4725_v25 = vpop.f32.mrf.mxu1 }
  0xc9   :  { %v4727_v26 = vpop.f32.mrf.mxu0  ;;  %v4729_v27 = vpop.f32.mrf.mxu1 }
  0xcb   :  { %v4731_v28 = vpop.f32.mrf.mxu0  ;;  %v4733_v29 = vpop.f32.mrf.mxu1 }
  0xcd   :  { %v4735_v30 = vpop.f32.mrf.mxu0  ;;  %v4737_v31 = vpop.f32.mrf.mxu1 }
  0xcf   :  { %v4739_v32 = vpop.f32.mrf.mxu0  ;;  %v4741_v33 = vpop.f32.mrf.mxu1 }
  0xd1   :  { %v4743_v34 = vpop.f32.mrf.mxu0  ;;  %v4745_v35 = vpop.f32.mrf.mxu1 }
  0xd3   :  { %v4747_v36 = vpop.f32.mrf.mxu0  ;;  %v4749_v37 = vpop.f32.mrf.mxu1 }
  0xd5   :  { %v4751_v38 = vpop.f32.mrf.mxu0  ;;  %v4753_v39 = vpop.f32.mrf.mxu1 }
  0xd7   :  { %v4755_v40 = vpop.f32.mrf.mxu0  ;;  %v3786_v41 = vpop.f32.mrf.mxu1 }
  0xd9   :  { %v4757_v42 = vpop.f32.mrf.mxu0  ;;  %v942_v43 = vpop.f32.mrf.mxu1 }
  0xdb   :  { %v4759_v44 = vpop.f32.mrf.mxu0  ;;  %v3789_v45 = vpop.f32.mrf.mxu1 }
  0xdc   :  { %6188 = vst [vmem:[#allocation6_spill] sm:$0xff] %v4759_v44 }
  0xdd   :  { %v4761_v46 = vpop.f32.mrf.mxu0  ;;  %v952_v47 = vpop.f32.mrf.mxu1 }
  0xde   :  { %6189 = vst [vmem:[#allocation7_spill] sm:$0xff] %v4761_v46 }
  0xdf   :  { %v4763_v48 = vpop.f32.mrf.mxu0  ;;  %v3792_v49 = vpop.f32.mrf.mxu1 }
  0xe0   :  { %6190 = vst [vmem:[#allocation8_spill] sm:$0xff] %v4763_v48 }
  0xe1   :  { %v4765_v50 = vpop.f32.mrf.mxu0  ;;  %v962_v51 = vpop.f32.mrf.mxu1 }
  0xe2   :  { %6191 = vst [vmem:[#allocation9_spill] sm:$0xff] %v4765_v50 }
  0xe3   :  { %v4767_v52 = vpop.f32.mrf.mxu0  ;;  %v3795_v53 = vpop.f32.mrf.mxu1 }
  0xe4   :  { %6192 = vst [vmem:[#allocation10_spill] sm:$0xff] %v4767_v52 }
  0xe5   :  { %v4769_v54 = vpop.f32.mrf.mxu0  ;;  %v972_v55 = vpop.f32.mrf.mxu1 }
  0xe6   :  { %6193 = vst [vmem:[#allocation11_spill] sm:$0xff] %v4769_v54 }
  0xe7   :  { %v4771_v56 = vpop.f32.mrf.mxu0  ;;  %v3798_v57 = vpop.f32.mrf.mxu1 }
  0xe8   :  { %6194 = vst [vmem:[#allocation12_spill] sm:$0xff] %v4771_v56 }
  0xe9   :  { %v4773_v58 = vpop.f32.mrf.mxu0  ;;  %v982_v59 = vpop.f32.mrf.mxu1 }
  0xea   :  { %6195 = vst [vmem:[#allocation13_spill] sm:$0xff] %v4773_v58 }
  0xeb   :  { %v4775_v60 = vpop.f32.mrf.mxu0  ;;  %v3801_v61 = vpop.f32.mrf.mxu1 }
  0xec   :  { %6196 = vst [vmem:[#allocation14_spill] sm:$0xff] %v4775_v60 }
  0xed   :  { %v4777_v62 = vpop.f32.mrf.mxu0  ;;  %v992_v63 = vpop.f32.mrf.mxu1 }
  0xee   :  { %6197 = vst [vmem:[#allocation15_spill] sm:$0xff] %v4777_v62 }
  0xef   :  { %v4779_v0 = vpop.f32.mrf.mxu0  ;;  %v3804_v1 = vpop.f32.mrf.mxu1 }
  0xf0   :  { %6198 = vst [vmem:[#allocation16_spill] sm:$0xff] %v4779_v0 }
  0xf1   :  { %v4781_v2 = vpop.f32.mrf.mxu0  ;;  %v1002_v3 = vpop.f32.mrf.mxu1 }
  0xf2   :  { %6199 = vst [vmem:[#allocation17_spill] sm:$0xff] %v4781_v2 }
  0xf3   :  { %v4783_v4 = vpop.f32.mrf.mxu0  ;;  %v3807_v5 = vpop.f32.mrf.mxu1 }
  0xf4   :  { %6200 = vst [vmem:[#allocation18_spill] sm:$0xff] %v4783_v4 }
  0xf5   :  { %v4785_v6 = vpop.f32.mrf.mxu0  ;;  %v1012_v7 = vpop.f32.mrf.mxu1 }
  0xf7   :  { %v4787_v8 = vpop.f32.mrf.mxu0  ;;  %v4789_v9 = vpop.f32.mrf.mxu1 }
  0xf9   :  { %v4791_v10 = vpop.f32.mrf.mxu0  ;;  %v4793_v11 = vpop.f32.mrf.mxu1 }
  0xfb   :  { %v4795_v12 = vpop.f32.mrf.mxu0  ;;  %v4797_v13 = vpop.f32.mrf.mxu1 }
  0xfd   :  { %v4799_v14 = vpop.f32.mrf.mxu0  ;;  %v4801_v15 = vpop.f32.mrf.mxu1 }
  0xff   :  { %v4803_v16 = vpop.f32.mrf.mxu0  ;;  %v4805_v17 = vpop.f32.mrf.mxu1 }
 0x101   :  { %v4807_v18 = vpop.f32.mrf.mxu0  ;;  %v4809_v19 = vpop.f32.mrf.mxu1 }
 0x103   :  { %v4811_v20 = vpop.f32.mrf.mxu0  ;;  %v4813_v21 = vpop.f32.mrf.mxu1 }
 0x105   :  { %v3710_v22 = vpop.f32.mrf.mxu0  ;;  %v4815_v23 = vpop.f32.mrf.mxu1 }
 0x106   :  { %v4817_v24 = vadd.f32 %v3786_v41, %v3710_v22 }
 0x107   :  { %v492_v4 = vpop.f32.mrf.mxu0  ;;  %v4819_v2 = vpop.f32.mrf.mxu1 }
 0x108   :  { %v4821_v0 = vadd.f32 %v942_v43, %v492_v4 }
 0x109   :  { %v3713_v62 = vpop.f32.mrf.mxu0  ;;  %v4823_v60 = vpop.f32.mrf.mxu1 }
 0x10a   :  { %v4825_v58 = vadd.f32 %v3789_v45, %v3713_v62 }
 0x10b   :  { %v502_v56 = vpop.f32.mrf.mxu0  ;;  %v4827_v54 = vpop.f32.mrf.mxu1 }
 0x10c   :  { %6201 = vst [vmem:[#allocation19_spill] sm:$0xff] %v4825_v58  ;;  %v4829_v52 = vadd.f32 %v952_v47, %v502_v56 }
 0x10d   :  { %v3716_v50 = vpop.f32.mrf.mxu0  ;;  %v4831_v48 = vpop.f32.mrf.mxu1 }
 0x10e   :  { %6202 = vst [vmem:[#allocation20_spill] sm:$0xff] %v4829_v52  ;;  %v4833_v41 = vadd.f32 %v3792_v49, %v3716_v50 }
 0x10f   :  { %v512_v22 = vpop.f32.mrf.mxu0  ;;  %v4835_v46 = vpop.f32.mrf.mxu1 }
 0x110   :  { %6203 = vst [vmem:[#allocation21_spill] sm:$0xff] %v4833_v41  ;;  %v4837_v43 = vadd.f32 %v962_v51, %v512_v22 }
 0x111   :  { %v3719_v4 = vpop.f32.mrf.mxu0  ;;  %v4839_v44 = vpop.f32.mrf.mxu1 }
 0x112   :  { %6204 = vst [vmem:[#allocation22_spill] sm:$0xff] %v4837_v43  ;;  %v4841_v45 = vadd.f32 %v3795_v53, %v3719_v4 }
 0x113   :  { %v522_v62 = vpop.f32.mrf.mxu0  ;;  %v4843_v58 = vpop.f32.mrf.mxu1 }
 0x114   :  { %6205 = vst [vmem:[#allocation23_spill] sm:$0xff] %v4841_v45  ;;  %v4845_v47 = vadd.f32 %v972_v55, %v522_v62 }
 0x115   :  { %v3722_v56 = vpop.f32.mrf.mxu0  ;;  %v4847_v52 = vpop.f32.mrf.mxu1 }
 0x116   :  { %6206 = vst [vmem:[#allocation24_spill] sm:$0xff] %v4845_v47  ;;  %v4849_v49 = vadd.f32 %v3798_v57, %v3722_v56 }
 0x117   :  { %v532_v50 = vpop.f32.mrf.mxu0  ;;  %v4851_v41 = vpop.f32.mrf.mxu1 }
 0x118   :  { %6207 = vst [vmem:[#allocation25_spill] sm:$0xff] %v4849_v49  ;;  %v4853_v51 = vadd.f32 %v982_v59, %v532_v50 }
 0x119   :  { %v3725_v22 = vpop.f32.mrf.mxu0  ;;  %v4855_v43 = vpop.f32.mrf.mxu1 }
 0x11a   :  { %6208 = vst [vmem:[#allocation26_spill] sm:$0xff] %v4853_v51  ;;  %v4857_v53 = vadd.f32 %v3801_v61, %v3725_v22 }
 0x11b   :  { %v542_v4 = vpop.f32.mrf.mxu0  ;;  %v4859_v45 = vpop.f32.mrf.mxu1 }
 0x11c   :  { %6209 = vst [vmem:[#allocation27_spill] sm:$0xff] %v4857_v53  ;;  %v4861_v55 = vadd.f32 %v992_v63, %v542_v4 }
 0x11d   :  { %v3728_v62 = vpop.f32.mrf.mxu0  ;;  %v4863_v47 = vpop.f32.mrf.mxu1 }
 0x11e   :  { %6210 = vst [vmem:[#allocation28_spill] sm:$0xff] %v4861_v55  ;;  %v4865_v57 = vadd.f32 %v3804_v1, %v3728_v62  ;;  %v908_v1 = vadd.f32 %v4725_v25, %v4785_v6  ;;  %v4068_v25 = vmov 32  }
 0x11f   :  { %v552_v56 = vpop.f32.mrf.mxu0  ;;  %v4867_v49 = vpop.f32.mrf.mxu1  ;;  %3900 = vset.pattern.permute.xlu1 %v4068_v25  ;;  %3899 = vset.pattern.permute.xlu0 %v4068_v25 }
 0x120   :  { %v4869_v59 = vadd.f32 %v1002_v3, %v552_v56 }
 0x121   :  { %v3731_v50 = vpop.f32.mrf.mxu0  ;;  %v4871_v51 = vpop.f32.mrf.mxu1 }
 0x122   :  { %v4873_v61 = vadd.f32 %v3807_v5, %v3731_v50  ;;  %v4889_v5 = vld [vmem:[%s6121_s6] ss:$0 sm:$0xff] }
 0x123   :  { %v562_v22 = vpop.f32.mrf.mxu0  ;;  %v4875_v53 = vpop.f32.mrf.mxu1 }
 0x124   :  { %v4877_v63 = vadd.f32 %v1012_v7, %v562_v22  ;;  %v903_v7 = vadd.f32 %v4729_v27, %v4787_v8 }
 0x125   :  { %v3734_v4 = vpop.f32.mrf.mxu0  ;;  %v4879_v55 = vpop.f32.mrf.mxu1 }
 0x126   :  { %6211 = vst [vmem:[#allocation29_spill] sm:$0xff] %v4877_v63  ;;  %6212 = vst [vmem:[#allocation30_spill] sm:$0xff] %v4879_v55  ;;  %v4884_v62 = vadd.f32 %v4789_v9, %v3734_v4 }
 0x127   :  { %v572_v3 = vpop.f32.mrf.mxu0  ;;  %v3854_v56 = vpop.f32.mrf.mxu1 }
 0x128   :  { %6213 = vst [vmem:[#allocation31_spill] sm:$0xff] %v4884_v62  ;;  %v4894_v50 = vadd.f32 %v4793_v11, %v572_v3  ;;  %v1556_v22 = vadd.f32 %v3854_v56, %v908_v1  ;;  %v918_v62 = vadd.f32 %v4733_v29, %v4791_v10  ;;  %v913_v56 = vadd.f32 %v4737_v31, %v4795_v12 }
 0x129   :  { %v3741_v55 = vpop.f32.mrf.mxu0  ;;  %v1404_v63 = vpop.f32.mrf.mxu1  ;;  %v928_v31 = vadd.f32 %v4741_v33, %v4799_v14 }
 0x12a   :  { %v4897_v6 = vadd.f32 %v4889_v5, %v1556_v22  ;;  %v798_v9 = vadd.f32 %v3741_v55, %v4727_v26  ;;  %v1555_v4 = vadd.f32 %v1404_v63, %v903_v7 }
 0x12b   :  { %v792_v27 = vpop.f32.mrf.mxu0  ;;  %v3857_v8 = vpop.f32.mrf.mxu1 }
 0x12c   :  { %6214 = vst [vmem:[#allocation32_spill] sm:$0xff] %v4897_v6  ;;  %1659 = vst.msk [vmem:[#allocation4 + $0xb8] sm:$0xff] %vm1083_vm2, %v4897_v6  ;;  %v1534_v11 = vadd.f32 %v4797_v13, %v798_v9  ;;  %v4906_v1 = vadd.f32 %v4889_v5, %v1555_v4  ;;  %v793_v3 = vadd.f32 %v792_v27, %v4731_v28  ;;  %v1785_v26 = vsel %vm1684_vm3, %v4897_v6, -inf }
 0x12d   :  { %v1558_v55 = vadd.f32 %v3857_v8, %v918_v62  ;;  %v3744_v29 = vpop.f32.mrf.mxu0  ;;  %v1414_v10 = vpop.f32.mrf.mxu1 }
 0x12e   :  { %6215 = vst [vmem:[#allocation33_spill] sm:$0xff] %v4906_v1  ;;  %v4914_v63 = vadd.f32 %v4889_v5, %v1534_v11  ;;  %1658 = vst.msk [vmem:[#allocation4 + $0xb0] sm:$0xff] %vm1083_vm2, %v4906_v1  ;;  %v1784_v13 = vsel %vm1684_vm3, %v4906_v1, -inf  ;;  %v1533_v28 = vadd.f32 %v4801_v15, %v793_v3  ;;  %v808_v7 = vadd.f32 %v3744_v29, %v4735_v30 }
 0x12f   :  { %v1786_v12 = vmax.f32 %v1784_v13, %v1785_v26  ;;  %v4925_v62 = vadd.f32 %v4889_v5, %v1558_v55  ;;  %v1557_v22 = vadd.f32 %v1414_v10, %v913_v56  ;;  %v802_v25 = vpop.f32.mrf.mxu0  ;;  %v3860_v9 = vpop.f32.mrf.mxu1  ;;  %v923_v26 = vadd.f32 %v4745_v35, %v4803_v16 }
 0x130   :  { %6216 = vst [vmem:[#allocation34_spill] sm:$0xff] %v4914_v63  ;;  %1637 = vst.msk [vmem:[#allocation4 + $0x8] sm:$0xff] %vm1083_vm2, %v4914_v63  ;;  %v4930_v4 = vadd.f32 %v4889_v5, %v1533_v28  ;;  %v1536_v15 = vadd.f32 %v4805_v17, %v808_v7  ;;  %v803_v30 = vadd.f32 %v802_v25, %v4739_v32 }
 0x131   :  { %6217 = vst [vmem:[#allocation35_spill] sm:$0xff] %v4925_v62  ;;  %v1787_v27 = vrot.slane %v1786_v12, 4  ;;  %1661 = vst.msk [vmem:[#allocation4 + $0xc8] sm:$0xff] %vm1083_vm2, %v4925_v62  ;;  %v4937_v33 = vadd.f32 %v4889_v5, %v1557_v22  ;;  %v1560_v14 = vadd.f32 %v3860_v9, %v928_v31  ;;  %v3747_v8 = vpop.f32.mrf.mxu0  ;;  %v1424_v11 = vpop.f32.mrf.mxu1  ;;  %v1794_v35 = vsel %vm1684_vm3, %v4925_v62, -inf }
 0x132   :  { %6218 = vst [vmem:[#allocation36_spill] sm:$0xff] %v4930_v4  ;;  %1636 = vst.msk [vmem:[#allocation4] sm:$0xff] %vm1083_vm2, %v4930_v4  ;;  %v1685_v3 = vsel %vm1684_vm3, %v4930_v4, -inf  ;;  %v4944_v17 = vadd.f32 %v4889_v5, %v1536_v15  ;;  %v1535_v32 = vadd.f32 %v4809_v19, %v803_v30  ;;  %v818_v56 = vadd.f32 %v3747_v8, %v4743_v34 }
 0x133   :  { %6219 = vst [vmem:[#allocation37_spill] sm:$0xff] %v4937_v33  ;;  %v3308_v55 = vld [vmem:[#allocation4 + $0xb8] sm:$0xff]  ;;  %v1788_v29 = vmax.f32 %v1786_v12, %v1787_v27  ;;  %1660 = vst.msk [vmem:[#allocation4 + $0xc0] sm:$0xff] %vm1083_vm2, %v4937_v33  ;;  %v1793_v10 = vsel %vm1684_vm3, %v4937_v33, -inf  ;;  %v4955_v13 = vadd.f32 %v4889_v5, %v1560_v14  ;;  %v812_v28 = vpop.f32.mrf.mxu0  ;;  %v1686_v34 = vsel %vm1684_vm3, %v4914_v63, -inf  ;;  %v3863_v25 = vpop.f32.mrf.mxu1 }
 0x134   :  { %6220 = vst [vmem:[#allocation38_spill] sm:$0xff] %v4944_v17  ;;  %3309 = vst [vmem:[%s6123_s8 + $0xb8] sm:$0xff] %v3308_v55  ;;  %v4967_v16 = vadd.f32 %v4889_v5, %v1535_v32  ;;  %v1538_v19 = vadd.f32 %v4813_v21, %v818_v56  ;;  %v1687_v31 = vmax.f32 %v1685_v3, %v1686_v34  ;;  %v1695_v56 = vsel %vm1684_vm3, %v4944_v17, -inf }
 0x135   :  { %6221 = vst [vmem:[#allocation39_spill] sm:$0xff] %v4955_v13  ;;  %1639 = vst.msk [vmem:[#allocation4 + $0x18] sm:$0xff] %vm1083_vm2, %v4944_v17  ;;  %v3306_v7 = vld [vmem:[#allocation4 + $0xb0] sm:$0xff]  ;;  %v1795_v12 = vmax.f32 %v1793_v10, %v1794_v35  ;;  %v1559_v22 = vadd.f32 %v1424_v11, %v923_v26  ;;  %v938_v9 = vadd.f32 %v4749_v37, %v4807_v18  ;;  %v1789_v15 = vrot.slane %v1788_v29, 2  ;;  %v3750_v3 = vpop.f32.mrf.mxu0 }
 0x136   :  { %6222 = vst [vmem:[#allocation40_spill] sm:$0xff] %v4967_v16  ;;  %1663 = vst.msk [vmem:[#allocation4 + $0xd8] sm:$0xff] %vm1083_vm2, %v4955_v13  ;;  %v4980_v21 = vadd.f32 %v4889_v5, %v1538_v19  ;;  %v813_v30 = vadd.f32 %v812_v28, %v4747_v36  ;;  %v1694_v14 = vsel %vm1684_vm3, %v4967_v16, -inf  ;;  %v1688_v36 = vrot.slane %v1687_v31, 4 }
 0x137   :  { %3307 = vst [vmem:[%s6123_s8 + $0xb0] sm:$0xff] %v3306_v7  ;;  %1638 = vst.msk [vmem:[#allocation4 + $0x10] sm:$0xff] %vm1083_vm2, %v4967_v16  ;;  %v3264_v27 = vld [vmem:[#allocation4 + $0x8] sm:$0xff]  ;;  %v4986_v8 = vadd.f32 %v4889_v5, %v1559_v22  ;;  %v1562_v11 = vadd.f32 %v3863_v25, %v938_v9  ;;  %v1796_v26 = vrot.slane %v1795_v12, 4  ;;  %v1790_v55 = vmax.f32 %v1788_v29, %v1789_v15 }
 0x138   :  { %6223 = vst [vmem:[#allocation41_spill] sm:$0xff] %v4980_v21  ;;  %3265 = vst [vmem:[%s6123_s8 + $0x8] sm:$0xff] %v3264_v27  ;;  %v3312_v37 = vld [vmem:[#allocation4 + $0xc8] sm:$0xff]  ;;  %v1537_v18 = vadd.f32 %v4815_v23, %v813_v30  ;;  %v1696_v10 = vmax.f32 %v1694_v14, %v1695_v56  ;;  %v828_v19 = vadd.f32 %v3750_v3, %v4751_v38 }
 0x139   :  { %6224 = vst [vmem:[#allocation42_spill] sm:$0xff] %v4986_v8  ;;  %1641 = vst.msk [vmem:[#allocation4 + $0x28] sm:$0xff] %vm1083_vm2, %v4980_v21  ;;  %v3262_v32 = vld [vmem:[#allocation4] sm:$0xff]  ;;  %v5008_v34 = vadd.f32 %v4889_v5, %v1562_v11  ;;  %v1689_v7 = vmax.f32 %v1687_v31, %v1688_v36  ;;  %v1802_v38 = vsel %vm1684_vm3, %v4986_v8, -inf  ;;  %v1791_v25 = vrot.slane %v1790_v55, 1  ;;  %v822_v36 = vpop.f32.mrf.mxu0 }
 0x13a   :  { %3313 = vst [vmem:[%s6123_s8 + $0xc8] sm:$0xff] %v3312_v37  ;;  %1662 = vst.msk [vmem:[#allocation4 + $0xd0] sm:$0xff] %vm1083_vm2, %v4986_v8  ;;  %v3310_v23 = vld [vmem:[#allocation4 + $0xc0] sm:$0xff]  ;;  %v5005_v28 = vadd.f32 %v4889_v5, %v1537_v18  ;;  %v1797_v9 = vmax.f32 %v1795_v12, %v1796_v26  ;;  %v1697_v15 = vrot.slane %v1696_v10, 4  ;;  %v1540_v30 = vadd.f32 %v4819_v2, %v828_v19  ;;  %v1434_v12 = vpop.f32.mrf.mxu1 }
 0x13b   :  { %3263 = vst [vmem:[%s6123_s8] sm:$0xff] %v3262_v32  ;;  %6226 = vst [vmem:[#allocation44_spill] sm:$0xff] %v5008_v34  ;;  %v1803_v31 = vsel %vm1684_vm3, %v4955_v13, -inf  ;;  %v933_v11 = vadd.f32 %v4753_v39, %v4811_v20  ;;  %v1690_v3 = vrot.slane %v1689_v7, 2  ;;  %v5045_v32 = vmax.f32 %v1790_v55, %v1791_v25 }
 0x13c   :  { %6225 = vst [vmem:[#allocation43_spill] sm:$0xff] %v5005_v28  ;;  %v3268_v35 = vld [vmem:[#allocation4 + $0x18] sm:$0xff]  ;;  %3311 = vst [vmem:[%s6123_s8 + $0xc0] sm:$0xff] %v3310_v23  ;;  %v1804_v14 = vmax.f32 %v1802_v38, %v1803_v31  ;;  %v5036_v18 = vadd.f32 %v4889_v5, %v1540_v30  ;;  %v1703_v2 = vsel %vm1684_vm3, %v5005_v28, -inf  ;;  %v1798_v56 = vrot.slane %v1797_v9, 2  ;;  %v3866_v55 = vpop.f32.mrf.mxu1 }
 0x13d   :  { %3269 = vst [vmem:[%s6123_s8 + $0x18] sm:$0xff] %v3268_v35  ;;  %v3316_v29 = vld [vmem:[#allocation4 + $0xd8] sm:$0xff]  ;;  %1640 = vst.msk [vmem:[#allocation4 + $0x20] sm:$0xff] %vm1083_vm2, %v5005_v28  ;;  %v1698_v26 = vmax.f32 %v1696_v10, %v1697_v15  ;;  %v1704_v23 = vsel %vm1684_vm3, %v4980_v21, -inf  ;;  %v1561_v35 = vadd.f32 %v1434_v12, %v933_v11  ;;  %v1691_v10 = vmax.f32 %v1689_v7, %v1690_v3 }
 0x13e   :  { %1665 = vst.msk [vmem:[#allocation4 + $0xe8] sm:$0xff] %vm1083_vm2, %v5008_v34  ;;  %v3266_v22 = vld [vmem:[#allocation4 + $0x10] sm:$0xff]  ;;  %3317 = vst [vmem:[%s6123_s8 + $0xd8] sm:$0xff] %v3316_v29  ;;  %v1805_v19 = vrot.slane %v1804_v14, 4  ;;  %v1705_v29 = vmax.f32 %v1703_v2, %v1704_v23  ;;  %v1923_v38 = vsub.f32 %v4906_v1, %v5045_v32  ;;  %v1799_v25 = vmax.f32 %v1797_v9, %v1798_v56  ;;  %v1444_v12 = vpop.f32.mrf.mxu1 }
 0x13f   :  { %3267 = vst [vmem:[%s6123_s8 + $0x10] sm:$0xff] %v3266_v22  ;;  %6227 = vst [vmem:[#allocation45_spill] sm:$0xff] %v5036_v18  ;;  %v3753_v22 = vpop.f32.mrf.mxu0  ;;  %v1699_v15 = vrot.slane %v1698_v26, 2  ;;  %v5060_v30 = vadd.f32 %v4889_v5, %v1561_v35  ;;  %v823_v31 = vadd.f32 %v822_v36, %v4755_v40  ;;  %v1692_v11 = vrot.slane %v1691_v10, 1 }
 0x140   :  { %v3272_v27 = vld [vmem:[#allocation4 + $0x28] sm:$0xff]  ;;  %1643 = vst.msk [vmem:[#allocation4 + $0x38] sm:$0xff] %vm1083_vm2, %v5036_v18  ;;  %v1564_v9 = vadd.f32 %v3866_v55, %v4817_v24  ;;  %v1993_v23 = vmul.f32 1.442695, %v1923_v38  ;;  %v1812_v40 = vsel %vm1684_vm3, %v5008_v34, -inf  ;;  %v3869_v55 = vpop.f32.mrf.mxu1 }
 0x141   :  { %3273 = vst [vmem:[%s6123_s8 + $0x28] sm:$0xff] %v3272_v27  ;;  %v3314_v37 = vld [vmem:[#allocation4 + $0xd0] sm:$0xff]  ;;  %6228 = vst [vmem:[#allocation46_spill] sm:$0xff] %v5060_v30  ;;  %v1806_v27 = vmax.f32 %v1804_v14, %v1805_v19  ;;  %v1811_v7 = vsel %vm1684_vm3, %v5060_v30, -inf  ;;  %v1539_v3 = vadd.f32 %v4823_v60, %v823_v31  ;;  %v832_v56 = vpop.f32.mrf.mxu0  ;;  %v838_v60 = vadd.f32 %v3753_v22, %v4757_v42 }
 0x142   :  { %3315 = vst [vmem:[%s6123_s8 + $0xd0] sm:$0xff] %v3314_v37  ;;  %v1706_v37 = vrot.slane %v1705_v29, 4  ;;  %1664 = vst.msk [vmem:[#allocation4 + $0xe0] sm:$0xff] %vm1083_vm2, %v5060_v30  ;;  %v1813_v14 = vmax.f32 %v1811_v7, %v1812_v40  ;;  %v5078_v35 = vadd.f32 %v4889_v5, %v1564_v9  ;;  %v1693_v38 = vmax.f32 %v1691_v10, %v1692_v11  ;;  %v6232_v11 = vld [vmem:[#allocation6_spill] sm:$0xff] }
 0x143   :  { %v5075_v36 = vadd.f32 %v4889_v5, %v1539_v3  ;;  %v1807_v24 = vrot.slane %v1806_v27, 2  ;;  %v3756_v42 = vpop.f32.mrf.mxu0  ;;  %3901 = vpow2.f32 %v1993_v23  ;;  %v833_v7 = vadd.f32 %v832_v56, %v6232_v11  ;;  %v6233_v3 = vld [vmem:[#allocation19_spill] sm:$0xff]  ;;  %v1454_v23 = vpop.f32.mrf.mxu1 }
 0x144   :  { %v3270_v39 = vld [vmem:[#allocation4 + $0x20] sm:$0xff]  ;;  %6230 = vst [vmem:[#allocation48_spill] sm:$0xff] %v5078_v35  ;;  %v1707_v19 = vmax.f32 %v1705_v29, %v1706_v37  ;;  %v1814_v31 = vrot.slane %v1813_v14, 4  ;;  %1667 = vst.msk [vmem:[#allocation4 + $0xf8] sm:$0xff] %vm1083_vm2, %v5078_v35  ;;  %v1566_v9 = vadd.f32 %v3869_v55, %v6233_v3  ;;  %v6239_v3 = vld [vmem:[#allocation8_spill] sm:$0xff] }
 0x145   :  { %v3320_v20 = vld [vmem:[#allocation4 + $0xe8] sm:$0xff]  ;;  %3271 = vst [vmem:[%s6123_s8 + $0x20] sm:$0xff] %v3270_v39  ;;  %v1800_v39 = vrot.slane %v1799_v25, 1  ;;  %6229 = vst [vmem:[#allocation47_spill] sm:$0xff] %v5075_v36  ;;  %v1808_v40 = vmax.f32 %v1806_v27, %v1807_v24  ;;  %v1541_v27 = vadd.f32 %v4831_v48, %v833_v7  ;;  %v842_v56 = vpop.f32.mrf.mxu0  ;;  %v6238_v48 = vld [vmem:[#allocation20_spill] sm:$0xff] }
 0x146   :  { %3321 = vst [vmem:[%s6123_s8 + $0xe8] sm:$0xff] %v3320_v20  ;;  %v1700_v20 = vmax.f32 %v1698_v26, %v1699_v15  ;;  %v1563_v26 = vadd.f32 %v1444_v12, %v4821_v0  ;;  %v1713_v15 = vsel %vm1684_vm3, %v5036_v18, -inf  ;;  %1642 = vst.msk [vmem:[#allocation4 + $0x30] sm:$0xff] %vm1083_vm2, %v5075_v36  ;;  %v1542_v0 = vadd.f32 %v4827_v54, %v838_v60 }
 0x147   :  { %v3276_v2 = vld [vmem:[#allocation4 + $0x38] sm:$0xff]  ;;  %v1801_v22 = vmax.f32 %v1799_v25, %v1800_v39  ;;  %v1708_v1 = vrot.slane %v1707_v19, 2  ;;  %v6235_v39 = vld [vmem:[#allocation7_spill] sm:$0xff]  ;;  %v1901_v60 = vsub.f32 %v4930_v4, %v1693_v38 }
 0x148   :  { %3277 = vst [vmem:[%s6123_s8 + $0x38] sm:$0xff] %v3276_v2  ;;  %v1712_v2 = vsel %vm1684_vm3, %v5075_v36, -inf  ;;  %v1701_v29 = vrot.slane %v1700_v20, 1  ;;  %v5092_v12 = vadd.f32 %v4889_v5, %v1563_v26  ;;  %v5100_v25 = vadd.f32 %v4889_v5, %v1542_v0 }
 0x149   :  { %v1714_v37 = vmax.f32 %v1712_v2, %v1713_v15  ;;  %v3318_v10 = vld [vmem:[#allocation4 + $0xe0] sm:$0xff]  ;;  %v848_v54 = vadd.f32 %v3756_v42, %v6235_v39  ;;  %v1902_v26 = vsub.f32 %v4914_v63, %v1693_v38  ;;  %v1815_v15 = vmax.f32 %v1813_v14, %v1814_v31  ;;  %v3872_v39 = vpop.f32.mrf.mxu1 }
 0x14a   :  { %6231 = vst [vmem:[#allocation49_spill] sm:$0xff] %v5092_v12  ;;  %3319 = vst [vmem:[%s6123_s8 + $0xe0] sm:$0xff] %v3318_v10  ;;  %v1925_v24 = vsub.f32 %v4937_v33, %v1801_v22  ;;  %v1702_v55 = vmax.f32 %v1700_v20, %v1701_v29  ;;  %v5112_v42 = vadd.f32 %v4889_v5, %v1566_v9  ;;  %v1820_v38 = vsel %vm1684_vm3, %v5092_v12, -inf }
 0x14b   :  { %6234 = vst [vmem:[#allocation6_spill] sm:$0xff] %v5100_v25  ;;  %1666 = vst.msk [vmem:[#allocation4 + $0xf0] sm:$0xff] %vm1083_vm2, %v5092_v12  ;;  %v1715_v2 = vrot.slane %v1714_v37, 4  ;;  %v5117_v14 = vadd.f32 %v4889_v5, %v1541_v27  ;;  %v1544_v31 = vadd.f32 %v4835_v46, %v848_v54  ;;  %v1565_v0 = vadd.f32 %v1454_v23, %v6238_v48  ;;  %v3324_v7 = vld [vmem:[#allocation4 + $0xf8] sm:$0xff] }
 0x14c   :  { %1645 = vst.msk [vmem:[#allocation4 + $0x48] sm:$0xff] %vm1083_vm2, %v5100_v25  ;;  %6236 = vst [vmem:[#allocation19_spill] sm:$0xff] %v5112_v42  ;;  %v1926_v10 = vsub.f32 %v4925_v62, %v1801_v22  ;;  %v1809_v20 = vrot.slane %v1808_v40, 1  ;;  %v1709_v29 = vmax.f32 %v1707_v19, %v1708_v1  ;;  %v843_v9 = vadd.f32 %v842_v56, %v6239_v3  ;;  %v6261_v62 = vld [vmem:[#allocation25_spill] sm:$0xff] }
 0x14d   :  { %6237 = vst [vmem:[#allocation7_spill] sm:$0xff] %v5117_v14  ;;  %v3274_v11 = vld [vmem:[#allocation4 + $0x30] sm:$0xff]  ;;  %1669 = vst.msk [vmem:[#allocation4 + $0x108] sm:$0xff] %vm1083_vm2, %v5112_v42  ;;  %v1816_v33 = vrot.slane %v1815_v15, 2  ;;  %v1821_v46 = vsel %vm1684_vm3, %v5078_v35, -inf  ;;  %v5136_v1 = vadd.f32 %v4889_v5, %v1544_v31  ;;  %v5139_v19 = vadd.f32 %v4889_v5, %v1565_v0  ;;  %v6242_v31 = vld [vmem:[#allocation21_spill] sm:$0xff] }
 0x14e   :  { %3275 = vst [vmem:[%s6123_s8 + $0x30] sm:$0xff] %v3274_v11  ;;  %3325 = vst [vmem:[%s6123_s8 + $0xf8] sm:$0xff] %v3324_v7  ;;  %v1949_v22 = vmul.f32 1.442695, %v1901_v60  ;;  %v1903_v54 = vsub.f32 %v4967_v16, %v1702_v55  ;;  %v1822_v23 = vmax.f32 %v1820_v38, %v1821_v46  ;;  %v1543_v27 = vadd.f32 %v4839_v44, %v843_v9  ;;  %v3759_v44 = vpop.f32.mrf.mxu0  ;;  %v6245_v9 = vld [vmem:[#allocation9_spill] sm:$0xff] }
 0x14f   :  { %1644 = vst.msk [vmem:[#allocation4 + $0x40] sm:$0xff] %vm1083_vm2, %v5117_v14  ;;  %6240 = vst [vmem:[#allocation20_spill] sm:$0xff] %v5136_v1  ;;  %v1951_v56 = vmul.f32 1.442695, %v1902_v26  ;;  %v1997_v48 = vmul.f32 1.442695, %v1925_v24  ;;  %v1716_v11 = vmax.f32 %v1714_v37, %v1715_v2  ;;  %v1568_v7 = vadd.f32 %v3872_v39, %v6242_v31 }
 0x150   :  { %6241 = vst [vmem:[#allocation8_spill] sm:$0xff] %v5139_v19  ;;  %1647 = vst.msk [vmem:[#allocation4 + $0x58] sm:$0xff] %vm1083_vm2, %v5136_v1  ;;  %v1999_v3 = vmul.f32 1.442695, %v1926_v10  ;;  %v1904_v0 = vsub.f32 %v4944_v17, %v1702_v55  ;;  %v1810_v60 = vmax.f32 %v1808_v40, %v1809_v20  ;;  %v1721_v38 = vsel %vm1684_vm3, %v5117_v14, -inf  ;;  %v5170_v46 = vpop.eup %3901 }
 0x151   :  { %1668 = vst.msk [vmem:[#allocation4 + $0x100] sm:$0xff] %vm1083_vm2, %v5139_v19  ;;  %v1710_v26 = vrot.slane %v1709_v29, 1  ;;  %v1817_v24 = vmax.f32 %v1815_v15, %v1816_v33  ;;  %v5155_v2 = vadd.f32 %v4889_v5, %v1543_v27  ;;  %v5158_v10 = vadd.f32 %v4889_v5, %v1568_v7  ;;  %6246 = vst [vmem:[#allocation9_spill] sm:$0xff] %v5170_v46 }
 0x152   :  { %v3322_v4 = vld [vmem:[#allocation4 + $0xf0] sm:$0xff]  ;;  %3903 = vpow2.f32 %v1949_v22  ;;  %v1953_v40 = vmul.f32 1.442695, %v1903_v54  ;;  %v1722_v55 = vsel %vm1684_vm3, %v5100_v25, -inf  ;;  %v1823_v33 = vrot.slane %v1822_v23, 4 }
 0x153   :  { %v3280_v37 = vld [vmem:[#allocation4 + $0x48] sm:$0xff]  ;;  %3323 = vst [vmem:[%s6123_s8 + $0xf0] sm:$0xff] %v3322_v4  ;;  %6243 = vst [vmem:[#allocation21_spill] sm:$0xff] %v5155_v2  ;;  %3905 = vpow2.f32 %v1951_v56  ;;  %v1717_v15 = vrot.slane %v1716_v11, 2  ;;  %v1723_v20 = vmax.f32 %v1721_v38, %v1722_v55  ;;  %v858_v39 = vadd.f32 %v3759_v44, %v6245_v9  ;;  %v1464_v38 = vpop.f32.mrf.mxu1 }
 0x154   :  { %6244 = vst [vmem:[#allocation50_spill] sm:$0xff] %v5158_v10  ;;  %3281 = vst [vmem:[%s6123_s8 + $0x48] sm:$0xff] %v3280_v37  ;;  %v3328_v4 = vld [vmem:[#allocation4 + $0x108] sm:$0xff]  ;;  %3907 = vpow2.f32 %v1997_v48  ;;  %v1955_v22 = vmul.f32 1.442695, %v1904_v0  ;;  %v1927_v54 = vsub.f32 %v4986_v8, %v1810_v60  ;;  %v1711_v56 = vmax.f32 %v1709_v29, %v1710_v26  ;;  %v6247_v26 = vld [vmem:[#allocation22_spill] sm:$0xff] }
 0x155   :  { %1646 = vst.msk [vmem:[#allocation4 + $0x50] sm:$0xff] %vm1083_vm2, %v5155_v2  ;;  %1671 = vst.msk [vmem:[#allocation4 + $0x118] sm:$0xff] %vm1083_vm2, %v5158_v10  ;;  %3909 = vpow2.f32 %v1999_v3  ;;  %v1818_v31 = vrot.slane %v1817_v24, 1  ;;  %v1829_v7 = vsel %vm1684_vm3, %v5139_v19, -inf  ;;  %v1928_v48 = vsub.f32 %v4955_v13, %v1810_v60 }
 0x156   :  { %v3278_v27 = vld [vmem:[#allocation4 + $0x40] sm:$0xff]  ;;  %3329 = vst [vmem:[%s6123_s8 + $0x108] sm:$0xff] %v3328_v4  ;;  %3911 = vpow2.f32 %v1953_v40  ;;  %v1824_v0 = vmax.f32 %v1822_v23, %v1823_v33  ;;  %v1718_v55 = vmax.f32 %v1716_v11, %v1717_v15  ;;  %v1724_v9 = vrot.slane %v1723_v20, 4  ;;  %v852_v11 = vpop.f32.mrf.mxu0 }
 0x157   :  { %3279 = vst [vmem:[%s6123_s8 + $0x40] sm:$0xff] %v3278_v27  ;;  %v3284_v44 = vld [vmem:[#allocation4 + $0x58] sm:$0xff]  ;;  %v1830_v29 = vsel %vm1684_vm3, %v5112_v42, -inf  ;;  %v1546_v3 = vadd.f32 %v4843_v58, %v858_v39  ;;  %3913 = vpow2.f32 %v1955_v22  ;;  %v2001_v60 = vmul.f32 1.442695, %v1927_v54 }
 0x158   :  { %v3326_v37 = vld [vmem:[#allocation4 + $0x100] sm:$0xff]  ;;  %3285 = vst [vmem:[%s6123_s8 + $0x58] sm:$0xff] %v3284_v44  ;;  %v1831_v23 = vmax.f32 %v1829_v7, %v1830_v29  ;;  %v1567_v40 = vadd.f32 %v1464_v38, %v6247_v26  ;;  %v1905_v33 = vsub.f32 %v5005_v28, %v1711_v56  ;;  %v1906_v15 = vsub.f32 %v4980_v21, %v1711_v56  ;;  %v3875_v44 = vpop.f32.mrf.mxu1 }
 0x159   :  { %3327 = vst [vmem:[%s6123_s8 + $0x100] sm:$0xff] %v3326_v37  ;;  %v1819_v4 = vmax.f32 %v1817_v24, %v1818_v31  ;;  %v1730_v27 = vsel %vm1684_vm3, %v5155_v2, -inf  ;;  %v2003_v8 = vmul.f32 1.442695, %v1928_v48  ;;  %v1825_v13 = vrot.slane %v1824_v0, 2  ;;  %v6250_v24 = vld [vmem:[#allocation10_spill] sm:$0xff] }
 0x15a   :  { %v5197_v58 = vadd.f32 %v4889_v5, %v1546_v3  ;;  %v5200_v39 = vadd.f32 %v4889_v5, %v1567_v40  ;;  %v1719_v22 = vrot.slane %v1718_v55, 1  ;;  %v1725_v54 = vmax.f32 %v1723_v20, %v1724_v9  ;;  %v6251_v20 = vld [vmem:[#allocation23_spill] sm:$0xff]  ;;  %v3762_v9 = vpop.f32.mrf.mxu0 }
 0x15b   :  { %v1731_v56 = vsel %vm1684_vm3, %v5136_v1, -inf  ;;  %v853_v31 = vadd.f32 %v852_v11, %v6250_v24  ;;  %3915 = vpow2.f32 %v2001_v60  ;;  %v1832_v7 = vrot.slane %v1831_v23, 4 }
 0x15c   :  { %v3282_v37 = vld [vmem:[#allocation4 + $0x50] sm:$0xff]  ;;  %v3332_v17 = vld [vmem:[#allocation4 + $0x118] sm:$0xff]  ;;  %6248 = vst [vmem:[#allocation22_spill] sm:$0xff] %v5197_v58  ;;  %6249 = vst [vmem:[#allocation51_spill] sm:$0xff] %v5200_v39  ;;  %v1732_v38 = vmax.f32 %v1730_v27, %v1731_v56  ;;  %v1570_v48 = vadd.f32 %v3875_v44, %v6251_v20  ;;  %v1957_v29 = vmul.f32 1.442695, %v1905_v33  ;;  %v1929_v26 = vsub.f32 %v5060_v30, %v1819_v4 }
 0x15d   :  { %3283 = vst [vmem:[%s6123_s8 + $0x50] sm:$0xff] %v3282_v37  ;;  %3333 = vst [vmem:[%s6123_s8 + $0x118] sm:$0xff] %v3332_v17  ;;  %v1959_v3 = vmul.f32 1.442695, %v1906_v15  ;;  %v1930_v17 = vsub.f32 %v5008_v34, %v1819_v4  ;;  %v1826_v40 = vmax.f32 %v1824_v0, %v1825_v13  ;;  %v1838_v60 = vsel %vm1684_vm3, %v5200_v39, -inf  ;;  %v1474_v15 = vpop.f32.mrf.mxu1 }
 0x15e   :  { %1649 = vst.msk [vmem:[#allocation4 + $0x68] sm:$0xff] %vm1083_vm2, %v5197_v58  ;;  %1670 = vst.msk [vmem:[#allocation4 + $0x110] sm:$0xff] %vm1083_vm2, %v5200_v39  ;;  %v1545_v11 = vadd.f32 %v4847_v52, %v853_v31  ;;  %v5222_v27 = vadd.f32 %v4889_v5, %v1570_v48  ;;  %3917 = vpow2.f32 %v2003_v8  ;;  %v5226_v44 = vmax.f32 %v1718_v55, %v1719_v22  ;;  %v862_v52 = vpop.f32.mrf.mxu0  ;;  %v6255_v55 = vld [vmem:[#allocation11_spill] sm:$0xff] }
 0x15f   :  { %v5224_v37 = vpop.eup %3903  ;;  %v1726_v33 = vrot.slane %v1725_v54, 2  ;;  %v1833_v24 = vmax.f32 %v1831_v23, %v1832_v7  ;;  %v1733_v4 = vrot.slane %v1732_v38, 4  ;;  %v1839_v13 = vsel %vm1684_vm3, %v5158_v10, -inf }
 0x160   :  { %6252 = vst [vmem:[#allocation10_spill] sm:$0xff] %v5222_v27  ;;  %v5228_v56 = vpop.eup %3905  ;;  %v5233_v0 = vadd.f32 %v4889_v5, %v1545_v11  ;;  %1673 = vst.msk [vmem:[#allocation4 + $0x128] sm:$0xff] %vm1083_vm2, %v5222_v27  ;;  %3919 = vpow2.f32 %v1957_v29  ;;  %v1840_v8 = vmax.f32 %v1838_v60, %v1839_v13  ;;  %v868_v22 = vadd.f32 %v3762_v9, %v6255_v55  ;;  %v6256_v9 = vld [vmem:[#allocation24_spill] sm:$0xff]  ;;  %v3878_v55 = vpop.f32.mrf.mxu1 }
 0x161   :  { %v5237_v31 = vpop.eup %3907  ;;  %3921 = vpow2.f32 %v1959_v3  ;;  %v2005_v23 = vmul.f32 1.442695, %v1929_v26  ;;  %v2007_v7 = vmul.f32 1.442695, %v1930_v17  ;;  %v1827_v48 = vrot.slane %v1826_v40, 1 }
 0x162   :  { %6253 = vst [vmem:[#allocation23_spill] sm:$0xff] %v5233_v0  ;;  %6254 = vst [vmem:[#allocation52_spill] sm:$0xff] %v5237_v31  ;;  %v5240_v20 = vpop.eup %3909  ;;  %v1727_v30 = vmax.f32 %v1725_v54, %v1726_v33  ;;  %v1739_v29 = vsel %vm1684_vm3, %v5233_v0, -inf  ;;  %v1548_v60 = vadd.f32 %v4851_v41, %v868_v22  ;;  %v1569_v13 = vadd.f32 %v1474_v15, %v6256_v9  ;;  %v3765_v41 = vpop.f32.mrf.mxu0 }
 0x163   :  { %1648 = vst.msk [vmem:[#allocation4 + $0x60] sm:$0xff] %vm1083_vm2, %v5233_v0  ;;  %v5244_v11 = vpop.eup %3911  ;;  %v1907_v3 = vsub.f32 %v5075_v36, %v5226_v44  ;;  %v1834_v26 = vrot.slane %v1833_v24, 2  ;;  %v1734_v17 = vmax.f32 %v1732_v38, %v1733_v4  ;;  %v1740_v21 = vsel %vm1684_vm3, %v5197_v58, -inf  ;;  %v6260_v4 = vld [vmem:[#allocation12_spill] sm:$0xff] }
 0x164   :  { %v5260_v54 = vpop.eup %3913  ;;  %v1841_v33 = vrot.slane %v1840_v8, 4  ;;  %v5263_v15 = vadd.f32 %v4889_v5, %v1548_v60  ;;  %v5266_v38 = vadd.f32 %v4889_v5, %v1569_v13  ;;  %v863_v22 = vadd.f32 %v862_v52, %v6260_v4  ;;  %v1484_v52 = vpop.f32.mrf.mxu1 }
 0x165   :  { %v3288_v34 = vld [vmem:[#allocation4 + $0x68] sm:$0xff]  ;;  %v3330_v28 = vld [vmem:[#allocation4 + $0x110] sm:$0xff]  ;;  %6257 = vst [vmem:[#allocation11_spill] sm:$0xff] %v5260_v54  ;;  %v1908_v9 = vsub.f32 %v5036_v18, %v5226_v44  ;;  %v1741_v36 = vmax.f32 %v1739_v29, %v1740_v21  ;;  %3923 = vpow2.f32 %v2005_v23  ;;  %v1728_v63 = vrot.slane %v1727_v30, 1  ;;  %v872_v21 = vpop.f32.mrf.mxu0 }
 0x166   :  { %3289 = vst [vmem:[%s6123_s8 + $0x68] sm:$0xff] %v3288_v34  ;;  %3331 = vst [vmem:[%s6123_s8 + $0x110] sm:$0xff] %v3330_v28  ;;  %v5271_v34 = vmax.f32 %v1826_v40, %v1827_v48  ;;  %v1572_v28 = vadd.f32 %v3878_v55, %v6261_v62  ;;  %v1547_v60 = vadd.f32 %v4855_v43, %v863_v22  ;;  %3925 = vpow2.f32 %v2007_v7  ;;  %v6265_v43 = vld [vmem:[#allocation13_spill] sm:$0xff]  ;;  %v6267_v22 = vld [vmem:[#allocation14_spill] sm:$0xff] }
 0x167   :  { %6258 = vst [vmem:[#allocation24_spill] sm:$0xff] %v5263_v15  ;;  %6259 = vst [vmem:[#allocation53_spill] sm:$0xff] %v5266_v38  ;;  %v3336_v16 = vld [vmem:[#allocation4 + $0x128] sm:$0xff]  ;;  %v1835_v13 = vmax.f32 %v1833_v24, %v1834_v26  ;;  %v1735_v44 = vrot.slane %v1734_v17, 2  ;;  %v1961_v23 = vmul.f32 1.442695, %v1907_v3  ;;  %v1842_v48 = vmax.f32 %v1840_v8, %v1841_v33 }
 0x168   :  { %1651 = vst.msk [vmem:[#allocation4 + $0x78] sm:$0xff] %vm1083_vm2, %v5263_v15  ;;  %1672 = vst.msk [vmem:[#allocation4 + $0x120] sm:$0xff] %vm1083_vm2, %v5266_v38  ;;  %v5283_v62 = vadd.f32 %v4889_v5, %v1572_v28  ;;  %v5285_v40 = vpop.eup %3915  ;;  %v5288_v55 = vadd.f32 %v4889_v5, %v1547_v60  ;;  %v878_v7 = vadd.f32 %v3765_v41, %v6265_v43  ;;  %v1963_v24 = vmul.f32 1.442695, %v1908_v9  ;;  %v3881_v28 = vpop.f32.mrf.mxu1  ;;  %v6272_v18 = vld [vmem:[#allocation27_spill] sm:$0xff] }
 0x169   :  { %3337 = vst [vmem:[%s6123_s8 + $0x128] sm:$0xff] %v3336_v16  ;;  %6263 = vst [vmem:[#allocation25_spill] sm:$0xff] %v5285_v40  ;;  %v1931_v26 = vsub.f32 %v5092_v12, %v5271_v34  ;;  %v1742_v4 = vrot.slane %v1741_v36, 4  ;;  %v6266_v16 = vld [vmem:[#allocation26_spill] sm:$0xff]  ;;  %v5299_v3 = vmax.f32 %v1727_v30, %v1728_v63  ;;  %v1847_v33 = vsel %vm1684_vm3, %v5266_v38, -inf }
 0x16a   :  { %6262 = vst [vmem:[#allocation12_spill] sm:$0xff] %v5283_v62  ;;  %v3286_v29 = vld [vmem:[#allocation4 + $0x60] sm:$0xff]  ;;  %6264 = vst [vmem:[#allocation54_spill] sm:$0xff] %v5288_v55  ;;  %v1571_v8 = vadd.f32 %v1484_v52, %v6266_v16  ;;  %v1550_v41 = vadd.f32 %v4859_v45, %v878_v7  ;;  %v873_v9 = vadd.f32 %v872_v21, %v6267_v22  ;;  %v1848_v52 = vsel %vm1684_vm3, %v5222_v27, -inf }
 0x16b   :  { %3287 = vst [vmem:[%s6123_s8 + $0x60] sm:$0xff] %v3286_v29  ;;  %1675 = vst.msk [vmem:[#allocation4 + $0x138] sm:$0xff] %vm1083_vm2, %v5283_v62  ;;  %v5307_v60 = vpop.eup %3917  ;;  %v1836_v29 = vrot.slane %v1835_v13, 1  ;;  %v1736_v43 = vmax.f32 %v1734_v17, %v1735_v44  ;;  %v1748_v63 = vsel %vm1684_vm3, %v5288_v55, -inf  ;;  %v1843_v30 = vrot.slane %v1842_v48, 2 }
 0x16c   :  { %1650 = vst.msk [vmem:[#allocation4 + $0x70] sm:$0xff] %vm1083_vm2, %v5288_v55  ;;  %6268 = vst [vmem:[#allocation13_spill] sm:$0xff] %v5307_v60  ;;  %v5314_v16 = vadd.f32 %v4889_v5, %v1550_v41  ;;  %v5317_v12 = vadd.f32 %v4889_v5, %v1571_v8  ;;  %v1549_v45 = vadd.f32 %v4863_v47, %v873_v9  ;;  %v1749_v17 = vsel %vm1684_vm3, %v5263_v15, -inf }
 0x16d   :  { %v5320_v21 = vpop.eup %3919  ;;  %v1743_v7 = vmax.f32 %v1741_v36, %v1742_v4  ;;  %v1849_v22 = vmax.f32 %v1847_v33, %v1848_v52  ;;  %v1574_v60 = vadd.f32 %v3881_v28, %v6272_v18  ;;  %3927 = vpow2.f32 %v1961_v23  ;;  %v3768_v28 = vpop.f32.mrf.mxu0 }
 0x16e   :  { %6269 = vst [vmem:[#allocation26_spill] sm:$0xff] %v5314_v16  ;;  %6270 = vst [vmem:[#allocation14_spill] sm:$0xff] %v5317_v12  ;;  %v5325_v40 = vpop.eup %3921  ;;  %v1932_v41 = vsub.f32 %v5078_v35, %v5271_v34  ;;  %v2009_v8 = vmul.f32 1.442695, %v1931_v26  ;;  %v1750_v36 = vmax.f32 %v1748_v63, %v1749_v17  ;;  %v1909_v18 = vsub.f32 %v5117_v14, %v5299_v3  ;;  %v1494_v52 = vpop.f32.mrf.mxu1  ;;  %v6277_v35 = vld [vmem:[#allocation15_spill] sm:$0xff] }
 0x16f   :  { %6271 = vst [vmem:[#allocation55_spill] sm:$0xff] %v5320_v21  ;;  %v3292_v44 = vld [vmem:[#allocation4 + $0x78] sm:$0xff]  ;;  %6273 = vst [vmem:[#allocation27_spill] sm:$0xff] %v5325_v40  ;;  %v3334_v47 = vld [vmem:[#allocation4 + $0x120] sm:$0xff]  ;;  %v1837_v23 = vmax.f32 %v1835_v13, %v1836_v29  ;;  %v1856_v34 = vsel %vm1684_vm3, %v5317_v12, -inf  ;;  %v5344_v26 = vadd.f32 %v4889_v5, %v1549_v45  ;;  %3929 = vpow2.f32 %v1963_v24 }
 0x170   :  { %3293 = vst [vmem:[%s6123_s8 + $0x78] sm:$0xff] %v3292_v44  ;;  %1653 = vst.msk [vmem:[#allocation4 + $0x88] sm:$0xff] %vm1083_vm2, %v5314_v16  ;;  %v1737_v4 = vrot.slane %v1736_v43, 1  ;;  %v1844_v33 = vmax.f32 %v1842_v48, %v1843_v30  ;;  %v1744_v63 = vrot.slane %v1743_v7, 2  ;;  %v1850_v17 = vrot.slane %v1849_v22, 4 }
 0x171   :  { %1674 = vst.msk [vmem:[#allocation4 + $0x130] sm:$0xff] %vm1083_vm2, %v5317_v12  ;;  %3335 = vst [vmem:[%s6123_s8 + $0x120] sm:$0xff] %v3334_v47  ;;  %v1857_v13 = vsel %vm1684_vm3, %v5283_v62, -inf  ;;  %v5354_v24 = vadd.f32 %v4889_v5, %v1574_v60  ;;  %3931 = vpow2.f32 %v2009_v8  ;;  %v2011_v48 = vmul.f32 1.442695, %v1932_v41 }
 0x172   :  { %6274 = vst [vmem:[#allocation56_spill] sm:$0xff] %v5344_v26  ;;  %v3340_v9 = vld [vmem:[#allocation4 + $0x138] sm:$0xff]  ;;  %1652 = vst.msk [vmem:[#allocation4 + $0x80] sm:$0xff] %vm1083_vm2, %v5344_v26  ;;  %v1751_v29 = vrot.slane %v1750_v36, 4  ;;  %v1858_v30 = vmax.f32 %v1856_v34, %v1857_v13  ;;  %v5359_v45 = vpop.eup %3923  ;;  %v1910_v47 = vsub.f32 %v5100_v25, %v5299_v3  ;;  %v1933_v14 = vsub.f32 %v5139_v19, %v1837_v23  ;;  %v882_v13 = vpop.f32.mrf.mxu0 }
 0x173   :  { %v3290_v44 = vld [vmem:[#allocation4 + $0x70] sm:$0xff]  ;;  %3341 = vst [vmem:[%s6123_s8 + $0x138] sm:$0xff] %v3340_v9  ;;  %6275 = vst [vmem:[#allocation57_spill] sm:$0xff] %v5354_v24  ;;  %v1965_v9 = vmul.f32 1.442695, %v1909_v18  ;;  %v888_v40 = vadd.f32 %v3768_v28, %v6277_v35  ;;  %v5365_v60 = vpop.eup %3925  ;;  %v1934_v41 = vsub.f32 %v5112_v42, %v1837_v23  ;;  %v1738_v8 = vmax.f32 %v1736_v43, %v1737_v4 }
 0x174   :  { %3291 = vst [vmem:[%s6123_s8 + $0x70] sm:$0xff] %v3290_v44  ;;  %6276 = vst [vmem:[#allocation58_spill] sm:$0xff] %v5359_v45  ;;  %v1757_v21 = vsel %vm1684_vm3, %v5344_v26, -inf  ;;  %v6279_v44 = vld [vmem:[#allocation28_spill] sm:$0xff]  ;;  %v3884_v45 = vpop.f32.mrf.mxu1  ;;  %v1845_v46 = vrot.slane %v1844_v33, 1  ;;  %v1745_v54 = vmax.f32 %v1743_v7, %v1744_v63  ;;  %v1851_v3 = vmax.f32 %v1849_v22, %v1850_v17 }
 0x175   :  { %6278 = vst [vmem:[#allocation15_spill] sm:$0xff] %v5365_v60  ;;  %v1573_v34 = vadd.f32 %v1494_v52, %v6279_v44  ;;  %v1758_v18 = vsel %vm1684_vm3, %v5314_v16, -inf  ;;  %v1752_v28 = vmax.f32 %v1750_v36, %v1751_v29  ;;  %v1859_v43 = vrot.slane %v1858_v30, 4  ;;  %v6281_v52 = vld [vmem:[#allocation16_spill] sm:$0xff] }
 0x176   :  { %v1552_v23 = vadd.f32 %v4867_v49, %v888_v40  ;;  %3933 = vpow2.f32 %v2011_v48  ;;  %v1967_v22 = vmul.f32 1.442695, %v1910_v47  ;;  %v1759_v4 = vmax.f32 %v1757_v21, %v1758_v18  ;;  %v1504_v44 = vpop.f32.mrf.mxu1 }
 0x177   :  { %v3296_v19 = vld [vmem:[#allocation4 + $0x88] sm:$0xff]  ;;  %v5381_v7 = vadd.f32 %v4889_v5, %v1573_v34  ;;  %v883_v63 = vadd.f32 %v882_v13, %v6281_v52  ;;  %3935 = vpow2.f32 %v1965_v9  ;;  %v2013_v36 = vmul.f32 1.442695, %v1933_v14 }
 0x178   :  { %v3338_v35 = vld [vmem:[#allocation4 + $0x130] sm:$0xff]  ;;  %3297 = vst [vmem:[%s6123_s8 + $0x88] sm:$0xff] %v3296_v19  ;;  %v1911_v17 = vsub.f32 %v5155_v2, %v1738_v8  ;;  %v5386_v29 = vadd.f32 %v4889_v5, %v1552_v23  ;;  %v1852_v42 = vrot.slane %v1851_v3, 2  ;;  %v2015_v21 = vmul.f32 1.442695, %v1934_v41 }
 0x179   :  { %3339 = vst [vmem:[%s6123_s8 + $0x130] sm:$0xff] %v3338_v35  ;;  %6280 = vst [vmem:[#allocation28_spill] sm:$0xff] %v5381_v7  ;;  %v3294_v19 = vld [vmem:[#allocation4 + $0x80] sm:$0xff]  ;;  %v1846_v35 = vmax.f32 %v1844_v33, %v1845_v46  ;;  %v1865_v49 = vsel %vm1684_vm3, %v5381_v7, -inf  ;;  %v1551_v40 = vadd.f32 %v4871_v51, %v883_v63  ;;  %v1746_v14 = vrot.slane %v1745_v54, 1 }
 0x17a   :  { %6282 = vst [vmem:[#allocation16_spill] sm:$0xff] %v5386_v29  ;;  %3295 = vst [vmem:[%s6123_s8 + $0x80] sm:$0xff] %v3294_v19  ;;  %v1753_v48 = vrot.slane %v1752_v28, 2  ;;  %v1860_v47 = vmax.f32 %v1858_v30, %v1859_v43  ;;  %v5396_v9 = vpop.eup %3927  ;;  %3937 = vpow2.f32 %v1967_v22  ;;  %v1760_v46 = vrot.slane %v1759_v4, 4  ;;  %v3771_v30 = vpop.f32.mrf.mxu0 }
 0x17b   :  { %1655 = vst.msk [vmem:[#allocation4 + $0x98] sm:$0xff] %vm1083_vm2, %v5386_v29  ;;  %v1866_v33 = vsel %vm1684_vm3, %v5354_v24, -inf  ;;  %v5401_v34 = vadd.f32 %v4889_v5, %v1551_v40  ;;  %v1912_v13 = vsub.f32 %v5136_v1, %v1738_v8  ;;  %v1969_v51 = vmul.f32 1.442695, %v1911_v17  ;;  %v3887_v43 = vpop.f32.mrf.mxu1 }
 0x17c   :  { %v1867_v41 = vmax.f32 %v1865_v49, %v1866_v33  ;;  %v1576_v18 = vadd.f32 %v3884_v45, %v4865_v57  ;;  %v5405_v23 = vpop.eup %3929  ;;  %3939 = vpow2.f32 %v2013_v36  ;;  %v1935_v22 = vsub.f32 %v5200_v39, %v1846_v35 }
 0x17d   :  { %6283 = vst [vmem:[#allocation59_spill] sm:$0xff] %v5401_v34  ;;  %v1853_v52 = vmax.f32 %v1851_v3, %v1852_v42  ;;  %1654 = vst.msk [vmem:[#allocation4 + $0x90] sm:$0xff] %vm1083_vm2, %v5401_v34  ;;  %v1747_v63 = vmax.f32 %v1745_v54, %v1746_v14  ;;  %v1754_v19 = vmax.f32 %v1752_v28, %v1753_v48  ;;  %v1861_v40 = vrot.slane %v1860_v47, 2  ;;  %v892_v42 = vpop.f32.mrf.mxu0  ;;  %v1514_v3 = vpop.f32.mrf.mxu1  ;;  %v6285_v14 = vld [vmem:[#allocation17_spill] sm:$0xff] }
 0x17e   :  { %v5411_v8 = vadd.f32 %v4889_v5, %v1576_v18  ;;  %v5413_v17 = vpop.eup %3931  ;;  %3941 = vpow2.f32 %v2015_v21  ;;  %v1761_v57 = vmax.f32 %v1759_v4, %v1760_v46  ;;  %v1924_v45 = vsub.f32 %v4897_v6, %v5045_v32 }
 0x17f   :  { %6284 = vst [vmem:[#allocation60_spill] sm:$0xff] %v5413_v17  ;;  %3943 = vpow2.f32 %v1969_v51  ;;  %v1971_v36 = vmul.f32 1.442695, %v1912_v13  ;;  %v1868_v49 = vrot.slane %v1867_v41, 4  ;;  %v1936_v33 = vsub.f32 %v5158_v10, %v1846_v35  ;;  %v4045_v35 = vld [vmem:[%s6121_s6] ss:$0 sm:$0xff] }
 0x180   :  { %v1854_v54 = vrot.slane %v1853_v52, 1  ;;  %v898_v48 = vadd.f32 %v3771_v30, %v6285_v14  ;;  %v1575_v5 = vadd.f32 %v1504_v44, %v4869_v59  ;;  %v2017_v18 = vmul.f32 1.442695, %v1935_v22  ;;  %v6287_v30 = vld [vmem:[#allocation18_spill] sm:$0xff]  ;;  %v6289_v14 = vld [vmem:[#allocation29_spill] sm:$0xff] }
 0x181   :  { %v1913_v21 = vsub.f32 %v5233_v0, %v1747_v63  ;;  %v1755_v4 = vrot.slane %v1754_v19, 1  ;;  %v1862_v46 = vmax.f32 %v1860_v47, %v1861_v40  ;;  %v1762_v32 = vrot.slane %v1761_v57, 2 }
 0x182   :  { %v3300_v28 = vld [vmem:[#allocation4 + $0x98] sm:$0xff]  ;;  %v1554_v13 = vadd.f32 %v4875_v53, %v898_v48  ;;  %v5428_v51 = vadd.f32 %v4045_v35, %v1575_v5  ;;  %v893_v59 = vadd.f32 %v892_v42, %v6287_v30  ;;  %v1869_v22 = vmax.f32 %v1867_v41, %v1868_v49  ;;  %v3890_v53 = vpop.f32.mrf.mxu1 }
 0x183   :  { %3301 = vst [vmem:[%s6123_s8 + $0x98] sm:$0xff] %v3300_v28  ;;  %v5431_v44 = vpop.eup %3933  ;;  %v1766_v47 = vsel %vm1684_vm3, %v5401_v34, -inf  ;;  %v1578_v28 = vadd.f32 %v3887_v43, %v4873_v61  ;;  %v1577_v0 = vadd.f32 %v1514_v3, %v6289_v14  ;;  %v2019_v39 = vmul.f32 1.442695, %v1936_v33  ;;  %v6291_v61 = vld [vmem:[#allocation30_spill] sm:$0xff] }
 0x184   :  { %6286 = vst [vmem:[#allocation17_spill] sm:$0xff] %v5428_v51  ;;  %6288 = vst [vmem:[#allocation18_spill] sm:$0xff] %v5431_v44  ;;  %v3298_v40 = vld [vmem:[#allocation4 + $0x90] sm:$0xff]  ;;  %v5437_v48 = vpop.eup %3935  ;;  %v1914_v5 = vsub.f32 %v5197_v58, %v1747_v63  ;;  %v1855_v10 = vmax.f32 %v1853_v52, %v1854_v54  ;;  %v5443_v41 = vadd.f32 %v4045_v35, %v1554_v13  ;;  %v1863_v49 = vrot.slane %v1862_v46, 1  ;;  %v1524_v58 = vpop.f32.mrf.mxu1 }
 0x185   :  { %6290 = vst [vmem:[#allocation29_spill] sm:$0xff] %v5437_v48  ;;  %3299 = vst [vmem:[%s6123_s8 + $0x90] sm:$0xff] %v3298_v40  ;;  %v1767_v42 = vsel %vm1684_vm3, %v5386_v29, -inf  ;;  %v1553_v43 = vadd.f32 %v6291_v61, %v893_v59  ;;  %v5448_v3 = vadd.f32 %v4045_v35, %v1578_v28  ;;  %3945 = vpow2.f32 %v1971_v36  ;;  %v6295_v36 = vld [vmem:[#allocation31_spill] sm:$0xff] }
 0x186   :  { %v1763_v30 = vmax.f32 %v1761_v57, %v1762_v32  ;;  %v1768_v33 = vmax.f32 %v1766_v47, %v1767_v42  ;;  %1657 = vst.msk [vmem:[#allocation4 + $0xa8] sm:$0xff] %vm1083_vm2, %v5443_v41  ;;  %v5452_v52 = vadd.f32 %v4045_v35, %v1577_v0  ;;  %v1973_v54 = vmul.f32 1.442695, %v1913_v21 }
 0x187   :  { %6292 = vst [vmem:[#allocation30_spill] sm:$0xff] %v5448_v3  ;;  %v5454_v63 = vpop.eup %3937  ;;  %v1756_v13 = vmax.f32 %v1754_v19, %v1755_v4  ;;  %v1870_v40 = vrot.slane %v1869_v22, 2  ;;  %v5456_v14 = vadd.f32 %v4045_v35, %v1553_v43  ;;  %3947 = vpow2.f32 %v2017_v18 }
 0x188   :  { %6293 = vst [vmem:[#allocation61_spill] sm:$0xff] %v5452_v52  ;;  %6294 = vst [vmem:[#allocation62_spill] sm:$0xff] %v5454_v63  ;;  %v1975_v59 = vmul.f32 1.442695, %v1914_v5  ;;  %v1937_v28 = vsub.f32 %v5266_v38, %v1855_v10  ;;  %v1580_v57 = vadd.f32 %v3890_v53, %v6295_v36  ;;  %v1995_v47 = vmul.f32 1.442695, %v1924_v45 }
 0x189   :  { %v5460_v32 = vpop.eup %3939  ;;  %3949 = vpow2.f32 %v2019_v39  ;;  %v1938_v0 = vsub.f32 %v5222_v27, %v1855_v10  ;;  %v1864_v42 = vmax.f32 %v1862_v46, %v1863_v49  ;;  %1656 = vst.msk [vmem:[#allocation4 + $0xa0] sm:$0xff] %vm1083_vm2, %v5456_v14  ;;  %v1764_v19 = vrot.slane %v1763_v30, 1  ;;  %v6300_v27 = vld [vmem:[#allocation25_spill] sm:$0xff] }
 0x18a   :  { %v1769_v21 = vrot.slane %v1768_v33, 4  ;;  %v5465_v4 = vadd.f32 %v4045_v35, %v1580_v57  ;;  %v1579_v18 = vadd.f32 %v1524_v58, %v4894_v50  ;;  %3951 = vpow2.f32 %v1973_v54 }
 0x18b   :  { %v5468_v5 = vpop.eup %3941  ;;  %v1915_v53 = vsub.f32 %v5288_v55, %v1756_v13  ;;  %v1871_v61 = vmax.f32 %v1869_v22, %v1870_v40  ;;  %3953 = vpow2.f32 %v1975_v59  ;;  %v2021_v10 = vmul.f32 1.442695, %v1937_v28 }
 0x18c   :  { %6296 = vst [vmem:[#allocation31_spill] sm:$0xff] %v5465_v4  ;;  %v5471_v45 = vpop.eup %3943  ;;  %v1916_v39 = vsub.f32 %v5263_v15, %v1756_v13  ;;  %v5474_v46 = vadd.f32 %v4045_v35, %v1579_v18  ;;  %v2023_v49 = vmul.f32 1.442695, %v1938_v0  ;;  %3955 = vpow2.f32 %v1995_v47 }
 0x18d   :  { %6297 = vst [vmem:[#allocation63_spill] sm:$0xff] %v5471_v45  ;;  %v3304_v43 = vld [vmem:[#allocation4 + $0xa8] sm:$0xff]  ;;  %v1939_v36 = vsub.f32 %v5317_v12, %v1864_v42  ;;  %v1765_v50 = vmax.f32 %v1763_v30, %v1764_v19  ;;  %v1770_v58 = vmax.f32 %v1768_v33, %v1769_v21  ;;  %v1874_v22 = vsel %vm1684_vm3, %v5428_v51, -inf }
 0x18e   :  { %3305 = vst [vmem:[%s6123_s8 + $0xa8] sm:$0xff] %v3304_v43  ;;  %v1977_v54 = vmul.f32 1.442695, %v1915_v53  ;;  %v1940_v40 = vsub.f32 %v5283_v62, %v1864_v42  ;;  %v1872_v13 = vrot.slane %v1871_v61, 1  ;;  %v2153_v35 = vsel %vm1684_vm3, %v5237_v31, 0.0 }
 0x18f   :  { %3957 = vpow2.f32 %v2021_v10  ;;  %v1979_v59 = vmul.f32 1.442695, %v1916_v39  ;;  %v1875_v30 = vsel %vm1684_vm3, %v5411_v8, -inf  ;;  %v2154_v28 = vsel %vm1684_vm3, %v5240_v20, 0.0 }
 0x190   :  { %v3302_v33 = vld [vmem:[#allocation4 + $0xa0] sm:$0xff]  ;;  %3959 = vpow2.f32 %v2023_v49  ;;  %v1876_v57 = vmax.f32 %v1874_v22, %v1875_v30  ;;  %v2155_v47 = vadd.f32 %v2154_v28, %v2153_v35  ;;  %v2045_v0 = vsel %vm1684_vm3, %v5224_v37, 0.0  ;;  %v6298_v28 = vld [vmem:[#allocation11_spill] sm:$0xff] }
 0x191   :  { %3303 = vst [vmem:[%s6123_s8 + $0xa0] sm:$0xff] %v3302_v33  ;;  %v2025_v42 = vmul.f32 1.442695, %v1939_v36  ;;  %v1917_v19 = vsub.f32 %v5344_v26, %v1765_v50  ;;  %v1771_v21 = vrot.slane %v1770_v58, 2  ;;  %v2046_v18 = vsel %vm1684_vm3, %v5228_v56, 0.0 }
 0x192   :  { %v5497_v53 = vpop.eup %3945  ;;  %3961 = vpow2.f32 %v1977_v54  ;;  %v2027_v10 = vmul.f32 1.442695, %v1940_v40  ;;  %v1873_v39 = vmax.f32 %v1871_v61, %v1872_v13  ;;  %v2156_v49 = vrot.slane %v2155_v47, 4 }
 0x193   :  { %3963 = vpow2.f32 %v1979_v59  ;;  %v1918_v43 = vsub.f32 %v5314_v16, %v1765_v50  ;;  %v2047_v22 = vadd.f32 %v2046_v18, %v2045_v0  ;;  %v1877_v30 = vrot.slane %v1876_v57, 4 }
 0x194   :  { %v5500_v35 = vpop.eup %3947  ;;  %v2157_v36 = vadd.f32 %v2156_v49, %v2155_v47  ;;  %v2054_v33 = vsel %vm1684_vm3, %v5244_v11, 0.0  ;;  %v2055_v26 = vsel %vm1684_vm3, %v6298_v28, 0.0  ;;  %3965 = vpow2.f32 %v2025_v42  ;;  %v6299_v42 = vld [vmem:[#allocation9_spill] sm:$0xff] }
 0x195   :  { %v1981_v54 = vmul.f32 1.442695, %v1917_v19  ;;  %v1772_v61 = vmax.f32 %v1770_v58, %v1771_v21  ;;  %v2048_v40 = vrot.slane %v2047_v22, 4  ;;  %3967 = vpow2.f32 %v2027_v10 }
 0x196   :  { %v5506_v12 = vpop.eup %3949  ;;  %v1941_v50 = vsub.f32 %v5381_v7, %v1873_v39  ;;  %v2158_v13 = vrot.slane %v2157_v36, 2  ;;  %v1983_v0 = vmul.f32 1.442695, %v1918_v43  ;;  %v1942_v47 = vsub.f32 %v5354_v24, %v1873_v39 }
 0x197   :  { %v5509_v59 = vpop.eup %3951  ;;  %v1775_v18 = vsel %vm1684_vm3, %v5456_v14, -inf  ;;  %v2056_v49 = vadd.f32 %v2055_v26, %v2054_v33  ;;  %v1878_v62 = vmax.f32 %v1876_v57, %v1877_v30  ;;  %v1883_v58 = vsel %vm1684_vm3, %v5452_v52, -inf }
 0x198   :  { %v5514_v16 = vpop.eup %3953  ;;  %v2144_v19 = vsel %vm1684_vm3, %v6299_v42, 0.0  ;;  %v2049_v21 = vadd.f32 %v2048_v40, %v2047_v22  ;;  %3969 = vpow2.f32 %v1981_v54  ;;  %v1773_v43 = vrot.slane %v1772_v61, 1 }
 0x199   :  { %v5520_v10 = vpop.eup %3955  ;;  %v1776_v39 = vsel %vm1684_vm3, %v5443_v41, -inf  ;;  %v2159_v7 = vadd.f32 %v2158_v13, %v2157_v36  ;;  %v2029_v24 = vmul.f32 1.442695, %v1941_v50  ;;  %v1884_v57 = vsel %vm1684_vm3, %v5448_v3, -inf }
 0x19a   :  { %v1777_v26 = vmax.f32 %v1775_v18, %v1776_v39  ;;  %v2145_v30 = vsel %vm1684_vm3, %v5520_v10, 0.0  ;;  %v1885_v33 = vmax.f32 %v1883_v58, %v1884_v57  ;;  %v2050_v15 = vrot.slane %v2049_v21, 2  ;;  %v6301_v57 = vld [vmem:[#allocation13_spill] sm:$0xff] }
 0x19b   :  { %v2146_v55 = vadd.f32 %v2145_v30, %v2144_v19  ;;  %v2057_v22 = vrot.slane %v2056_v49, 4  ;;  %3971 = vpow2.f32 %v1983_v0  ;;  %v5530_v54 = vmul.f32 1.442695, %v1942_v47 }
 0x19c   :  { %v5528_v40 = vpop.eup %3957  ;;  %v1879_v38 = vrot.slane %v1878_v62, 2  ;;  %v2162_v36 = vsel %vm1684_vm3, %v6300_v27, 0.0  ;;  %v2160_v18 = vrot.slane %v2159_v7, 1  ;;  %v2051_v39 = vadd.f32 %v2050_v15, %v2049_v21 }
 0x19d   :  { %v5534_v50 = vpop.eup %3959  ;;  %v2147_v13 = vrot.slane %v2146_v55, 4  ;;  %v2058_v2 = vadd.f32 %v2057_v22, %v2056_v49  ;;  %3973 = vpow2.f32 %v2029_v24  ;;  %v5536_v58 = vmax.f32 %v1772_v61, %v1773_v43  ;;  %v6304_v49 = vld [vmem:[#allocation55_spill] sm:$0xff] }
 0x19e   :  { %v1778_v19 = vrot.slane %v1777_v26, 4  ;;  %v2163_v30 = vsel %vm1684_vm3, %v6301_v57, 0.0  ;;  %v1886_v47 = vrot.slane %v1885_v33, 4  ;;  %v2052_v25 = vrot.slane %v2051_v39, 1  ;;  %v6305_v61 = vld [vmem:[#allocation27_spill] sm:$0xff] }
 0x19f   :  { %v5540_v0 = vpop.eup %3961  ;;  %v2148_v1 = vadd.f32 %v2147_v13, %v2146_v55  ;;  %v2059_v6 = vrot.slane %v2058_v2, 2  ;;  %v1893_v31 = vsel %vm1684_vm3, %v5465_v4, -inf  ;;  %v2164_v15 = vadd.f32 %v2163_v30, %v2162_v36 }
 0x1a0   :  { %6302 = vst [vmem:[#allocation9_spill] sm:$0xff] %v5540_v0  ;;  %v5542_v27 = vpop.eup %3963  ;;  %v2063_v24 = vsel %vm1684_vm3, %v6304_v49, 0.0  ;;  %v2064_v21 = vsel %vm1684_vm3, %v6305_v61, 0.0  ;;  %v1880_v43 = vmax.f32 %v1878_v62, %v1879_v38  ;;  %v2161_v57 = vadd.f32 %v2160_v18, %v2159_v7  ;;  %v6306_v0 = vld [vmem:[#allocation58_spill] sm:$0xff] }
 0x1a1   :  { %6303 = vst [vmem:[#allocation64_spill] sm:$0xff] %v5542_v27  ;;  %v2149_v22 = vrot.slane %v2148_v1, 2  ;;  %v2060_v28 = vadd.f32 %v2059_v6, %v2058_v2  ;;  %v5550_v3 = vpop.eup %3965  ;;  %v2165_v55 = vrot.slane %v2164_v15, 4  ;;  %v2065_v13 = vadd.f32 %v2064_v21, %v2063_v24 }
 0x1a2   :  { %v2171_v27 = vsel %vm1684_vm3, %v6306_v0, 0.0  ;;  %v2172_v36 = vsel %vm1684_vm3, %v5365_v60, 0.0  ;;  %v5556_v30 = vpop.eup %3967  ;;  %v2053_v4 = vadd.f32 %v2052_v25, %v2051_v39  ;;  %v2072_v6 = vsel %vm1684_vm3, %v5396_v9, 0.0 }
 0x1a3   :  { %v2150_v49 = vadd.f32 %v2149_v22, %v2148_v1  ;;  %v2061_v52 = vrot.slane %v2060_v28, 1  ;;  %v2173_v61 = vadd.f32 %v2172_v36, %v2171_v27  ;;  %v2166_v38 = vadd.f32 %v2165_v55, %v2164_v15 }
 0x1a4   :  { %v2066_v62 = vrot.slane %v2065_v13, 4  ;;  %v2073_v2 = vsel %vm1684_vm3, %v5405_v23, 0.0  ;;  %v1779_v7 = vmax.f32 %v1777_v26, %v1778_v19  ;;  %v1887_v60 = vmax.f32 %v1885_v33, %v1886_v47 }
 0x1a5   :  { %v2151_v18 = vrot.slane %v2150_v49, 1  ;;  %v2174_v24 = vrot.slane %v2173_v61, 4  ;;  %v2074_v21 = vadd.f32 %v2073_v2, %v2072_v6  ;;  %v5562_v0 = vpop.eup %3969  ;;  %v1892_v25 = vsel %vm1684_vm3, %v5474_v46, -inf }
 0x1a6   :  { %3975 = vrcp.f32 %v2161_v57  ;;  %v2167_v1 = vrot.slane %v2166_v38, 2  ;;  %v2067_v39 = vadd.f32 %v2066_v62, %v2065_v13  ;;  %v2180_v15 = vsel %vm1684_vm3, %v5413_v17, 0.0 }
 0x1a7   :  { %v2152_v27 = vadd.f32 %v2151_v18, %v2150_v49  ;;  %v2181_v22 = vsel %vm1684_vm3, %v5431_v44, 0.0  ;;  %v1881_v26 = vrot.slane %v1880_v43, 1  ;;  %3977 = vrcp.f32 %v2053_v4 }
 0x1a8   :  { %v2062_v19 = vadd.f32 %v2061_v52, %v2060_v28  ;;  %v2175_v55 = vadd.f32 %v2174_v24, %v2173_v61  ;;  %v5570_v36 = vpop.eup %3971  ;;  %v2075_v33 = vrot.slane %v2074_v21, 4  ;;  %v2081_v57 = vsel %vm1684_vm3, %v5437_v48, 0.0 }
 0x1a9   :  { %3979 = vrcp.f32 %v2152_v27  ;;  %v2082_v47 = vsel %vm1684_vm3, %v5454_v63, 0.0  ;;  %v1919_v49 = vsub.f32 %v5401_v34, %v5536_v58  ;;  %v1920_v13 = vsub.f32 %v5386_v29, %v5536_v58 }
 0x1aa   :  { %v1894_v62 = vmax.f32 %v1892_v25, %v1893_v31  ;;  %v2182_v4 = vadd.f32 %v2181_v22, %v2180_v15  ;;  %v5580_v52 = vpop.eup %3973  ;;  %3981 = vpow2.f32 %v5530_v54  ;;  %v2168_v28 = vadd.f32 %v2167_v1, %v2166_v38 }
 0x1ab   :  { %v2068_v61 = vrot.slane %v2067_v39, 2  ;;  %v1780_v6 = vrot.slane %v1779_v7, 2  ;;  %v1888_v2 = vrot.slane %v1887_v60, 2  ;;  %v2176_v18 = vrot.slane %v2175_v55, 2 }
 0x1ac   :  { %v2083_v24 = vadd.f32 %v2082_v47, %v2081_v57  ;;  %v1882_v27 = vmax.f32 %v1880_v43, %v1881_v26  ;;  %3983 = vrcp.f32 %v2062_v19  ;;  %v2076_v48 = vadd.f32 %v2075_v33, %v2074_v21 }
 0x1ad   :  { %v1985_v63 = vmul.f32 1.442695, %v1919_v49  ;;  %v1987_v34 = vmul.f32 1.442695, %v1920_v13  ;;  %v1895_v17 = vrot.slane %v1894_v62, 4  ;;  %v2183_v44 = vrot.slane %v2182_v4, 4 }
 0x1ae   :  { %v2169_v58 = vrot.slane %v2168_v28, 1  ;;  %v2069_v31 = vadd.f32 %v2068_v61, %v2067_v39  ;;  %v2189_v25 = vsel %vm1684_vm3, %v5460_v32, 0.0  ;;  %v2190_v54 = vsel %vm1684_vm3, %v5468_v5, 0.0 }
 0x1af   :  { %v1781_v38 = vmax.f32 %v1779_v7, %v1780_v6  ;;  %v1889_v1 = vmax.f32 %v1887_v60, %v1888_v2  ;;  %v2177_v15 = vadd.f32 %v2176_v18, %v2175_v55  ;;  %v2084_v22 = vrot.slane %v2083_v24, 4 }
 0x1b0   :  { %v1943_v43 = vsub.f32 %v5428_v51, %v1882_v27  ;;  %v2077_v26 = vrot.slane %v2076_v48, 2  ;;  %v2090_v21 = vsel %vm1684_vm3, %v5471_v45, 0.0  ;;  %v2091_v19 = vsel %vm1684_vm3, %v5497_v53, 0.0 }
 0x1b1   :  { %3985 = vpow2.f32 %v1985_v63  ;;  %v2184_v39 = vadd.f32 %v2183_v44, %v2182_v4  ;;  %v2191_v33 = vadd.f32 %v2190_v54, %v2189_v25  ;;  %v1944_v7 = vsub.f32 %v5411_v8, %v1882_v27 }
 0x1b2   :  { %3987 = vpow2.f32 %v1987_v34  ;;  %v2170_v60 = vadd.f32 %v2169_v58, %v2168_v28  ;;  %v2070_v55 = vrot.slane %v2069_v31, 1  ;;  %v1896_v47 = vmax.f32 %v1894_v62, %v1895_v17 }
 0x1b3   :  { %v5592_v57 = vpop.eup %3975  ;;  %v2178_v49 = vrot.slane %v2177_v15, 1  ;;  %v2085_v13 = vadd.f32 %v2084_v22, %v2083_v24  ;;  %v2092_v61 = vadd.f32 %v2091_v19, %v2090_v21  ;;  %v2033_v2 = vmul.f32 1.442695, %v1943_v43 }
 0x1b4   :  { %v3978_v6 = vpop.eup %3977  ;;  %v1782_v18 = vrot.slane %v1781_v38, 1  ;;  %v1890_v51 = vrot.slane %v1889_v1, 1  ;;  %v2078_v29 = vadd.f32 %v2077_v26, %v2076_v48  ;;  %v2185_v63 = vrot.slane %v2184_v39, 2 }
 0x1b5   :  { %v2192_v44 = vrot.slane %v2191_v33, 4  ;;  %v2198_v4 = vsel %vm1684_vm3, %v5500_v35, 0.0  ;;  %v2199_v34 = vsel %vm1684_vm3, %v5506_v12, 0.0  ;;  %3989 = vrcp.f32 %v2170_v60 }
 0x1b6   :  { %v3980_v45 = vpop.eup %3979  ;;  %v2071_v62 = vadd.f32 %v2070_v55, %v2069_v31  ;;  %v1897_v27 = vrot.slane %v1896_v47, 2  ;;  %v2179_v58 = vadd.f32 %v2178_v49, %v2177_v15  ;;  %v2086_v48 = vrot.slane %v2085_v13, 2 }
 0x1b7   :  { %v2308_v28 = vmul.f32 %v3980_v45, %v5520_v10  ;;  %v2307_v17 = vmul.f32 %v3980_v45, %v6299_v42  ;;  %v5601_v24 = vpop.eup %3981  ;;  %v2093_v25 = vrot.slane %v2092_v61, 4  ;;  %v2310_v54 = vmul.f32 %v5592_v57, %v5240_v20 }
 0x1b8   :  { %v2285_v22 = vmul.f32 %v3978_v6, %v5224_v37  ;;  %v2079_v43 = vrot.slane %v2078_v29, 1  ;;  %v2200_v26 = vadd.f32 %v2199_v34, %v2198_v4  ;;  %v2186_v21 = vadd.f32 %v2185_v63, %v2184_v39 }
 0x1b9   :  { %2450 = vperm.xlu1 %3900, %v2308_v28   ;;  %2445 = vperm.xlu0 %3899, %v2307_v17   ;;  %v3984_v10 = vpop.eup %3983  ;;  %v2193_v45 = vadd.f32 %v2192_v44, %v2191_v33  ;;  %v2099_v42 = vsel %vm1684_vm3, %v5509_v59, 0.0  ;;  %v2100_v31 = vsel %vm1684_vm3, %v5514_v16, 0.0  ;;  %v2035_v15 = vmul.f32 1.442695, %v1944_v7 }
 0x1ba   :  { %v1783_v19 = vmax.f32 %v1781_v38, %v1782_v18  ;;  %v1891_v60 = vmax.f32 %v1889_v1, %v1890_v51  ;;  %3991 = vrcp.f32 %v2071_v62  ;;  %v1898_v55 = vmax.f32 %v1896_v47, %v1897_v27  ;;  %v6307_v47 = vld [vmem:[#allocation61_spill] sm:$0xff] }
 0x1bb   :  { %3993 = vrcp.f32 %v2179_v58  ;;  %v2087_v20 = vadd.f32 %v2086_v48, %v2085_v13  ;;  %v2094_v49 = vadd.f32 %v2093_v25, %v2092_v61  ;;  %v2287_v37 = vmul.f32 %v3984_v10, %v5244_v11  ;;  %v6308_v48 = vld [vmem:[#allocation9_spill] sm:$0xff] }
 0x1bc   :  { %v2080_v39 = vadd.f32 %v2079_v43, %v2078_v29  ;;  %v2201_v33 = vrot.slane %v2200_v26, 4  ;;  %v2101_v63 = vadd.f32 %v2100_v31, %v2099_v42  ;;  %v2187_v44 = vrot.slane %v2186_v21, 1  ;;  %v6311_v42 = vld [vmem:[#allocation11_spill] sm:$0xff] }
 0x1bd   :  { %2460 = vperm.xlu1 %3900, %v2310_v54   ;;  %2335 = vperm.xlu0 %3899, %v2285_v22   ;;  %v2194_v4 = vrot.slane %v2193_v45, 2  ;;  %v2207_v34 = vsel %vm1684_vm3, %v5528_v40, 0.0  ;;  %v2208_v51 = vsel %vm1684_vm3, %v5534_v50, 0.0  ;;  %3995 = vpow2.f32 %v2033_v2  ;;  %v6309_v54 = vld [vmem:[#allocation64_spill] sm:$0xff]  ;;  %v6310_v22 = vld [vmem:[#allocation30_spill] sm:$0xff] }
 0x1be   :  { %v5615_v38 = vpop.eup %3985  ;;  %v1921_v1 = vsub.f32 %v5456_v14, %v1783_v19  ;;  %v1922_v7 = vsub.f32 %v5443_v41, %v1783_v19  ;;  %v2286_v11 = vmul.f32 %v3978_v6, %v5228_v56  ;;  %v1945_v13 = vsub.f32 %v6307_v47, %v1891_v60  ;;  %v6312_v19 = vld [vmem:[#allocation52_spill] sm:$0xff] }
 0x1bf   :  { %v5620_v29 = vpop.eup %3987  ;;  %v1899_v61 = vrot.slane %v1898_v55, 1  ;;  %v2088_v18 = vrot.slane %v2087_v20, 1  ;;  %v2095_v28 = vrot.slane %v2094_v49, 2  ;;  %3997 = vrcp.f32 %v2080_v39 }
 0x1c0   :  { %v2202_v17 = vadd.f32 %v2201_v33, %v2200_v26  ;;  %v2102_v62 = vrot.slane %v2101_v63, 4  ;;  %v2209_v27 = vadd.f32 %v2208_v51, %v2207_v34  ;;  %v2188_v2 = vadd.f32 %v2187_v44, %v2186_v21 }
 0x1c1   :  { %2345 = vperm.xlu1 %3900, %v2287_v37   ;;  %2340 = vperm.xlu0 %3899, %v2286_v11   ;;  %v2195_v58 = vadd.f32 %v2194_v4, %v2193_v45  ;;  %v2108_v25 = vsel %vm1684_vm3, %v6308_v48, 0.0  ;;  %v2109_v56 = vsel %vm1684_vm3, %v6309_v54, 0.0  ;;  %v1989_v6 = vmul.f32 1.442695, %v1921_v1  ;;  %v6313_v11 = vld [vmem:[#allocation13_spill] sm:$0xff] }
 0x1c2   :  { %v1946_v43 = vsub.f32 %v6310_v22, %v1891_v60  ;;  %v2288_v31 = vmul.f32 %v3984_v10, %v6311_v42  ;;  %v2309_v37 = vmul.f32 %v5592_v57, %v6312_v19  ;;  %v3990_v39 = vpop.eup %3989  ;;  %3999 = vpow2.f32 %v2035_v15  ;;  %v6314_v57 = vld [vmem:[#allocation25_spill] sm:$0xff] }
 0x1c3   :  { %v1991_v26 = vmul.f32 1.442695, %v1922_v7  ;;  %v2089_v33 = vadd.f32 %v2088_v18, %v2087_v20  ;;  %v2096_v21 = vadd.f32 %v2095_v28, %v2094_v49  ;;  %v2203_v45 = vrot.slane %v2202_v17, 2 }
 0x1c4   :  { %v2103_v44 = vadd.f32 %v2102_v62, %v2101_v63  ;;  %v2210_v4 = vrot.slane %v2209_v27, 4  ;;  %v2110_v34 = vadd.f32 %v2109_v56, %v2108_v25  ;;  %v2037_v51 = vmul.f32 1.442695, %v1945_v13  ;;  %v6315_v62 = vld [vmem:[#allocation31_spill] sm:$0xff] }
 0x1c5   :  { %2350 = vperm.xlu1 %3900, %v2288_v31   ;;  %2455 = vperm.xlu0 %3899, %v2309_v37   ;;  %v1900_v1 = vmax.f32 %v1898_v55, %v1899_v61  ;;  %4001 = vrcp.f32 %v2188_v2  ;;  %v2196_v60 = vrot.slane %v2195_v58, 1  ;;  %v2039_v10 = vmul.f32 1.442695, %v1946_v43  ;;  %v6316_v56 = vld [vmem:[#allocation27_spill] sm:$0xff] }
 0x1c6   :  { %4003 = vpow2.f32 %v1989_v6  ;;  %v2312_v42 = vmul.f32 %v3990_v39, %v6313_v11  ;;  %v2311_v19 = vmul.f32 %v3990_v39, %v6314_v57  ;;  %v2097_v20 = vrot.slane %v2096_v21, 1  ;;  %v6317_v43 = vld [vmem:[#allocation55_spill] sm:$0xff] }
 0x1c7   :  { %v3992_v15 = vpop.eup %3991  ;;  %4005 = vrcp.f32 %v2089_v33  ;;  %v2216_v49 = vsel %vm1684_vm3, %v5550_v3, 0.0  ;;  %v2217_v63 = vsel %vm1684_vm3, %v5556_v30, 0.0  ;;  %v2204_v55 = vadd.f32 %v2203_v45, %v2202_v17 }
 0x1c8   :  { %v3994_v7 = vpop.eup %3993  ;;  %v2104_v13 = vrot.slane %v2103_v44, 2  ;;  %v2211_v61 = vadd.f32 %v2210_v4, %v2209_v27  ;;  %v2111_v18 = vrot.slane %v2110_v34, 4  ;;  %4007 = vpow2.f32 %v1991_v26 }
 0x1c9   :  { %2470 = vperm.xlu1 %3900, %v2312_v42   ;;  %2465 = vperm.xlu0 %3899, %v2311_v19   ;;  %v1947_v28 = vsub.f32 %v5474_v46, %v1900_v1  ;;  %v1948_v2 = vsub.f32 %v6315_v62, %v1900_v1  ;;  %v2197_v25 = vadd.f32 %v2196_v60, %v2195_v58  ;;  %4009 = vpow2.f32 %v2037_v51  ;;  %v6318_v60 = vld [vmem:[#allocation15_spill] sm:$0xff]  ;;  %v6319_v42 = vld [vmem:[#allocation58_spill] sm:$0xff] }
 0x1ca   :  { %v2290_v6 = vmul.f32 %v3992_v15, %v6316_v56  ;;  %v2289_v31 = vmul.f32 %v3992_v15, %v6317_v43  ;;  %v2218_v37 = vadd.f32 %v2217_v63, %v2216_v49  ;;  %v5641_v39 = vpop.eup %3995  ;;  %4011 = vpow2.f32 %v2039_v10 }
 0x1cb   :  { %v2098_v33 = vadd.f32 %v2097_v20, %v2096_v21  ;;  %v2117_v17 = vsel %vm1684_vm3, %v5562_v0, 0.0  ;;  %v2118_v27 = vsel %vm1684_vm3, %v5570_v36, 0.0  ;;  %v2205_v26 = vrot.slane %v2204_v55, 1 }
 0x1cc   :  { %v2105_v58 = vadd.f32 %v2104_v13, %v2103_v44  ;;  %v2212_v45 = vrot.slane %v2211_v61, 2  ;;  %v2112_v4 = vadd.f32 %v2111_v18, %v2110_v34  ;;  %v3998_v51 = vpop.eup %3997  ;;  %v2041_v1 = vmul.f32 1.442695, %v1947_v28 }
 0x1cd   :  { %2360 = vperm.xlu1 %3900, %v2290_v6   ;;  %2355 = vperm.xlu0 %3899, %v2289_v31   ;;  %v2314_v11 = vmul.f32 %v3994_v7, %v6318_v60  ;;  %v2313_v57 = vmul.f32 %v3994_v7, %v6319_v42  ;;  %4013 = vrcp.f32 %v2197_v25  ;;  %v2219_v21 = vrot.slane %v2218_v37, 4 }
 0x1ce   :  { %v2119_v10 = vadd.f32 %v2118_v27, %v2117_v17  ;;  %v2225_v19 = vsel %vm1684_vm3, %v5580_v52, 0.0  ;;  %v2226_v15 = vsel %vm1684_vm3, %v5601_v24, 0.0  ;;  %v2043_v20 = vmul.f32 1.442695, %v1948_v2 }
 0x1cf   :  { %4015 = vrcp.f32 %v2098_v33  ;;  %v5653_v44 = vpop.eup %3999  ;;  %v2206_v34 = vadd.f32 %v2205_v26, %v2204_v55  ;;  %v2106_v49 = vrot.slane %v2105_v58, 1  ;;  %v2213_v63 = vadd.f32 %v2212_v45, %v2211_v61  ;;  %v6320_v33 = vld [vmem:[#allocation18_spill] sm:$0xff] }
 0x1d0   :  { %v2113_v13 = vrot.slane %v2112_v4, 2  ;;  %4017 = vpow2.f32 %v2041_v1  ;;  %v2292_v7 = vmul.f32 %v3998_v51, %v5405_v23  ;;  %v2291_v18 = vmul.f32 %v3998_v51, %v5396_v9 }
 0x1d1   :  { %2480 = vperm.xlu1 %3900, %v2314_v11   ;;  %2475 = vperm.xlu0 %3899, %v2313_v57   ;;  %v2227_v28 = vadd.f32 %v2226_v15, %v2225_v19  ;;  %v2220_v56 = vadd.f32 %v2219_v21, %v2218_v37  ;;  %v2120_v6 = vrot.slane %v2119_v10, 4  ;;  %v2126_v2 = vsel %vm1684_vm3, %v5615_v38, 0.0  ;;  %v6321_v37 = vld [vmem:[#allocation60_spill] sm:$0xff] }
 0x1d2   :  { %v4002_v25 = vpop.eup %4001  ;;  %v2127_v43 = vsel %vm1684_vm3, %v5620_v29, 0.0  ;;  %4019 = vpow2.f32 %v2043_v20  ;;  %v2107_v23 = vadd.f32 %v2106_v49, %v2105_v58  ;;  %v2214_v61 = vrot.slane %v2213_v63, 1  ;;  %v6323_v20 = vld [vmem:[#allocation29_spill] sm:$0xff] }
 0x1d3   :  { %v5661_v31 = vpop.eup %4003  ;;  %4021 = vrcp.f32 %v2206_v34  ;;  %v2114_v9 = vadd.f32 %v2113_v13, %v2112_v4  ;;  %v2316_v17 = vmul.f32 %v4002_v25, %v6320_v33  ;;  %v2315_v27 = vmul.f32 %v4002_v25, %v6321_v37  ;;  %v6322_v4 = vld [vmem:[#allocation62_spill] sm:$0xff] }
 0x1d4   :  { %v4006_v55 = vpop.eup %4005  ;;  %v2228_v26 = vrot.slane %v2227_v28, 4  ;;  %v2128_v45 = vadd.f32 %v2127_v43, %v2126_v2  ;;  %v2221_v1 = vrot.slane %v2220_v56, 2  ;;  %v2121_v60 = vadd.f32 %v2120_v6, %v2119_v10 }
 0x1d5   :  { %2370 = vperm.xlu1 %3900, %v2292_v7   ;;  %2365 = vperm.xlu0 %3899, %v2291_v18   ;;  %v5665_v51 = vpop.eup %4007  ;;  %v2234_v11 = vsel %vm1684_vm3, %v5641_v39, 0.0  ;;  %v2235_v42 = vsel %vm1684_vm3, %v5653_v44, 0.0  ;;  %v2294_v21 = vmul.f32 %v4006_v55, %v6322_v4  ;;  %4023 = vrcp.f32 %v2107_v23 }
 0x1d6   :  { %v5671_v57 = vpop.eup %4009  ;;  %v2215_v19 = vadd.f32 %v2214_v61, %v2213_v63  ;;  %v2115_v15 = vrot.slane %v2114_v9, 1  ;;  %v2293_v34 = vmul.f32 %v4006_v55, %v6323_v20  ;;  %v2229_v10 = vadd.f32 %v2228_v26, %v2227_v28 }
 0x1d7   :  { %v5673_v58 = vpop.eup %4011  ;;  %v2129_v49 = vrot.slane %v2128_v45, 4  ;;  %v2236_v13 = vadd.f32 %v2235_v42, %v2234_v11  ;;  %v2222_v18 = vadd.f32 %v2221_v1, %v2220_v56  ;;  %v2122_v25 = vrot.slane %v2121_v60, 2 }
 0x1d8   :  { %v2135_v6 = vsel %vm1684_vm3, %v5661_v31, 0.0  ;;  %v2136_v2 = vsel %vm1684_vm3, %v5665_v51, 0.0  ;;  %4025 = vrcp.f32 %v2215_v19  ;;  %v2116_v63 = vadd.f32 %v2115_v15, %v2114_v9 }
 0x1d9   :  { %2490 = vperm.xlu1 %3900, %v2316_v17   ;;  %2485 = vperm.xlu0 %3899, %v2315_v27   ;;  %v2230_v23 = vrot.slane %v2229_v10, 2  ;;  %v2130_v61 = vadd.f32 %v2129_v49, %v2128_v45  ;;  %v2237_v55 = vrot.slane %v2236_v13, 4  ;;  %v2137_v28 = vadd.f32 %v2136_v2, %v2135_v6 }
 0x1da   :  { %v4014_v7 = vpop.eup %4013  ;;  %v2223_v37 = vrot.slane %v2222_v18, 1  ;;  %v2123_v27 = vadd.f32 %v2122_v25, %v2121_v60  ;;  %v2243_v26 = vsel %vm1684_vm3, %v5671_v57, 0.0  ;;  %v2244_v1 = vsel %vm1684_vm3, %v5673_v58, 0.0 }
 0x1db   :  { %v2318_v56 = vmul.f32 %v4014_v7, %v5468_v5  ;;  %v2317_v17 = vmul.f32 %v4014_v7, %v5460_v32  ;;  %4027 = vrcp.f32 %v2116_v63  ;;  %v2231_v42 = vadd.f32 %v2230_v23, %v2229_v10 }
 0x1dc   :  { %v4016_v43 = vpop.eup %4015  ;;  %v2131_v5 = vrot.slane %v2130_v61, 2  ;;  %v2238_v4 = vadd.f32 %v2237_v55, %v2236_v13  ;;  %v2138_v32 = vrot.slane %v2137_v28, 4  ;;  %v2224_v19 = vadd.f32 %v2223_v37, %v2222_v18 }
 0x1dd   :  { %2380 = vperm.xlu1 %3900, %v2294_v21   ;;  %2375 = vperm.xlu0 %3899, %v2293_v34   ;;  %v5681_v33 = vpop.eup %4017  ;;  %v2296_v9 = vmul.f32 %v4016_v43, %v5497_v53  ;;  %v6324_v21 = vld [vmem:[#allocation63_spill] sm:$0xff]  ;;  %v2124_v15 = vrot.slane %v2123_v27, 1  ;;  %v2245_v20 = vadd.f32 %v2244_v1, %v2243_v26  ;;  %v2232_v13 = vrot.slane %v2231_v42, 1 }
 0x1de   :  { %v2295_v60 = vmul.f32 %v4016_v43, %v6324_v21  ;;  %v2252_v34 = vsel %vm1684_vm3, %v5681_v33, 0.0  ;;  %v2132_v25 = vadd.f32 %v2131_v5, %v2130_v61  ;;  %v2239_v6 = vrot.slane %v2238_v4, 2 }
 0x1df   :  { %v5689_v11 = vpop.eup %4019  ;;  %v2139_v2 = vadd.f32 %v2138_v32, %v2137_v28  ;;  %4029 = vrcp.f32 %v2224_v19  ;;  %v2125_v18 = vadd.f32 %v2124_v15, %v2123_v27  ;;  %v2246_v43 = vrot.slane %v2245_v20, 4 }
 0x1e0   :  { %v4022_v45 = vpop.eup %4021  ;;  %v2253_v49 = vsel %vm1684_vm3, %v5689_v11, 0.0  ;;  %v2240_v37 = vadd.f32 %v2239_v6, %v2238_v4 }
 0x1e1   :  { %2500 = vperm.xlu1 %3900, %v2318_v56   ;;  %2495 = vperm.xlu0 %3899, %v2317_v17   ;;  %v2320_v53 = vmul.f32 %v4022_v45, %v5506_v12  ;;  %v2319_v10 = vmul.f32 %v4022_v45, %v5500_v35  ;;  %v2254_v63 = vadd.f32 %v2253_v49, %v2252_v34  ;;  %v2133_v17 = vrot.slane %v2132_v25, 1 }
 0x1e2   :  { %v4024_v7 = vpop.eup %4023  ;;  %v2233_v56 = vadd.f32 %v2232_v13, %v2231_v42  ;;  %v2140_v12 = vrot.slane %v2139_v2, 2  ;;  %4031 = vrcp.f32 %v2125_v18  ;;  %v2247_v26 = vadd.f32 %v2246_v43, %v2245_v20 }
 0x1e3   :  { %v2298_v23 = vmul.f32 %v4024_v7, %v5514_v16  ;;  %v2297_v35 = vmul.f32 %v4024_v7, %v5509_v59  ;;  %v2255_v61 = vrot.slane %v2254_v63, 4  ;;  %v2134_v27 = vadd.f32 %v2133_v17, %v2132_v25 }
 0x1e4   :  { %4033 = vrcp.f32 %v2233_v56  ;;  %v2241_v1 = vrot.slane %v2240_v37, 1  ;;  %v2248_v42 = vrot.slane %v2247_v26, 2  ;;  %v2895_v56 = vlaneseq }
 0x1e5   :  { %2390 = vperm.xlu1 %3900, %v2296_v9   ;;  %2385 = vperm.xlu0 %3899, %v2295_v60   ;;  %v4026_v55 = vpop.eup %4025  ;;  %v2141_v9 = vadd.f32 %v2140_v12, %v2139_v2  ;;  %v2256_v5 = vadd.f32 %v2255_v61, %v2254_v63  ;;  %4035 = vrcp.f32 %v2134_v27 }
 0x1e6   :  { %v2322_v45 = vmul.f32 %v4026_v55, %v5534_v50  ;;  %v2321_v16 = vmul.f32 %v4026_v55, %v5528_v40  ;;  %v2242_v59 = vadd.f32 %v2241_v1, %v2240_v37  ;;  %v2249_v60 = vadd.f32 %v2248_v42, %v2247_v26 }
 0x1e7   :  { %v2142_v4 = vrot.slane %v2141_v9, 1  ;;  %v2257_v19 = vrot.slane %v2256_v5, 2  ;;  %v2898_v17 = vshrl.u32 %v2895_v56, 7 }
 0x1e8   :  { %v4028_v28 = vpop.eup %4027  ;;  %4037 = vrcp.f32 %v2242_v59  ;;  %v2250_v34 = vrot.slane %v2249_v60, 1 }
 0x1e9   :  { %2510 = vperm.xlu1 %3900, %v2320_v53   ;;  %2505 = vperm.xlu0 %3899, %v2319_v10   ;;  %v2300_v32 = vmul.f32 %v4028_v28, %v6309_v54  ;;  %v2299_v21 = vmul.f32 %v4028_v28, %v6308_v48  ;;  %v2143_v50 = vadd.f32 %v2142_v4, %v2141_v9  ;;  %v6327_v4 = vld [vmem:[#allocation40_spill] sm:$0xff] }
 0x1ea   :  { %v2258_v49 = vadd.f32 %v2257_v19, %v2256_v5  ;;  %v2251_v7 = vadd.f32 %v2250_v34, %v2249_v60  ;;  %v6329_v19 = vld [vmem:[#allocation35_spill] sm:$0xff] }
 0x1eb   :  { %4039 = vrcp.f32 %v2143_v50  ;;  %v6330_v50 = vld [vmem:[#allocation36_spill] sm:$0xff] }
 0x1ec   :  { %v4030_v15 = vpop.eup %4029  ;;  %v2259_v13 = vrot.slane %v2258_v49, 1  ;;  %4041 = vrcp.f32 %v2251_v7 }
 0x1ed   :  { %2400 = vperm.xlu1 %3900, %v2298_v23   ;;  %2395 = vperm.xlu0 %3899, %v2297_v35   ;;  %v2324_v40 = vmul.f32 %v4030_v15, %v5556_v30  ;;  %v2323_v20 = vmul.f32 %v4030_v15, %v5550_v3  ;;  %v6325_v35 = vld [vmem:[#allocation32_spill] sm:$0xff] }
 0x1ee   :  { %v2260_v6 = vadd.f32 %v2259_v13, %v2258_v49 }
 0x1ef   :  { %v4032_v53 = vpop.eup %4031 }
 0x1f0   :  { %v2302_v48 = vmul.f32 %v4032_v53, %v5570_v36  ;;  %v2301_v10 = vmul.f32 %v4032_v53, %v5562_v0  ;;  %4043 = vrcp.f32 %v2260_v6  ;;  %v6331_v53 = vld [vmem:[#allocation38_spill] sm:$0xff] }
 0x1f1   :  { %2520 = vperm.xlu1 %3900, %v2322_v45   ;;  %2515 = vperm.xlu0 %3899, %v2321_v16   ;;  %v4034_v54 = vpop.eup %4033 }
 0x1f2   :  { %v4036_v25 = vpop.eup %4035  ;;  %v2326_v30 = vmul.f32 %v4034_v54, %v5601_v24  ;;  %v2325_v3 = vmul.f32 %v4034_v54, %v5580_v52 }
 0x1f3   :  { %v2304_v18 = vmul.f32 %v4036_v25, %v5620_v29  ;;  %v2303_v36 = vmul.f32 %v4036_v25, %v5615_v38 }
 0x1f5   :  { %2410 = vperm.xlu1 %3900, %v2300_v32   ;;  %2405 = vperm.xlu0 %3899, %v2299_v21   ;;  %v4038_v2 = vpop.eup %4037  ;;  %v6328_v21 = vld [vmem:[#allocation34_spill] sm:$0xff] }
 0x1f6   :  { %v2328_v43 = vmul.f32 %v4038_v2, %v5653_v44  ;;  %v2327_v63 = vmul.f32 %v4038_v2, %v5641_v39 }
 0x1f8   :  { %v4040_v0 = vpop.eup %4039 }
 0x1f9   :  { %2530 = vperm.xlu1 %3900, %v2324_v40   ;;  %2525 = vperm.xlu0 %3899, %v2323_v20   ;;  %v2306_v52 = vmul.f32 %v4040_v0, %v5665_v51  ;;  %v2305_v24 = vmul.f32 %v4040_v0, %v5661_v31  ;;  %v4042_v23 = vpop.eup %4041  ;;  %v2896_v51 = vand.u32 127, %v2895_v56 }
 0x1fa   :  { %v2330_v29 = vmul.f32 %v4042_v23, %v5673_v58  ;;  %v2329_v38 = vmul.f32 %v4042_v23, %v5671_v57 }
 0x1fb   :  { %v2901_v31 = vadd.s32 4294967288, %v2896_v51  ;;  %v5723_v12 = vsub.s32 %v2896_v51, %v2898_v17 }
 0x1fd   :  { %2420 = vperm.xlu1 %3900, %v2302_v48   ;;  %2415 = vperm.xlu0 %3899, %v2301_v10   ;;  %v4044_v55 = vpop.eup %4043  ;;  %v5721_v37 = vsub.s32 %v2901_v31, %v2898_v17  ;;  %v6332_v48 = vld [vmem:[#allocation37_spill] sm:$0xff] }
 0x1fe   :  { %v2332_v44 = vmul.f32 %v4044_v55, %v5689_v11  ;;  %v2331_v39 = vmul.f32 %v4044_v55, %v5681_v33  ;;  %v6326_v11 = vld [vmem:[#allocation33_spill] sm:$0xff] }
 0x201   :  { %2540 = vperm.xlu1 %3900, %v2326_v30   ;;  %2535 = vperm.xlu0 %3899, %v2325_v3  }
 0x205   :  { %2430 = vperm.xlu1 %3900, %v2304_v18   ;;  %2425 = vperm.xlu0 %3899, %v2303_v36  }
 0x209   :  { %2550 = vperm.xlu1 %3900, %v2328_v43   ;;  %2545 = vperm.xlu0 %3899, %v2327_v63  }
 0x20d   :  { %2440 = vperm.xlu1 %3900, %v2306_v52   ;;  %2435 = vperm.xlu0 %3899, %v2305_v24   ;;  %v6333_v52 = vld [vmem:[#allocation39_spill] sm:$0xff] }
 0x211   :  { %2560 = vperm.xlu1 %3900, %v2330_v29   ;;  %2555 = vperm.xlu0 %3899, %v2329_v38   ;;  %v6334_v29 = vld [vmem:[#allocation42_spill] sm:$0xff] }
 0x215   :  { %2570 = vperm.xlu1 %3900, %v2332_v44   ;;  %2565 = vperm.xlu0 %3899, %v2331_v39  }
 0x234   :  { %v2451_v58 = vpop.permute.xlu1 %2450  ;;  %v2446_v57 = vpop.permute.xlu0 %2445 }
 0x235   :  { %v2596_v26 = vmul.f32 %v2451_v58, %v6325_v35  ;;  %v3005_v61 = vrot.slane %v2451_v58, %v5721_v37  ;;  %v2595_v28 = vmul.f32 %v2446_v57, %v6326_v11  ;;  %v3001_v33 = vrot.slane %v2446_v57, %v5723_v12  ;;  %v6335_v35 = vld [vmem:[#allocation41_spill] sm:$0xff] }
 0x237   :  { %v2721_v27 = vsel %vm1083_vm2, %v2596_v26, 0.0  ;;  %v2720_v1 = vsel %vm1083_vm2, %v2595_v28, 0.0  ;;  %v5732_v9 = vsel %vm2906_vm4, %v3005_v61, %v3001_v33  ;;  %v6336_v61 = vld [vmem:[#allocation43_spill] sm:$0xff] }
 0x238   :  { %v2722_v45 = vadd.f32 %v2721_v27, %v2720_v1  ;;  %v2461_v16 = vpop.permute.xlu1 %2460  ;;  %v5734_v42 = vpop.permute.xlu0 %2335 }
 0x239   :  { %v2598_v15 = vmul.f32 %v2461_v16, %v6329_v19  ;;  %v2573_v40 = vmul.f32 %v5734_v42, %v6330_v50  ;;  %v3014_v49 = vrot.slane %v2461_v16, %v5721_v37 }
 0x23a   :  { %v2723_v28 = vrot.slane %v2722_v45, 4 }
 0x23b   :  { %v2730_v2 = vsel %vm1083_vm2, %v2598_v15, 0.0  ;;  %v2621_v18 = vsel %vm1083_vm2, %v2573_v40, 0.0  ;;  %v6337_v15 = vld [vmem:[#allocation44_spill] sm:$0xff] }
 0x23c   :  { %v5736_v5 = vpop.permute.xlu1 %2345  ;;  %v5738_v59 = vpop.permute.xlu0 %2340 }
 0x23d   :  { %v2575_v32 = vmul.f32 %v5736_v5, %v6327_v4  ;;  %v2574_v60 = vmul.f32 %v5738_v59, %v6328_v21 }
 0x23f   :  { %v2630_v13 = vsel %vm1083_vm2, %v2575_v32, 0.0  ;;  %v2622_v25 = vsel %vm1083_vm2, %v2574_v60, 0.0 }
 0x240   :  { %v5747_v20 = vpop.permute.xlu1 %2350  ;;  %v2456_v34 = vpop.permute.xlu0 %2455  ;;  %v2623_v55 = vadd.f32 %v2622_v25, %v2621_v18 }
 0x241   :  { %v2576_v54 = vmul.f32 %v5747_v20, %v6331_v53  ;;  %v2597_v10 = vmul.f32 %v2456_v34, %v6332_v48  ;;  %v3010_v7 = vrot.slane %v2456_v34, %v5723_v12  ;;  %v2724_v34 = vadd.f32 %v2723_v28, %v2722_v45  ;;  %v6338_v48 = vld [vmem:[#allocation46_spill] sm:$0xff]  ;;  %v6339_v45 = vld [vmem:[#allocation45_spill] sm:$0xff] }
 0x242   :  { %v2624_v33 = vrot.slane %v2623_v55, 4 }
 0x243   :  { %v2631_v30 = vsel %vm1083_vm2, %v2576_v54, 0.0  ;;  %v2729_v3 = vsel %vm1083_vm2, %v2597_v10, 0.0  ;;  %v5759_v6 = vsel %vm2906_vm4, %v3014_v49, %v3010_v7 }
 0x244   :  { %v2632_v36 = vadd.f32 %v2631_v30, %v2630_v13  ;;  %v2471_v0 = vpop.permute.xlu1 %2470  ;;  %v2466_v43 = vpop.permute.xlu0 %2465  ;;  %v2731_v63 = vadd.f32 %v2730_v2, %v2729_v3  ;;  %v2625_v49 = vadd.f32 %v2624_v33, %v2623_v55  ;;  %v2905_v33 = vrot.slane %v5738_v59, %v5721_v37 }
 0x245   :  { %v2600_v24 = vmul.f32 %v2471_v0, %v6333_v52  ;;  %v3023_v23 = vrot.slane %v2471_v0, %v5721_v37  ;;  %v2599_v38 = vmul.f32 %v2466_v43, %v6334_v29  ;;  %v3019_v44 = vrot.slane %v2466_v43, %v5723_v12  ;;  %v6340_v29 = vld [vmem:[#allocation47_spill] sm:$0xff] }
 0x246   :  { %v2633_v51 = vrot.slane %v2632_v36, 4  ;;  %v2732_v27 = vrot.slane %v2731_v63, 4  ;;  %v2725_v43 = vrot.slane %v2724_v34, 2  ;;  %v2900_v59 = vrot.slane %v5734_v42, %v5723_v12 }
 0x247   :  { %v2739_v39 = vsel %vm1083_vm2, %v2600_v24, 0.0  ;;  %v2738_v56 = vsel %vm1083_vm2, %v2599_v38, 0.0  ;;  %v5770_v31 = vsel %vm2906_vm4, %v3023_v23, %v3019_v44 }
 0x248   :  { %v2740_v17 = vadd.f32 %v2739_v39, %v2738_v56  ;;  %v5772_v58 = vpop.permute.xlu1 %2360  ;;  %v5774_v57 = vpop.permute.xlu0 %2355  ;;  %v2634_v4 = vadd.f32 %v2633_v51, %v2632_v36  ;;  %v2733_v53 = vadd.f32 %v2732_v27, %v2731_v63  ;;  %v2626_v63 = vrot.slane %v2625_v49, 2 }
 0x249   :  { %v2578_v26 = vmul.f32 %v5772_v58, %v6335_v35  ;;  %v2577_v11 = vmul.f32 %v5774_v57, %v6336_v61  ;;  %v2911_v51 = vrot.slane %v5736_v5, %v5723_v12  ;;  %v2907_v42 = vsel %vm2906_vm4, %v2905_v33, %v2900_v59  ;;  %v6346_v59 = vld [vmem:[#allocation19_spill] sm:$0xff] }
 0x24a   :  { %v2741_v32 = vrot.slane %v2740_v17, 4  ;;  %v2635_v13 = vrot.slane %v2634_v4, 2  ;;  %v2734_v24 = vrot.slane %v2733_v53, 2  ;;  %v2627_v61 = vadd.f32 %v2626_v63, %v2625_v49 }
 0x24b   :  { %v2640_v1 = vsel %vm1083_vm2, %v2578_v26, 0.0  ;;  %v2639_v16 = vsel %vm1083_vm2, %v2577_v11, 0.0  ;;  %v2726_v26 = vadd.f32 %v2725_v43, %v2724_v34  ;;  %v2915_v11 = vrot.slane %v5747_v20, %v5721_v37  ;;  %v6343_v34 = vld [vmem:[#allocation6_spill] sm:$0xff] }
 0x24c   :  { %v2481_v21 = vpop.permute.xlu1 %2480  ;;  %v2476_v60 = vpop.permute.xlu0 %2475  ;;  %v2641_v19 = vadd.f32 %v2640_v1, %v2639_v16  ;;  %v2742_v25 = vadd.f32 %v2741_v32, %v2740_v17  ;;  %v2636_v55 = vadd.f32 %v2635_v13, %v2634_v4  ;;  %v2735_v27 = vadd.f32 %v2734_v24, %v2733_v53  ;;  %v6341_v1 = vld [vmem:[#allocation48_spill] sm:$0xff]  ;;  %v6342_v4 = vld [vmem:[#allocation49_spill] sm:$0xff]  ;;  %v6344_v13 = vld [vmem:[#allocation7_spill] sm:$0xff] }
 0x24d   :  { %v2602_v50 = vmul.f32 %v2481_v21, %v6337_v15  ;;  %v3032_v40 = vrot.slane %v2481_v21, %v5721_v37  ;;  %v2601_v10 = vmul.f32 %v2476_v60, %v6338_v48  ;;  %v3028_v7 = vrot.slane %v2476_v60, %v5723_v12 }
 0x24e   :  { %v2642_v2 = vrot.slane %v2641_v19, 4  ;;  %v2743_v44 = vrot.slane %v2742_v25, 2  ;;  %v2637_v32 = vrot.slane %v2636_v55, 1  ;;  %v2924_v60 = vrot.slane %v5772_v58, %v5721_v37 }
 0x24f   :  { %v2748_v54 = vsel %vm1083_vm2, %v2602_v50, 0.0  ;;  %v2747_v18 = vsel %vm1083_vm2, %v2601_v10, 0.0  ;;  %v5793_v36 = vsel %vm2906_vm4, %v3032_v40, %v3028_v7  ;;  %v2727_v53 = vrot.slane %v2726_v26, 1 }
 0x250   :  { %v5787_v30 = vpop.permute.xlu1 %2370  ;;  %v5789_v3 = vpop.permute.xlu0 %2365  ;;  %v2749_v52 = vadd.f32 %v2748_v54, %v2747_v18  ;;  %v2643_v17 = vadd.f32 %v2642_v2, %v2641_v19  ;;  %v2744_v21 = vadd.f32 %v2743_v44, %v2742_v25  ;;  %v2920_v19 = vrot.slane %v5774_v57, %v5723_v12 }
 0x251   :  { %v2580_v0 = vmul.f32 %v5787_v30, %v6339_v45  ;;  %v2579_v38 = vmul.f32 %v5789_v3, %v6340_v29  ;;  %v2628_v54 = vrot.slane %v2627_v61, 1  ;;  %v2916_v48 = vsel %vm2906_vm4, %v2915_v11, %v2911_v51 }
 0x252   :  { %v2644_v50 = vrot.slane %v2643_v17, 2  ;;  %v2750_v58 = vrot.slane %v2749_v52, 4  ;;  %v2736_v10 = vrot.slane %v2735_v27, 1  ;;  %v2638_v2 = vadd.f32 %v2637_v32, %v2636_v55 }
 0x253   :  { %v2649_v23 = vsel %vm1083_vm2, %v2580_v0, 0.0  ;;  %v2648_v35 = vsel %vm1083_vm2, %v2579_v38, 0.0  ;;  %v2745_v18 = vrot.slane %v2744_v21, 1  ;;  %v2925_v45 = vsel %vm2906_vm4, %v2924_v60, %v2920_v19 }
 0x254   :  { %v5800_v39 = vpop.permute.xlu1 %2490  ;;  %v5802_v56 = vpop.permute.xlu0 %2485  ;;  %v2650_v28 = vadd.f32 %v2649_v23, %v2648_v35  ;;  %v2645_v63 = vadd.f32 %v2644_v50, %v2643_v17  ;;  %v2629_v38 = vadd.f32 %v2628_v54, %v2627_v61  ;;  %v3115_v44 = vsel %vm2861_vm5, %v2916_v48, %v2907_v42  ;;  %v6347_v50 = vld [vmem:[#allocation8_spill] sm:$0xff] }
 0x255   :  { %v2604_v16 = vmul.f32 %v5800_v39, %v6341_v1  ;;  %v2603_v5 = vmul.f32 %v5802_v56, %v6342_v4  ;;  %v2751_v51 = vadd.f32 %v2750_v58, %v2749_v52  ;;  %v5841_v11 = vadd.f32 %v2727_v53, %v2726_v26 }
 0x256   :  { %v2651_v40 = vrot.slane %v2650_v28, 4  ;;  %v5843_v55 = vadd.f32 %v2736_v10, %v2735_v27  ;;  %v3116_v33 = vsel %vm2863_vm6, %v2925_v45, %v3115_v44  ;;  %v2862_v1 = vsel %vm2861_vm5, %v2638_v2, %v2629_v38 }
 0x257   :  { %v2757_v57 = vsel %vm1083_vm2, %v2604_v16, 0.0  ;;  %v2756_v7 = vsel %vm1083_vm2, %v2603_v5, 0.0  ;;  %v2933_v17 = vrot.slane %v5787_v30, %v5721_v37  ;;  %v5855_v26 = vadd.f32 %v2745_v18, %v2744_v21  ;;  %v6345_v5 = vld [vmem:[#allocation20_spill] sm:$0xff] }
 0x258   :  { %v5819_v20 = vpop.permute.xlu1 %2380  ;;  %v5821_v15 = vpop.permute.xlu0 %2375  ;;  %v2652_v24 = vadd.f32 %v2651_v40, %v2650_v28  ;;  %v2758_v35 = vadd.f32 %v2757_v57, %v2756_v7  ;;  %v2929_v28 = vrot.slane %v5789_v3, %v5723_v12  ;;  %v2646_v27 = vrot.slane %v2645_v63, 1 }
 0x259   :  { %v2582_v49 = vmul.f32 %v5819_v20, %v6343_v34  ;;  %v2581_v25 = vmul.f32 %v5821_v15, %v6344_v13  ;;  %v2752_v60 = vrot.slane %v2751_v51, 2  ;;  %v2942_v40 = vrot.slane %v5819_v20, %v5721_v37 }
 0x25a   :  { %v2653_v4 = vrot.slane %v2652_v24, 2  ;;  %v2759_v19 = vrot.slane %v2758_v35, 4  ;;  %v2938_v21 = vrot.slane %v5821_v15, %v5723_v12  ;;  %v2934_v54 = vsel %vm2906_vm4, %v2933_v17, %v2929_v28 }
 0x25b   :  { %v2658_v23 = vsel %vm1083_vm2, %v2582_v49, 0.0  ;;  %v2657_v29 = vsel %vm1083_vm2, %v2581_v25, 0.0  ;;  %v6348_v49 = vld [vmem:[#allocation21_spill] sm:$0xff]  ;;  %v3041_v48 = vrot.slane %v5800_v39, %v5721_v37  ;;  %v3037_v58 = vrot.slane %v5802_v56, %v5723_v12  ;;  %v6349_v25 = vld [vmem:[#allocation50_spill] sm:$0xff] }
 0x25c   :  { %v5834_v0 = vpop.permute.xlu1 %2500  ;;  %v5836_v43 = vpop.permute.xlu0 %2495  ;;  %v2659_v61 = vadd.f32 %v2658_v23, %v2657_v29  ;;  %v2647_v7 = vadd.f32 %v2646_v27, %v2645_v63  ;;  %v2654_v15 = vadd.f32 %v2653_v4, %v2652_v24  ;;  %v2760_v2 = vadd.f32 %v2759_v19, %v2758_v35  ;;  %v6350_v63 = vld [vmem:[#allocation51_spill] sm:$0xff] }
 0x25d   :  { %v2606_v30 = vmul.f32 %v5834_v0, %v6346_v59  ;;  %v2605_v3 = vmul.f32 %v5836_v43, %v6347_v50  ;;  %v5884_v23 = vadd.f32 %v2752_v60, %v2751_v51  ;;  %v3117_v56 = vsel %vm2865_vm7, %v2934_v54, %v3116_v33  ;;  %v6352_v50 = vld [vmem:[#allocation23_spill] sm:$0xff] }
 0x25e   :  { %v2660_v10 = vrot.slane %v2659_v61, 4  ;;  %v2943_v29 = vsel %vm2906_vm4, %v2942_v40, %v2938_v21  ;;  %v3050_v44 = vrot.slane %v5834_v0, %v5721_v37  ;;  %v3046_v35 = vrot.slane %v5836_v43, %v5723_v12 }
 0x25f   :  { %v2766_v18 = vsel %vm1083_vm2, %v2606_v30, 0.0  ;;  %v2765_v39 = vsel %vm1083_vm2, %v2605_v3, 0.0  ;;  %v5898_v60 = vsel %vm2863_vm6, %v2647_v7, %v2862_v1  ;;  %v2761_v19 = vrot.slane %v2760_v2, 2 }
 0x260   :  { %v5851_v16 = vpop.permute.xlu1 %2390  ;;  %v5853_v52 = vpop.permute.xlu0 %2385  ;;  %v2661_v38 = vadd.f32 %v2660_v10, %v2659_v61  ;;  %v2767_v51 = vadd.f32 %v2766_v18, %v2765_v39  ;;  %v2655_v61 = vrot.slane %v2654_v15, 1  ;;  %v5901_v0 = vsel %vm2906_vm4, %v3041_v48, %v3037_v58 }
 0x261   :  { %v2584_v32 = vmul.f32 %v5851_v16, %v6345_v5  ;;  %v2583_v53 = vmul.f32 %v5853_v52, %v6348_v49  ;;  %v6351_v5 = vld [vmem:[#allocation22_spill] sm:$0xff]  ;;  %v2951_v43 = vrot.slane %v5851_v16, %v5721_v37  ;;  %v2947_v59 = vrot.slane %v5853_v52, %v5723_v12 }
 0x262   :  { %v2754_v40 = vrot.slane %v5884_v23, 1  ;;  %v3118_v1 = vsel %vm2867_vm8, %v2943_v29, %v3117_v56  ;;  %v2662_v16 = vrot.slane %v2661_v38, 2  ;;  %v2768_v54 = vrot.slane %v2767_v51, 4 }
 0x263   :  { %v2667_v34 = vsel %vm1083_vm2, %v2584_v32, 0.0  ;;  %v2666_v13 = vsel %vm1083_vm2, %v2583_v53, 0.0  ;;  %v5916_v52 = vsel %vm2906_vm4, %v3050_v44, %v3046_v35  ;;  %v2656_v58 = vadd.f32 %v2655_v61, %v2654_v15 }
 0x264   :  { %v5875_v57 = vpop.permute.xlu1 %2510  ;;  %v5877_v20 = vpop.permute.xlu0 %2505  ;;  %v2668_v45 = vadd.f32 %v2667_v34, %v2666_v13  ;;  %v5919_v10 = vadd.f32 %v2761_v19, %v2760_v2  ;;  %v6353_v13 = vld [vmem:[#allocation10_spill] sm:$0xff]  ;;  %v2663_v35 = vadd.f32 %v2662_v16, %v2661_v38 }
 0x265   :  { %v2608_v42 = vmul.f32 %v5875_v57, %v6349_v25  ;;  %v2607_v24 = vmul.f32 %v5877_v20, %v6350_v63  ;;  %v3059_v63 = vrot.slane %v5875_v57, %v5721_v37 }
 0x266   :  { %v2669_v17 = vrot.slane %v2668_v45, 4 }
 0x267   :  { %v2775_v4 = vsel %vm1083_vm2, %v2608_v42, 0.0  ;;  %v2774_v33 = vsel %vm1083_vm2, %v2607_v24, 0.0  ;;  %v2952_v42 = vsel %vm2906_vm4, %v2951_v43, %v2947_v59  ;;  %v6356_v43 = vld [vmem:[#allocation54_spill] sm:$0xff] }
 0x268   :  { %v2401_v28 = vpop.permute.xlu1 %2400  ;;  %v2396_v27 = vpop.permute.xlu0 %2395  ;;  %v2670_v21 = vadd.f32 %v2669_v17, %v2668_v45  ;;  %v2776_v34 = vadd.f32 %v2775_v4, %v2774_v33  ;;  %v6354_v45 = vld [vmem:[#allocation53_spill] sm:$0xff]  ;;  %v2769_v17 = vadd.f32 %v2768_v54, %v2767_v51  ;;  %v6355_v4 = vld [vmem:[#allocation24_spill] sm:$0xff] }
 0x269   :  { %v2586_v32 = vmul.f32 %v2401_v28, %v6351_v5  ;;  %v2585_v3 = vmul.f32 %v2396_v27, %v6352_v50  ;;  %v2960_v18 = vrot.slane %v2401_v28, %v5721_v37  ;;  %v2956_v39 = vrot.slane %v2396_v27, %v5723_v12 }
 0x26a   :  { %v2671_v29 = vrot.slane %v2670_v21, 2  ;;  %v2777_v15 = vrot.slane %v2776_v34, 4  ;;  %v3119_v28 = vsel %vm2869_vm9, %v2952_v42, %v3118_v1  ;;  %v3055_v50 = vrot.slane %v5877_v20, %v5723_v12 }
 0x26b   :  { %v2676_v30 = vsel %vm1083_vm2, %v2586_v32, 0.0  ;;  %v2675_v48 = vsel %vm1083_vm2, %v2585_v3, 0.0  ;;  %v2961_v19 = vsel %vm2906_vm4, %v2960_v18, %v2956_v39  ;;  %v2664_v42 = vrot.slane %v2663_v35, 1 }
 0x26c   :  { %v5911_v49 = vpop.permute.xlu1 %2520  ;;  %v5913_v53 = vpop.permute.xlu0 %2515  ;;  %v2677_v7 = vadd.f32 %v2676_v30, %v2675_v48  ;;  %v2672_v51 = vadd.f32 %v2671_v29, %v2670_v21  ;;  %v2778_v30 = vadd.f32 %v2777_v15, %v2776_v34  ;;  %v3120_v21 = vsel %vm2871_vm10, %v2961_v19, %v3119_v28 }
 0x26d   :  { %v2610_v25 = vmul.f32 %v5911_v49, %v6353_v13  ;;  %v2609_v56 = vmul.f32 %v5913_v53, %v6354_v45  ;;  %v6357_v13 = vld [vmem:[#allocation12_spill] sm:$0xff]  ;;  %v3068_v20 = vrot.slane %v5911_v49, %v5721_v37 }
 0x26e   :  { %v2678_v2 = vrot.slane %v2677_v7, 4  ;;  %v2673_v15 = vrot.slane %v2672_v51, 1 }
 0x26f   :  { %v2784_v32 = vsel %vm1083_vm2, %v2610_v25, 0.0  ;;  %v2783_v61 = vsel %vm1083_vm2, %v2609_v56, 0.0  ;;  %v6358_v56 = vld [vmem:[#allocation14_spill] sm:$0xff] }
 0x270   :  { %v2411_v24 = vpop.permute.xlu1 %2410  ;;  %v2406_v44 = vpop.permute.xlu0 %2405  ;;  %v2679_v27 = vadd.f32 %v2678_v2, %v2677_v7  ;;  %v2785_v54 = vadd.f32 %v2784_v32, %v2783_v61  ;;  %v2779_v2 = vrot.slane %v2778_v30, 2  ;;  %v3060_v61 = vsel %vm2906_vm4, %v3059_v63, %v3055_v50 }
 0x271   :  { %v2588_v33 = vmul.f32 %v2411_v24, %v6355_v4  ;;  %v2969_v5 = vrot.slane %v2411_v24, %v5721_v37  ;;  %v2587_v59 = vmul.f32 %v2406_v44, %v6356_v43  ;;  %v2965_v38 = vrot.slane %v2406_v44, %v5723_v12 }
 0x272   :  { %v2680_v3 = vrot.slane %v2679_v27, 2  ;;  %v3064_v24 = vrot.slane %v5913_v53, %v5723_v12  ;;  %v2866_v43 = vsel %vm2865_vm7, %v2656_v58, %v5898_v60 }
 0x273   :  { %v2685_v57 = vsel %vm1083_vm2, %v2588_v33, 0.0  ;;  %v2684_v48 = vsel %vm1083_vm2, %v2587_v59, 0.0  ;;  %v2970_v7 = vsel %vm2906_vm4, %v2969_v5, %v2965_v38  ;;  %v2770_v33 = vrot.slane %v2769_v17, 2 }
 0x274   :  { %v5941_v1 = vpop.permute.xlu1 %2530  ;;  %v5943_v16 = vpop.permute.xlu0 %2525  ;;  %v2681_v18 = vadd.f32 %v2680_v3, %v2679_v27  ;;  %v2686_v34 = vadd.f32 %v2685_v57, %v2684_v48  ;;  %v3121_v39 = vsel %vm2873_vm11, %v2970_v7, %v3120_v21  ;;  %v2786_v5 = vrot.slane %v2785_v54, 4  ;;  %v6359_v27 = vld [vmem:[#allocation26_spill] sm:$0xff]  ;;  %v6360_v3 = vld [vmem:[#allocation56_spill] sm:$0xff] }
 0x275   :  { %v2612_v25 = vmul.f32 %v5941_v1, %v6357_v13  ;;  %v2611_v29 = vmul.f32 %v5943_v16, %v6358_v56  ;;  %3139 = vst.msk [vmem:[%s6124_s9] sm:$0xff] %vm581_vm0, %v3121_v39  ;;  %v2665_v59 = vadd.f32 %v2664_v42, %v2663_v35  ;;  %v2674_v7 = vadd.f32 %v2673_v15, %v2672_v51  ;;  %v6362_v15 = vld [vmem:[#allocation28_spill] sm:$0xff] }
 0x276   :  { %v2687_v44 = vrot.slane %v2686_v34, 4  ;;  %v2682_v53 = vrot.slane %v2681_v18, 1  ;;  %v5975_v13 = vadd.f32 %v2779_v2, %v2778_v30  ;;  %v5978_v50 = vadd.f32 %v2770_v33, %v2769_v17 }
 0x277   :  { %v2793_v45 = vsel %vm1083_vm2, %v2612_v25, 0.0  ;;  %v2792_v28 = vsel %vm1083_vm2, %v2611_v29, 0.0  ;;  %v3069_v25 = vsel %vm2906_vm4, %v3068_v20, %v3064_v24  ;;  %v2787_v60 = vadd.f32 %v2786_v5, %v2785_v54  ;;  %v6361_v20 = vld [vmem:[#allocation57_spill] sm:$0xff] }
 0x278   :  { %v5962_v4 = vpop.permute.xlu1 %2420  ;;  %v5964_v49 = vpop.permute.xlu0 %2415  ;;  %v2688_v19 = vadd.f32 %v2687_v44, %v2686_v34  ;;  %v2794_v57 = vadd.f32 %v2793_v45, %v2792_v28  ;;  %v3129_v34 = vsel %vm2861_vm5, %v3060_v61, %v5916_v52  ;;  %v2683_v35 = vadd.f32 %v2682_v53, %v2681_v18 }
 0x279   :  { %v2590_v32 = vmul.f32 %v5962_v4, %v6359_v27  ;;  %v2589_v48 = vmul.f32 %v5964_v49, %v6360_v3  ;;  %v2868_v51 = vsel %vm2867_vm8, %v2665_v59, %v2866_v43  ;;  %v3130_v30 = vsel %vm2863_vm6, %v3069_v25, %v3129_v34  ;;  %v6363_v27 = vld [vmem:[#allocation16_spill] sm:$0xff]  ;;  %v6364_v3 = vld [vmem:[#allocation59_spill] sm:$0xff] }
 0x27a   :  { %v2689_v21 = vrot.slane %v2688_v19, 2  ;;  %v2795_v45 = vrot.slane %v2794_v57, 4  ;;  %v2870_v17 = vsel %vm2869_vm9, %v2674_v7, %v2868_v51  ;;  %v2781_v24 = vrot.slane %v5975_v13, 1 }
 0x27b   :  { %v2694_v38 = vsel %vm1083_vm2, %v2590_v32, 0.0  ;;  %v2693_v58 = vsel %vm1083_vm2, %v2589_v48, 0.0  ;;  %v3077_v54 = vrot.slane %v5941_v1, %v5721_v37  ;;  %v2788_v33 = vrot.slane %v2787_v60, 2 }
 0x27c   :  { %v2541_v39 = vpop.permute.xlu1 %2540  ;;  %v2536_v63 = vpop.permute.xlu0 %2535  ;;  %v2690_v42 = vadd.f32 %v2689_v21, %v2688_v19  ;;  %v2695_v56 = vadd.f32 %v2694_v38, %v2693_v58  ;;  %v3073_v5 = vrot.slane %v5943_v16, %v5723_v12  ;;  %v2796_v53 = vadd.f32 %v2795_v45, %v2794_v57 }
 0x27d   :  { %v2614_v29 = vmul.f32 %v2541_v39, %v6361_v20  ;;  %v2613_v2 = vmul.f32 %v2536_v63, %v6362_v15  ;;  %v2978_v19 = vrot.slane %v5962_v4, %v5721_v37  ;;  %v2872_v43 = vsel %vm2871_vm10, %v2683_v35, %v2870_v17  ;;  %v6365_v15 = vld [vmem:[#allocation17_spill] sm:$0xff] }
 0x27e   :  { %v2691_v52 = vrot.slane %v2690_v42, 1  ;;  %v2696_v28 = vrot.slane %v2695_v56, 4  ;;  %v2974_v16 = vrot.slane %v5964_v49, %v5723_v12  ;;  %v3086_v7 = vrot.slane %v2541_v39, %v5721_v37 }
 0x27f   :  { %v2802_v59 = vsel %vm1083_vm2, %v2614_v29, 0.0  ;;  %v2801_v1 = vsel %vm1083_vm2, %v2613_v2, 0.0  ;;  %v3082_v57 = vrot.slane %v2536_v63, %v5723_v12  ;;  %v3078_v34 = vsel %vm2906_vm4, %v3077_v54, %v3073_v5 }
 0x280   :  { %v2431_v18 = vpop.permute.xlu1 %2430  ;;  %v2426_v44 = vpop.permute.xlu0 %2425  ;;  %v2692_v61 = vadd.f32 %v2691_v52, %v2690_v42  ;;  %v2697_v58 = vadd.f32 %v2696_v28, %v2695_v56  ;;  %v6015_v49 = vadd.f32 %v2788_v33, %v2787_v60  ;;  %v2797_v39 = vrot.slane %v2796_v53, 2 }
 0x281   :  { %v2592_v32 = vmul.f32 %v2431_v18, %v6363_v27  ;;  %v2591_v48 = vmul.f32 %v2426_v44, %v6364_v3  ;;  %v2803_v63 = vadd.f32 %v2802_v59, %v2801_v1  ;;  %v2987_v51 = vrot.slane %v2431_v18, %v5721_v37 }
 0x282   :  { %v2874_v21 = vsel %vm2873_vm11, %v2692_v61, %v2872_v43  ;;  %v2983_v20 = vrot.slane %v2426_v44, %v5723_v12  ;;  %v3131_v2 = vsel %vm2865_vm7, %v3078_v34, %v3130_v30  ;;  %v3087_v17 = vsel %vm2906_vm4, %v3086_v7, %v3082_v57 }
 0x283   :  { %v2703_v38 = vsel %vm1083_vm2, %v2592_v32, 0.0  ;;  %v2702_v35 = vsel %vm1083_vm2, %v2591_v48, 0.0  ;;  %2892 = vst.msk [vmem:[#allocation2] sm:$0xff] %vm1083_vm2, %v2874_v21  ;;  %v2698_v33 = vrot.slane %v2697_v58, 2  ;;  %v6028_v28 = vadd.f32 %v2797_v39, %v2796_v53 }
 0x284   :  { %v6005_v25 = vpop.permute.xlu1 %2550  ;;  %v6007_v4 = vpop.permute.xlu0 %2545  ;;  %v2704_v45 = vadd.f32 %v2703_v38, %v2702_v35  ;;  %v2804_v27 = vrot.slane %v2803_v63, 4  ;;  %v2988_v30 = vsel %vm2906_vm4, %v2987_v51, %v2983_v20  ;;  %v3132_v1 = vsel %vm2867_vm8, %v3087_v17, %v3131_v2 }
 0x285   :  { %v2616_v42 = vmul.f32 %v6005_v25, %v5411_v8  ;;  %v2615_v56 = vmul.f32 %v6007_v4, %v6365_v15  ;;  %v2979_v8 = vsel %vm2906_vm4, %v2978_v19, %v2974_v16  ;;  %v2699_v16 = vadd.f32 %v2698_v33, %v2697_v58 }
 0x286   :  { %v2705_v60 = vrot.slane %v2704_v45, 4  ;;  %v2805_v34 = vadd.f32 %v2804_v27, %v2803_v63  ;;  %v3091_v35 = vrot.slane %v6007_v4, %v5723_v12 }
 0x287   :  { %v2811_v29 = vsel %vm1083_vm2, %v2616_v42, 0.0  ;;  %v2810_v5 = vsel %vm1083_vm2, %v2615_v56, 0.0  ;;  %v2700_v15 = vrot.slane %v2699_v16, 1 }
 0x288   :  { %v2441_v52 = vpop.permute.xlu1 %2440  ;;  %v2436_v54 = vpop.permute.xlu0 %2435  ;;  %v2706_v32 = vadd.f32 %v2705_v60, %v2704_v45  ;;  %v2812_v61 = vadd.f32 %v2811_v29, %v2810_v5 }
 0x289   :  { %v2594_v18 = vmul.f32 %v2441_v52, %v5443_v41  ;;  %v2996_v44 = vrot.slane %v2441_v52, %v5721_v37  ;;  %v2593_v43 = vmul.f32 %v2436_v54, %v5456_v14  ;;  %v2992_v59 = vrot.slane %v2436_v54, %v5723_v12 }
 0x28a   :  { %v2707_v38 = vrot.slane %v2706_v32, 2  ;;  %v3095_v41 = vrot.slane %v6005_v25, %v5721_v37  ;;  %v2813_v3 = vrot.slane %v2812_v61, 4  ;;  %v3122_v14 = vsel %vm2861_vm5, %v2988_v30, %v2979_v8 }
 0x28b   :  { %v2712_v19 = vsel %vm1083_vm2, %v2594_v18, 0.0  ;;  %v2711_v7 = vsel %vm1083_vm2, %v2593_v43, 0.0  ;;  %v2997_v57 = vsel %vm2906_vm4, %v2996_v44, %v2992_v59  ;;  %v2806_v8 = vrot.slane %v2805_v34, 2 }
 0x28c   :  { %v2561_v53 = vpop.permute.xlu1 %2560  ;;  %v2556_v48 = vpop.permute.xlu0 %2555  ;;  %v2713_v42 = vadd.f32 %v2712_v19, %v2711_v7  ;;  %v2708_v39 = vadd.f32 %v2707_v38, %v2706_v32  ;;  %v2814_v45 = vadd.f32 %v2813_v3, %v2812_v61  ;;  %v3123_v25 = vsel %vm2863_vm6, %v2997_v57, %v3122_v14 }
 0x28d   :  { %v2618_v21 = vmul.f32 %v2561_v53, %v6310_v22  ;;  %v2617_v51 = vmul.f32 %v2556_v48, %v6307_v47  ;;  %v3104_v29 = vrot.slane %v2561_v53, %v5721_v37  ;;  %v3100_v22 = vrot.slane %v2556_v48, %v5723_v12 }
 0x28e   :  { %v2714_v58 = vrot.slane %v2713_v42, 4  ;;  %v3124_v56 = vsel %vm2865_vm7, %v5732_v9, %v3123_v25  ;;  %v3096_v17 = vsel %vm2906_vm4, %v3095_v41, %v3091_v35  ;;  %v2709_v54 = vrot.slane %v2708_v39, 1 }
 0x28f   :  { %v2820_v20 = vsel %vm1083_vm2, %v2618_v21, 0.0  ;;  %v2819_v4 = vsel %vm1083_vm2, %v2617_v51, 0.0  ;;  %v3125_v60 = vsel %vm2867_vm8, %v5759_v6, %v3124_v56  ;;  %v2815_v33 = vrot.slane %v2814_v45, 2 }
 0x290   :  { %v2571_v63 = vpop.permute.xlu1 %2570  ;;  %v2715_v47 = vadd.f32 %v2714_v58, %v2713_v42  ;;  %v2566_v52 = vpop.permute.xlu0 %2565  ;;  %v3126_v5 = vsel %vm2869_vm9, %v5770_v31, %v3125_v60  ;;  %v2821_v18 = vadd.f32 %v2820_v20, %v2819_v4  ;;  %v2807_v19 = vadd.f32 %v2806_v8, %v2805_v34 }
 0x291   :  { %v2620_v2 = vmul.f32 %v2571_v63, %v6315_v62  ;;  %v3127_v9 = vsel %vm2871_vm10, %v5793_v36, %v3126_v5  ;;  %v3105_v62 = vsel %vm2906_vm4, %v3104_v29, %v3100_v22  ;;  %v3113_v6 = vrot.slane %v2571_v63, %v5721_v37 }
 0x292   :  { %v2716_v44 = vrot.slane %v2715_v47, 2  ;;  %v3128_v32 = vsel %vm2873_vm11, %v5901_v0, %v3127_v9  ;;  %v2822_v61 = vrot.slane %v2821_v18, 4  ;;  %v2619_v30 = vmul.f32 %v2566_v52, %v5474_v46 }
 0x293   :  { %v2829_v27 = vsel %vm1083_vm2, %v2620_v2, 0.0  ;;  %v3133_v31 = vsel %vm2869_vm9, %v3096_v17, %v3132_v1  ;;  %3140 = vst.msk [vmem:[%s6124_s9 + $0x8] sm:$0xff] %vm581_vm0, %v3128_v32  ;;  %v3109_v36 = vrot.slane %v2566_v52, %v5723_v12  ;;  %v2710_v59 = vadd.f32 %v2709_v54, %v2708_v39 }
 0x294   :  { %v2717_v43 = vadd.f32 %v2716_v44, %v2715_v47  ;;  %v2816_v38 = vadd.f32 %v2815_v33, %v2814_v45  ;;  %v2823_v41 = vadd.f32 %v2822_v61, %v2821_v18  ;;  %v2828_v0 = vsel %vm1083_vm2, %v2619_v30, 0.0 }
 0x295   :  { %v3134_v37 = vsel %vm2871_vm10, %v3105_v62, %v3133_v31  ;;  %v2830_v46 = vadd.f32 %v2829_v27, %v2828_v0  ;;  %v3114_v53 = vsel %vm2906_vm4, %v3113_v6, %v3109_v36  ;;  %v2790_v1 = vrot.slane %v6015_v49, 1 }
 0x296   :  { %v2718_v3 = vrot.slane %v2717_v43, 1  ;;  %v2701_v48 = vadd.f32 %v2700_v15, %v2699_v16  ;;  %v2824_v7 = vrot.slane %v2823_v41, 2  ;;  %v3135_v57 = vsel %vm2873_vm11, %v3114_v53, %v3134_v37 }
 0x297   :  { %v2772_v21 = vrot.slane %v5978_v50, 1  ;;  %v2799_v12 = vrot.slane %v6028_v28, 1  ;;  %v2831_v14 = vrot.slane %v2830_v46, 4  ;;  %3141 = vst.msk [vmem:[%s6124_s9 + $0x10] sm:$0xff] %vm581_vm0, %v3135_v57  ;;  %v2763_v35 = vrot.slane %v5919_v10, 1  ;;  %s4069_s9 = smov [#allocation2]  }
 0x298   :  { %v2719_v34 = vadd.f32 %v2718_v3, %v2717_v43  ;;  %v2808_v42 = vrot.slane %v2807_v19, 1  ;;  %v2875_v39 = vsel %vm2861_vm5, %v2710_v59, %v2701_v48  ;;  %v2825_v16 = vadd.f32 %v2824_v7, %v2823_v41  ;;  %s3147_s27 = sshll.u32 %s4069_s9, 4  ;;  %s3148_s27 = int_to_ptr.vmem [resolvable:$true] %s3147_s27 }
 0x299   :  { %v2782_v45 = vadd.f32 %v2781_v24, %v5975_v13  ;;  %v2817_v25 = vrot.slane %v2816_v38, 1  ;;  %v2832_v58 = vadd.f32 %v2831_v14, %v2830_v46  ;;  %v2755_v20 = vadd.f32 %v2754_v40, %v5884_v23  ;;  %s4046_s28 = scalar_lea.vmem %s3148_s27, 384  ;;  %p4051_p1 = scmp.lt.s32.totalorder %s3148_s27, %s3148_s27 }
 0x29a   :  { %v2876_v51 = vsel %vm2863_vm6, %v2719_v34, %v2875_v39  ;;  %v2791_v29 = vadd.f32 %v2790_v1, %v6015_v49  ;;  %v2826_v63 = vrot.slane %v2825_v16, 1  ;;  %v2773_v15 = vadd.f32 %v2772_v21, %v5978_v50  ;;  %p4047_p0 = scmp.ne.s32.totalorder %s3148_s27, %s4046_s28  ;;  %p4052_p2 = scmp.lt.s32.totalorder %s4046_s28, %s4046_s28 }
 0x29b   :  { %v2877_v22 = vsel %vm2865_vm7, %v5841_v11, %v2876_v51  ;;  %v2800_v56 = vadd.f32 %v2799_v12, %v6028_v28  ;;  %v2833_v4 = vrot.slane %v2832_v58, 2  ;;  %v2764_v24 = vadd.f32 %v2763_v35, %v5919_v10 }
 0x29c   :  { %v2878_v13 = vsel %vm2867_vm8, %v5843_v55, %v2877_v22  ;;  %v2809_v2 = vadd.f32 %v2808_v42, %v2807_v19  ;;  %v2882_v40 = vsel %vm2861_vm5, %v2782_v45, %v2773_v15  ;;  %v2818_v49 = vadd.f32 %v2817_v25, %v2816_v38  ;;  %p4053_p3 = por %p4052_p2, %p4051_p1 }
 0x29d   :  { %v2879_v23 = vsel %vm2869_vm9, %v5855_v26, %v2878_v13  ;;  %v2834_v8 = vadd.f32 %v2833_v4, %v2832_v58  ;;  %v2883_v50 = vsel %vm2863_vm6, %v2791_v29, %v2882_v40  ;;  %v2827_v17 = vadd.f32 %v2826_v63, %v2825_v16 }
 0x29e   :  { %v2880_v11 = vsel %vm2871_vm10, %v2755_v20, %v2879_v23  ;;  %v2884_v47 = vsel %vm2865_vm7, %v2800_v56, %v2883_v50  ;;  %p4054_p4 = pnand %p4053_p3, %p4047_p0 }
 0x29f   :  { %v2881_v28 = vsel %vm2873_vm11, %v2764_v24, %v2880_v11  ;;  %v2835_v55 = vrot.slane %v2834_v8, 1  ;;  %v2885_v26 = vsel %vm2867_vm8, %v2809_v2, %v2884_v47 }
 0x2a0   :  { %2893 = vst.msk [vmem:[#allocation2 + $0x8] sm:$0xff] %vm1083_vm2, %v2881_v28  ;;  %v2886_v10 = vsel %vm2869_vm9, %v2818_v49, %v2885_v26 }
 0x2a1   :  { %v2836_v60 = vadd.f32 %v2835_v55, %v2834_v8  ;;  %v2887_v52 = vsel %vm2871_vm10, %v2827_v17, %v2886_v10 }
 0x2a3   :  { %v2888_v54 = vsel %vm2873_vm11, %v2836_v60, %v2887_v52 }
 0x2a4   :  { %2894 = vst.msk [vmem:[#allocation2 + $0x10] sm:$0xff] %vm1083_vm2, %v2888_v54 }
 0x2a5   :  { %4057 = shalt.err (!%p4054_p4)
}
 0x2a6   :  { %s4070_s29 = smov 128   ;;  %s4071_s30 = smov 8  }
 0x2a7   :  { %3153 = dma.vmem_to_hbm [thread:$0]  %s3148_s27, 384, %s6122_s7, [#allocation3], %s4070_s29, %s4070_s29, %s4071_s30  }
 0x2a8   :  { %4066 = dma.done.wait [#allocation3], 384  }
 0x2a9   :  { %4067 = vsyncadd [#allocation3], 4294966912 }
 0x2aa   :  { %3354 = vsyncpa [#allocation3], 1 }

</bundles_post_ra>
